<compile_context>
chip_gen: v7x
topology: tpu7x:2x2x1
jax: 0.10.0
libtpu: 0.0.40
codegen_flags: <defaults>
</compile_context>

<pallas_src>
import functools

import jax
import jax.numpy as jnp
from jax.experimental import pallas as pl
from jax.experimental.pallas import tpu as pltpu


def cbam_kernel(x_ref, w1t_ref, b1_ref, w2t_ref, b2_ref, cm_ref, cw_ref, bn_ref,
                o_ref, *, H, W, HW, HWp, Bt):
    # x_ref  : (Bt, C, HWp) VMEM   flattened NCHW images (HW on the lane axis)
    # w1t_ref: (C, hidden)  VMEM   dense1 weight, pre-transposed
    # b1_ref : (1, hidden)  VMEM
    # w2t_ref: (hidden, C)  VMEM   dense2 weight, pre-transposed
    # b2_ref : (1, C)       VMEM
    # cm_ref : (7, HW)      VMEM   per-kx column-validity masks (1.0 / 0.0)
    # cw_ref : (98,)        SMEM   7x7 conv weights, idx = ic*49 + ky*7 + kx
    # bn_ref : (2,)         SMEM   folded inference BatchNorm: [scale, shift]
    # o_ref  : (Bt, C, HWp) VMEM
    f32 = jnp.float32
    x = x_ref[...].astype(f32)                               # (Bt, C, HWp)
    C = x.shape[1]

    # ---------------- channel attention ----------------
    # AdaptiveMaxPool2d / AdaptiveAvgPool2d -> per-(image, channel) scalars.
    if HWp != HW:  # pad lanes are zeros; mask them out of the max only.
        lane = jax.lax.broadcasted_iota(jnp.int32, (1, 1, HWp), 2)
        x_for_max = jnp.where(lane < HW, x, -jnp.inf)
    else:
        x_for_max = x
    p_max = jnp.max(x_for_max, axis=-1)                      # (Bt, C)
    p_ave = jnp.sum(x, axis=-1) * (1.0 / HW)                 # (Bt, C)
    pooled = jnp.concatenate([p_max, p_ave], axis=0)         # (2*Bt, C)

    # Shared MLP, one pass for both pools of all Bt images (no transposes).
    h = jnp.dot(pooled, w1t_ref[...], preferred_element_type=f32) + b1_ref[...]
    h = jnp.maximum(h, 0.0)                                  # ReLU
    z = jnp.dot(h, w2t_ref[...], preferred_element_type=f32) + b2_ref[...]  # (2*Bt, C)

    gate = jax.nn.sigmoid(z[:Bt] + z[Bt:])                   # (Bt, C)
    x_ca = x * gate[:, :, None]                              # (Bt, C, HWp)

    # ---------------- spatial attention ----------------
    # Channel max / mean maps, flattened and lane-dense; Bt rows on sublanes.
    s_max = jnp.max(x_ca, axis=1)                            # (Bt, HWp)
    s_ave = jnp.sum(x_ca, axis=1) * (1.0 / C)                # (Bt, HWp)

    # Flat zero-padded sources: position 3*W + 3 + (r*W + c) holds map(r, c);
    # any vertically out-of-image fetch of the 7x7 window lands in the zero
    # head/tail margins.  Horizontal overflow wraps into the adjacent row and
    # is removed by the per-kx masks below.
    head = jnp.zeros((Bt, 3 * W + 3), f32)
    tail = jnp.zeros((Bt, 5 * W - 3), f32)                   # valid for W >= 3
    src0 = jnp.concatenate([head, s_max[:, :HW], tail], axis=1)   # (Bt, HW+8W)
    src1 = jnp.concatenate([head, s_ave[:, :HW], tail], axis=1)

    # 7x7 conv as 98 shifted scalar MACs.  Accumulate into 7 per-kx
    # accumulators (also gives >=7-way VPU ILP); the column mask is applied
    # once per kx instead of once per tap.
    accs = [jnp.zeros((Bt, HW), f32) for _ in range(7)]
    for ic, src in enumerate((src0, src1)):
        for ky in range(7):
            base = ky * W
            for kx in range(7):
                wv = cw_ref[ic * 49 + ky * 7 + kx]           # SMEM scalar
                accs[kx] = accs[kx] + src[:, base + kx: base + kx + HW] * wv

    cm = cm_ref[...]                                         # (7, HW)
    conv = accs[3]                                           # kx==3: always in-bounds
    for kx in (0, 1, 2, 4, 5, 6):
        conv = conv + accs[kx] * cm[kx:kx + 1, :]

    # Folded inference BatchNorm2d(1, eps=1e-4), then sigmoid spatial gate.
    att = jax.nn.sigmoid(conv * bn_ref[0] + bn_ref[1])       # (Bt, HW)
    if HWp != HW:
        att = jnp.concatenate([att, jnp.zeros((Bt, HWp - HW), f32)], axis=1)

    o_ref[...] = (x_ca * att[:, None, :]).astype(o_ref.dtype)


def _pick_bt(B, C, HWp, *, budget_bytes=2 * 1024 * 1024):
    """Images per grid step: amortize per-step overhead and fill sublanes,
    but keep >= 2 grid steps (v7x has 2 TensorCores) and keep the per-step
    block small enough that double-buffered in+out plus f32 temporaries stay
    well inside v7x's 64 MiB VMEM (v5e/v6e have 128 MiB, so this is the
    binding generation)."""
    per_img = C * HWp * 4
    best = 1
    for cand in range(1, min(B, 8) + 1):
        if B % cand:
            continue
        if cand * per_img > budget_bytes:
            continue
        if B // cand >= 2 or B == 1:
            best = cand
    return best


def cbam_forward(x_nchw, w1, b1, w2, b2, conv_w, bn_scale, bn_shift, *, bt=None):
    """x_nchw: (B, C, H, W) (PyTorch layout).  Returns (B, C, H, W) float32."""
    B, C, H, W = x_nchw.shape
    hidden = w1.shape[0]
    assert W >= 3, "flat zero-padding scheme requires W >= 3"
    HW = H * W
    HWp = ((HW + 127) // 128) * 128                          # lane-dense last dim

    Bt = bt if bt is not None else _pick_bt(B, C, HWp)
    assert B % Bt == 0

    # Free, contiguous reshape (no NCHW<->NHWC transpose -> no extra HBM pass).
    x_flat = x_nchw.reshape(B, C, HW).astype(jnp.float32)
    if HWp != HW:
        x_flat = jnp.pad(x_flat, ((0, 0), (0, 0), (0, HWp - HW)))

    # Column-validity masks for the 7 horizontal taps (depend only on kx).
    col = (jnp.arange(HW, dtype=jnp.int32) % W)[None, :]     # (1, HW)
    kxs = jnp.arange(7, dtype=jnp.int32)[:, None]            # (7, 1)
    colmask = ((col + kxs - 3 >= 0) & (col + kxs - 3 < W)).astype(jnp.float32)

    w1t = jnp.asarray(w1, jnp.float32).T                     # (C, hidden)
    b1r = jnp.asarray(b1, jnp.float32).reshape(1, hidden)
    w2t = jnp.asarray(w2, jnp.float32).T                     # (hidden, C)
    b2r = jnp.asarray(b2, jnp.float32).reshape(1, C)
    cwf = jnp.asarray(conv_w, jnp.float32).reshape(-1)       # (98,)
    bnf = jnp.stack([jnp.float32(bn_scale), jnp.float32(bn_shift)])

    out_flat = pl.pallas_call(
        functools.partial(cbam_kernel, H=H, W=W, HW=HW, HWp=HWp, Bt=Bt),
        out_shape=jax.ShapeDtypeStruct((B, C, HWp), jnp.float32),
        grid_spec=pltpu.PrefetchScalarGridSpec(
            num_scalar_prefetch=0,
            grid=(B // Bt,),
            in_specs=[
                pl.BlockSpec((Bt, C, HWp), lambda b: (b, 0, 0)),   # x
                pl.BlockSpec((C, hidden), lambda b: (0, 0)),        # W1^T
                pl.BlockSpec((1, hidden), lambda b: (0, 0)),        # b1
                pl.BlockSpec((hidden, C), lambda b: (0, 0)),        # W2^T
                pl.BlockSpec((1, C), lambda b: (0, 0)),             # b2
                pl.BlockSpec((7, HW), lambda b: (0, 0)),            # column masks
                pl.BlockSpec(memory_space=pltpu.MemorySpace.SMEM),  # conv weights (98,)
                pl.BlockSpec(memory_space=pltpu.MemorySpace.SMEM),  # folded BN (2,)
            ],
            out_specs=pl.BlockSpec((Bt, C, HWp), lambda b: (b, 0, 0)),
        ),
        compiler_params=pltpu.CompilerParams(
            dimension_semantics=("parallel",)),
    )(x_flat, w1t, b1r, w2t, b2r, colmask, cwf, bnf)

    return out_flat[:, :, :HW].reshape(B, C, H, W)


def cbam_reference(x, w1, b1, w2, b2, conv_w, bn_scale, bn_shift):
    """Pure-JAX reference mirroring the PyTorch forward (eval-mode BN)."""
    def mlp(v):                                              # v: (B, C)
        h = jnp.maximum(v @ w1.T + b1, 0.0)
        return h @ w2.T + b2

    p_max = jnp.max(x, axis=(2, 3))
    p_ave = jnp.mean(x, axis=(2, 3))
    gate = jax.nn.sigmoid(mlp(p_max) + mlp(p_ave))
    x_ca = x * gate[:, :, None, None]

    s_max = jnp.max(x_ca, axis=1, keepdims=True)
    s_ave = jnp.mean(x_ca, axis=1, keepdims=True)
    s = jnp.concatenate([s_max, s_ave], axis=1)
    conv = jax.lax.conv_general_dilated(
        s, conv_w, window_strides=(1, 1), padding=((3, 3), (3, 3)),
        dimension_numbers=("NCHW", "OIHW", "NCHW"))
    att = jax.nn.sigmoid(conv * bn_scale + bn_shift)
    return x_ca * att


if __name__ == "__main__":
    B, C, H, W = 4, 16, 16, 16        # Bt=2 -> 2 grid steps (feeds both v7x TCs)
    hidden = C // 8

    key = jax.random.PRNGKey(0)
    kx_, k1, k2, k3, k4, k5 = jax.random.split(key, 6)
    x = jax.random.normal(kx_, (B, C, H, W), jnp.float32)

    # Deterministic synthetic parameters (PyTorch orientation: Linear = (out, in)).
    w1 = jax.random.normal(k1, (hidden, C), jnp.float32) * 0.25       # dense1
    b1 = jax.random.normal(k2, (hidden,), jnp.float32) * 0.10
    w2 = jax.random.normal(k3, (C, hidden), jnp.float32) * 0.25       # dense2
    b2 = jax.random.normal(k4, (C,), jnp.float32) * 0.10
    conv_w = jax.random.normal(k5, (1, 2, 7, 7), jnp.float32) * 0.20  # Conv2d(2,1,7,7)

    # BatchNorm2d(1, eps=1e-4) at init, inference semantics -> fold to scale/shift.
    gamma, beta, r_mean, r_var, eps = 1.0, 0.0, 0.0, 1.0, 1e-4
    bn_scale = gamma / (r_var + eps) ** 0.5
    bn_shift = beta - r_mean * bn_scale

    out = cbam_forward(x, w1, b1, w2, b2, conv_w, bn_scale, bn_shift)
    out = jax.block_until_ready(out)

    ref = cbam_reference(x, w1, b1, w2, b2, conv_w,
                         jnp.float32(bn_scale), jnp.float32(bn_shift))
    assert out.shape == (B, C, H, W)
    max_err = float(jnp.max(jnp.abs(out - ref)))
    assert max_err < 1e-3, f"max abs error {max_err}"

    print("KERNEL_OK")
</pallas_src>

<mosaic_0001>
module attributes {stable_mosaic.version = 11 : i64} {
  func.func @cbam_kernel(%arg0: i32, %arg1: memref<2x16x256xf32, #tpu.memory_space<vmem>>, %arg2: memref<16x2xf32, #tpu.memory_space<vmem>>, %arg3: memref<1x2xf32, #tpu.memory_space<vmem>>, %arg4: memref<2x16xf32, #tpu.memory_space<vmem>>, %arg5: memref<1x16xf32, #tpu.memory_space<vmem>>, %arg6: memref<7x256xf32, #tpu.memory_space<vmem>>, %arg7: memref<98xf32, #tpu.memory_space<smem>>, %arg8: memref<2xf32, #tpu.memory_space<smem>>, %arg9: memref<2x16x256xf32, #tpu.memory_space<vmem>>) attributes {dimension_semantics = [#tpu.dimension_semantics<parallel>], iteration_bounds = array<i64: 2>, scalar_prefetch = 0 : i64, scratch_operands = 0 : i64, tpu.core_type = #tpu.core_type<tc>, window_params = [{transform_indices = @transform_0, window_bounds = array<i64: 2, 16, 256>}, {pipeline_mode = #tpu.pipeline_mode<synchronous>, transform_indices = @transform_1, window_bounds = array<i64: 16, 2>}, {pipeline_mode = #tpu.pipeline_mode<synchronous>, transform_indices = @transform_2, window_bounds = array<i64: 1, 2>}, {pipeline_mode = #tpu.pipeline_mode<synchronous>, transform_indices = @transform_3, window_bounds = array<i64: 2, 16>}, {pipeline_mode = #tpu.pipeline_mode<synchronous>, transform_indices = @transform_4, window_bounds = array<i64: 1, 16>}, {pipeline_mode = #tpu.pipeline_mode<synchronous>, transform_indices = @transform_5, window_bounds = array<i64: 7, 256>}, {transform_indices = @transform_6, window_bounds = array<i64: 98>}, {transform_indices = @transform_7, window_bounds = array<i64: 2>}, {transform_indices = @transform_8, window_bounds = array<i64: 2, 16, 256>}]} {
    %c0 = arith.constant 0 : index
    %c0_0 = arith.constant 0 : index
    %c0_1 = arith.constant 0 : index
    %0 = vector.load %arg1[%c0, %c0_0, %c0_1] : memref<2x16x256xf32, #tpu.memory_space<vmem>>, vector<2x16x256xf32>
    %cst = arith.constant dense<0xFF800000> : vector<2x16xf32>
    %1 = vector.multi_reduction <maximumf>, %0, %cst [2] : vector<2x16x256xf32> to vector<2x16xf32>
    %cst_2 = arith.constant dense<0.000000e+00> : vector<2x16xf32>
    %2 = vector.multi_reduction <add>, %0, %cst_2 [2] : vector<2x16x256xf32> to vector<2x16xf32>
    %cst_3 = arith.constant 3.906250e-03 : f32
    %3 = vector.broadcast %cst_3 : f32 to vector<2x16xf32>
    %4 = arith.mulf %2, %3 : vector<2x16xf32>
    %5 = tpu.concatenate %1, %4 in 0 : vector<2x16xf32>, vector<2x16xf32> -> vector<4x16xf32>
    %c0_4 = arith.constant 0 : index
    %c0_5 = arith.constant 0 : index
    %6 = vector.load %arg2[%c0_4, %c0_5] : memref<16x2xf32, #tpu.memory_space<vmem>>, vector<16x2xf32>
    %cst_6 = arith.constant dense<0.000000e+00> : vector<4x2xf32>
    %7 = tpu.matmul %5, %6, %cst_6 {dimension_numbers = #tpu.dot_dimension_numbers<[1], [0], [0], [1], [0, 0, 1, 1], [], []>} : vector<4x16xf32>, vector<16x2xf32>, vector<4x2xf32> -> vector<4x2xf32>
    %c0_7 = arith.constant 0 : index
    %c0_8 = arith.constant 0 : index
    %8 = vector.load %arg3[%c0_7, %c0_8] : memref<1x2xf32, #tpu.memory_space<vmem>>, vector<1x2xf32>
    %9 = vector.broadcast %8 : vector<1x2xf32> to vector<4x2xf32>
    %10 = arith.addf %7, %9 : vector<4x2xf32>
    %cst_9 = arith.constant 0.000000e+00 : f32
    %11 = vector.broadcast %cst_9 : f32 to vector<4x2xf32>
    %12 = arith.maximumf %10, %11 : vector<4x2xf32>
    %c0_10 = arith.constant 0 : index
    %c0_11 = arith.constant 0 : index
    %13 = vector.load %arg4[%c0_10, %c0_11] : memref<2x16xf32, #tpu.memory_space<vmem>>, vector<2x16xf32>
    %cst_12 = arith.constant dense<0.000000e+00> : vector<4x16xf32>
    %14 = tpu.matmul %12, %13, %cst_12 {dimension_numbers = #tpu.dot_dimension_numbers<[1], [0], [0], [1], [0, 0, 1, 1], [], []>} : vector<4x2xf32>, vector<2x16xf32>, vector<4x16xf32> -> vector<4x16xf32>
    %c0_13 = arith.constant 0 : index
    %c0_14 = arith.constant 0 : index
    %15 = vector.load %arg5[%c0_13, %c0_14] : memref<1x16xf32, #tpu.memory_space<vmem>>, vector<1x16xf32>
    %16 = vector.broadcast %15 : vector<1x16xf32> to vector<4x16xf32>
    %17 = arith.addf %14, %16 : vector<4x16xf32>
    %18 = vector.extract_strided_slice %17 {offsets = [0, 0], sizes = [2, 16], strides = [1, 1]} : vector<4x16xf32> to vector<2x16xf32>
    %19 = vector.extract_strided_slice %17 {offsets = [2, 0], sizes = [2, 16], strides = [1, 1]} : vector<4x16xf32> to vector<2x16xf32>
    %20 = arith.addf %18, %19 : vector<2x16xf32>
    %21 = arith.negf %20 : vector<2x16xf32>
    %22 = math.exp %21 : vector<2x16xf32>
    %cst_15 = arith.constant 1.000000e+00 : f32
    %23 = vector.broadcast %cst_15 : f32 to vector<2x16xf32>
    %24 = arith.addf %23, %22 : vector<2x16xf32>
    %25 = arith.divf %23, %24 : vector<2x16xf32>
    %26 = vector.shape_cast %25 : vector<2x16xf32> to vector<2x16x1xf32>
    %27 = vector.broadcast %26 : vector<2x16x1xf32> to vector<2x16x256xf32>
    %28 = arith.mulf %0, %27 : vector<2x16x256xf32>
    %cst_16 = arith.constant dense<0xFF800000> : vector<2x256xf32>
    %29 = vector.multi_reduction <maximumf>, %28, %cst_16 [1] : vector<2x16x256xf32> to vector<2x256xf32>
    %cst_17 = arith.constant dense<0.000000e+00> : vector<2x256xf32>
    %30 = vector.multi_reduction <add>, %28, %cst_17 [1] : vector<2x16x256xf32> to vector<2x256xf32>
    %cst_18 = arith.constant 6.250000e-02 : f32
    %31 = vector.broadcast %cst_18 : f32 to vector<2x256xf32>
    %32 = arith.mulf %30, %31 : vector<2x256xf32>
    %cst_19 = arith.constant 0.000000e+00 : f32
    %33 = vector.broadcast %cst_19 : f32 to vector<2x51xf32>
    %cst_20 = arith.constant 0.000000e+00 : f32
    %34 = vector.broadcast %cst_20 : f32 to vector<2x77xf32>
    %35 = tpu.concatenate %33, %29, %34 in 1 : vector<2x51xf32>, vector<2x256xf32>, vector<2x77xf32> -> vector<2x384xf32>
    %36 = tpu.concatenate %33, %32, %34 in 1 : vector<2x51xf32>, vector<2x256xf32>, vector<2x77xf32> -> vector<2x384xf32>
    %cst_21 = arith.constant 0.000000e+00 : f32
    %37 = vector.broadcast %cst_21 : f32 to vector<2x256xf32>
    %cst_22 = arith.constant 0.000000e+00 : f32
    %38 = vector.broadcast %cst_22 : f32 to vector<2x256xf32>
    %cst_23 = arith.constant 0.000000e+00 : f32
    %39 = vector.broadcast %cst_23 : f32 to vector<2x256xf32>
    %cst_24 = arith.constant 0.000000e+00 : f32
    %40 = vector.broadcast %cst_24 : f32 to vector<2x256xf32>
    %cst_25 = arith.constant 0.000000e+00 : f32
    %41 = vector.broadcast %cst_25 : f32 to vector<2x256xf32>
    %cst_26 = arith.constant 0.000000e+00 : f32
    %42 = vector.broadcast %cst_26 : f32 to vector<2x256xf32>
    %cst_27 = arith.constant 0.000000e+00 : f32
    %43 = vector.broadcast %cst_27 : f32 to vector<2x256xf32>
    %c0_28 = arith.constant 0 : index
    %44 = memref.load %arg7[%c0_28] : memref<98xf32, #tpu.memory_space<smem>>
    %45 = vector.extract_strided_slice %35 {offsets = [0, 0], sizes = [2, 256], strides = [1, 1]} : vector<2x384xf32> to vector<2x256xf32>
    %46 = vector.broadcast %44 : f32 to vector<2x256xf32>
    %47 = arith.mulf %45, %46 : vector<2x256xf32>
    %48 = arith.addf %37, %47 : vector<2x256xf32>
    %c1 = arith.constant 1 : index
    %49 = memref.load %arg7[%c1] : memref<98xf32, #tpu.memory_space<smem>>
    %50 = vector.extract_strided_slice %35 {offsets = [0, 1], sizes = [2, 256], strides = [1, 1]} : vector<2x384xf32> to vector<2x256xf32>
    %51 = vector.broadcast %49 : f32 to vector<2x256xf32>
    %52 = arith.mulf %50, %51 : vector<2x256xf32>
    %53 = arith.addf %38, %52 : vector<2x256xf32>
    %c2 = arith.constant 2 : index
    %54 = memref.load %arg7[%c2] : memref<98xf32, #tpu.memory_space<smem>>
    %55 = vector.extract_strided_slice %35 {offsets = [0, 2], sizes = [2, 256], strides = [1, 1]} : vector<2x384xf32> to vector<2x256xf32>
    %56 = vector.broadcast %54 : f32 to vector<2x256xf32>
    %57 = arith.mulf %55, %56 : vector<2x256xf32>
    %58 = arith.addf %39, %57 : vector<2x256xf32>
    %c3 = arith.constant 3 : index
    %59 = memref.load %arg7[%c3] : memref<98xf32, #tpu.memory_space<smem>>
    %60 = vector.extract_strided_slice %35 {offsets = [0, 3], sizes = [2, 256], strides = [1, 1]} : vector<2x384xf32> to vector<2x256xf32>
    %61 = vector.broadcast %59 : f32 to vector<2x256xf32>
    %62 = arith.mulf %60, %61 : vector<2x256xf32>
    %63 = arith.addf %40, %62 : vector<2x256xf32>
    %c4 = arith.constant 4 : index
    %64 = memref.load %arg7[%c4] : memref<98xf32, #tpu.memory_space<smem>>
    %65 = vector.extract_strided_slice %35 {offsets = [0, 4], sizes = [2, 256], strides = [1, 1]} : vector<2x384xf32> to vector<2x256xf32>
    %66 = vector.broadcast %64 : f32 to vector<2x256xf32>
    %67 = arith.mulf %65, %66 : vector<2x256xf32>
    %68 = arith.addf %41, %67 : vector<2x256xf32>
    %c5 = arith.constant 5 : index
    %69 = memref.load %arg7[%c5] : memref<98xf32, #tpu.memory_space<smem>>
    %70 = vector.extract_strided_slice %35 {offsets = [0, 5], sizes = [2, 256], strides = [1, 1]} : vector<2x384xf32> to vector<2x256xf32>
    %71 = vector.broadcast %69 : f32 to vector<2x256xf32>
    %72 = arith.mulf %70, %71 : vector<2x256xf32>
    %73 = arith.addf %42, %72 : vector<2x256xf32>
    %c6 = arith.constant 6 : index
    %74 = memref.load %arg7[%c6] : memref<98xf32, #tpu.memory_space<smem>>
    %75 = vector.extract_strided_slice %35 {offsets = [0, 6], sizes = [2, 256], strides = [1, 1]} : vector<2x384xf32> to vector<2x256xf32>
    %76 = vector.broadcast %74 : f32 to vector<2x256xf32>
    %77 = arith.mulf %75, %76 : vector<2x256xf32>
    %78 = arith.addf %43, %77 : vector<2x256xf32>
    %c7 = arith.constant 7 : index
    %79 = memref.load %arg7[%c7] : memref<98xf32, #tpu.memory_space<smem>>
    %80 = vector.extract_strided_slice %35 {offsets = [0, 16], sizes = [2, 256], strides = [1, 1]} : vector<2x384xf32> to vector<2x256xf32>
    %81 = vector.broadcast %79 : f32 to vector<2x256xf32>
    %82 = arith.mulf %80, %81 : vector<2x256xf32>
    %83 = arith.addf %48, %82 : vector<2x256xf32>
    %c8 = arith.constant 8 : index
    %84 = memref.load %arg7[%c8] : memref<98xf32, #tpu.memory_space<smem>>
    %85 = vector.extract_strided_slice %35 {offsets = [0, 17], sizes = [2, 256], strides = [1, 1]} : vector<2x384xf32> to vector<2x256xf32>
    %86 = vector.broadcast %84 : f32 to vector<2x256xf32>
    %87 = arith.mulf %85, %86 : vector<2x256xf32>
    %88 = arith.addf %53, %87 : vector<2x256xf32>
    %c9 = arith.constant 9 : index
    %89 = memref.load %arg7[%c9] : memref<98xf32, #tpu.memory_space<smem>>
    %90 = vector.extract_strided_slice %35 {offsets = [0, 18], sizes = [2, 256], strides = [1, 1]} : vector<2x384xf32> to vector<2x256xf32>
    %91 = vector.broadcast %89 : f32 to vector<2x256xf32>
    %92 = arith.mulf %90, %91 : vector<2x256xf32>
    %93 = arith.addf %58, %92 : vector<2x256xf32>
    %c10 = arith.constant 10 : index
    %94 = memref.load %arg7[%c10] : memref<98xf32, #tpu.memory_space<smem>>
    %95 = vector.extract_strided_slice %35 {offsets = [0, 19], sizes = [2, 256], strides = [1, 1]} : vector<2x384xf32> to vector<2x256xf32>
    %96 = vector.broadcast %94 : f32 to vector<2x256xf32>
    %97 = arith.mulf %95, %96 : vector<2x256xf32>
    %98 = arith.addf %63, %97 : vector<2x256xf32>
    %c11 = arith.constant 11 : index
    %99 = memref.load %arg7[%c11] : memref<98xf32, #tpu.memory_space<smem>>
    %100 = vector.extract_strided_slice %35 {offsets = [0, 20], sizes = [2, 256], strides = [1, 1]} : vector<2x384xf32> to vector<2x256xf32>
    %101 = vector.broadcast %99 : f32 to vector<2x256xf32>
    %102 = arith.mulf %100, %101 : vector<2x256xf32>
    %103 = arith.addf %68, %102 : vector<2x256xf32>
    %c12 = arith.constant 12 : index
    %104 = memref.load %arg7[%c12] : memref<98xf32, #tpu.memory_space<smem>>
    %105 = vector.extract_strided_slice %35 {offsets = [0, 21], sizes = [2, 256], strides = [1, 1]} : vector<2x384xf32> to vector<2x256xf32>
    %106 = vector.broadcast %104 : f32 to vector<2x256xf32>
    %107 = arith.mulf %105, %106 : vector<2x256xf32>
    %108 = arith.addf %73, %107 : vector<2x256xf32>
    %c13 = arith.constant 13 : index
    %109 = memref.load %arg7[%c13] : memref<98xf32, #tpu.memory_space<smem>>
    %110 = vector.extract_strided_slice %35 {offsets = [0, 22], sizes = [2, 256], strides = [1, 1]} : vector<2x384xf32> to vector<2x256xf32>
    %111 = vector.broadcast %109 : f32 to vector<2x256xf32>
    %112 = arith.mulf %110, %111 : vector<2x256xf32>
    %113 = arith.addf %78, %112 : vector<2x256xf32>
    %c14 = arith.constant 14 : index
    %114 = memref.load %arg7[%c14] : memref<98xf32, #tpu.memory_space<smem>>
    %115 = vector.extract_strided_slice %35 {offsets = [0, 32], sizes = [2, 256], strides = [1, 1]} : vector<2x384xf32> to vector<2x256xf32>
    %116 = vector.broadcast %114 : f32 to vector<2x256xf32>
    %117 = arith.mulf %115, %116 : vector<2x256xf32>
    %118 = arith.addf %83, %117 : vector<2x256xf32>
    %c15 = arith.constant 15 : index
    %119 = memref.load %arg7[%c15] : memref<98xf32, #tpu.memory_space<smem>>
    %120 = vector.extract_strided_slice %35 {offsets = [0, 33], sizes = [2, 256], strides = [1, 1]} : vector<2x384xf32> to vector<2x256xf32>
    %121 = vector.broadcast %119 : f32 to vector<2x256xf32>
    %122 = arith.mulf %120, %121 : vector<2x256xf32>
    %123 = arith.addf %88, %122 : vector<2x256xf32>
    %c16 = arith.constant 16 : index
    %124 = memref.load %arg7[%c16] : memref<98xf32, #tpu.memory_space<smem>>
    %125 = vector.extract_strided_slice %35 {offsets = [0, 34], sizes = [2, 256], strides = [1, 1]} : vector<2x384xf32> to vector<2x256xf32>
    %126 = vector.broadcast %124 : f32 to vector<2x256xf32>
    %127 = arith.mulf %125, %126 : vector<2x256xf32>
    %128 = arith.addf %93, %127 : vector<2x256xf32>
    %c17 = arith.constant 17 : index
    %129 = memref.load %arg7[%c17] : memref<98xf32, #tpu.memory_space<smem>>
    %130 = vector.extract_strided_slice %35 {offsets = [0, 35], sizes = [2, 256], strides = [1, 1]} : vector<2x384xf32> to vector<2x256xf32>
    %131 = vector.broadcast %129 : f32 to vector<2x256xf32>
    %132 = arith.mulf %130, %131 : vector<2x256xf32>
    %133 = arith.addf %98, %132 : vector<2x256xf32>
    %c18 = arith.constant 18 : index
    %134 = memref.load %arg7[%c18] : memref<98xf32, #tpu.memory_space<smem>>
    %135 = vector.extract_strided_slice %35 {offsets = [0, 36], sizes = [2, 256], strides = [1, 1]} : vector<2x384xf32> to vector<2x256xf32>
    %136 = vector.broadcast %134 : f32 to vector<2x256xf32>
    %137 = arith.mulf %135, %136 : vector<2x256xf32>
    %138 = arith.addf %103, %137 : vector<2x256xf32>
    %c19 = arith.constant 19 : index
    %139 = memref.load %arg7[%c19] : memref<98xf32, #tpu.memory_space<smem>>
    %140 = vector.extract_strided_slice %35 {offsets = [0, 37], sizes = [2, 256], strides = [1, 1]} : vector<2x384xf32> to vector<2x256xf32>
    %141 = vector.broadcast %139 : f32 to vector<2x256xf32>
    %142 = arith.mulf %140, %141 : vector<2x256xf32>
    %143 = arith.addf %108, %142 : vector<2x256xf32>
    %c20 = arith.constant 20 : index
    %144 = memref.load %arg7[%c20] : memref<98xf32, #tpu.memory_space<smem>>
    %145 = vector.extract_strided_slice %35 {offsets = [0, 38], sizes = [2, 256], strides = [1, 1]} : vector<2x384xf32> to vector<2x256xf32>
    %146 = vector.broadcast %144 : f32 to vector<2x256xf32>
    %147 = arith.mulf %145, %146 : vector<2x256xf32>
    %148 = arith.addf %113, %147 : vector<2x256xf32>
    %c21 = arith.constant 21 : index
    %149 = memref.load %arg7[%c21] : memref<98xf32, #tpu.memory_space<smem>>
    %150 = vector.extract_strided_slice %35 {offsets = [0, 48], sizes = [2, 256], strides = [1, 1]} : vector<2x384xf32> to vector<2x256xf32>
    %151 = vector.broadcast %149 : f32 to vector<2x256xf32>
    %152 = arith.mulf %150, %151 : vector<2x256xf32>
    %153 = arith.addf %118, %152 : vector<2x256xf32>
    %c22 = arith.constant 22 : index
    %154 = memref.load %arg7[%c22] : memref<98xf32, #tpu.memory_space<smem>>
    %155 = vector.extract_strided_slice %35 {offsets = [0, 49], sizes = [2, 256], strides = [1, 1]} : vector<2x384xf32> to vector<2x256xf32>
    %156 = vector.broadcast %154 : f32 to vector<2x256xf32>
    %157 = arith.mulf %155, %156 : vector<2x256xf32>
    %158 = arith.addf %123, %157 : vector<2x256xf32>
    %c23 = arith.constant 23 : index
    %159 = memref.load %arg7[%c23] : memref<98xf32, #tpu.memory_space<smem>>
    %160 = vector.extract_strided_slice %35 {offsets = [0, 50], sizes = [2, 256], strides = [1, 1]} : vector<2x384xf32> to vector<2x256xf32>
    %161 = vector.broadcast %159 : f32 to vector<2x256xf32>
    %162 = arith.mulf %160, %161 : vector<2x256xf32>
    %163 = arith.addf %128, %162 : vector<2x256xf32>
    %c24 = arith.constant 24 : index
    %164 = memref.load %arg7[%c24] : memref<98xf32, #tpu.memory_space<smem>>
    %165 = vector.extract_strided_slice %35 {offsets = [0, 51], sizes = [2, 256], strides = [1, 1]} : vector<2x384xf32> to vector<2x256xf32>
    %166 = vector.broadcast %164 : f32 to vector<2x256xf32>
    %167 = arith.mulf %165, %166 : vector<2x256xf32>
    %168 = arith.addf %133, %167 : vector<2x256xf32>
    %c25 = arith.constant 25 : index
    %169 = memref.load %arg7[%c25] : memref<98xf32, #tpu.memory_space<smem>>
    %170 = vector.extract_strided_slice %35 {offsets = [0, 52], sizes = [2, 256], strides = [1, 1]} : vector<2x384xf32> to vector<2x256xf32>
    %171 = vector.broadcast %169 : f32 to vector<2x256xf32>
    %172 = arith.mulf %170, %171 : vector<2x256xf32>
    %173 = arith.addf %138, %172 : vector<2x256xf32>
    %c26 = arith.constant 26 : index
    %174 = memref.load %arg7[%c26] : memref<98xf32, #tpu.memory_space<smem>>
    %175 = vector.extract_strided_slice %35 {offsets = [0, 53], sizes = [2, 256], strides = [1, 1]} : vector<2x384xf32> to vector<2x256xf32>
    %176 = vector.broadcast %174 : f32 to vector<2x256xf32>
    %177 = arith.mulf %175, %176 : vector<2x256xf32>
    %178 = arith.addf %143, %177 : vector<2x256xf32>
    %c27 = arith.constant 27 : index
    %179 = memref.load %arg7[%c27] : memref<98xf32, #tpu.memory_space<smem>>
    %180 = vector.extract_strided_slice %35 {offsets = [0, 54], sizes = [2, 256], strides = [1, 1]} : vector<2x384xf32> to vector<2x256xf32>
    %181 = vector.broadcast %179 : f32 to vector<2x256xf32>
    %182 = arith.mulf %180, %181 : vector<2x256xf32>
    %183 = arith.addf %148, %182 : vector<2x256xf32>
    %c28 = arith.constant 28 : index
    %184 = memref.load %arg7[%c28] : memref<98xf32, #tpu.memory_space<smem>>
    %185 = vector.extract_strided_slice %35 {offsets = [0, 64], sizes = [2, 256], strides = [1, 1]} : vector<2x384xf32> to vector<2x256xf32>
    %186 = vector.broadcast %184 : f32 to vector<2x256xf32>
    %187 = arith.mulf %185, %186 : vector<2x256xf32>
    %188 = arith.addf %153, %187 : vector<2x256xf32>
    %c29 = arith.constant 29 : index
    %189 = memref.load %arg7[%c29] : memref<98xf32, #tpu.memory_space<smem>>
    %190 = vector.extract_strided_slice %35 {offsets = [0, 65], sizes = [2, 256], strides = [1, 1]} : vector<2x384xf32> to vector<2x256xf32>
    %191 = vector.broadcast %189 : f32 to vector<2x256xf32>
    %192 = arith.mulf %190, %191 : vector<2x256xf32>
    %193 = arith.addf %158, %192 : vector<2x256xf32>
    %c30 = arith.constant 30 : index
    %194 = memref.load %arg7[%c30] : memref<98xf32, #tpu.memory_space<smem>>
    %195 = vector.extract_strided_slice %35 {offsets = [0, 66], sizes = [2, 256], strides = [1, 1]} : vector<2x384xf32> to vector<2x256xf32>
    %196 = vector.broadcast %194 : f32 to vector<2x256xf32>
    %197 = arith.mulf %195, %196 : vector<2x256xf32>
    %198 = arith.addf %163, %197 : vector<2x256xf32>
    %c31 = arith.constant 31 : index
    %199 = memref.load %arg7[%c31] : memref<98xf32, #tpu.memory_space<smem>>
    %200 = vector.extract_strided_slice %35 {offsets = [0, 67], sizes = [2, 256], strides = [1, 1]} : vector<2x384xf32> to vector<2x256xf32>
    %201 = vector.broadcast %199 : f32 to vector<2x256xf32>
    %202 = arith.mulf %200, %201 : vector<2x256xf32>
    %203 = arith.addf %168, %202 : vector<2x256xf32>
    %c32 = arith.constant 32 : index
    %204 = memref.load %arg7[%c32] : memref<98xf32, #tpu.memory_space<smem>>
    %205 = vector.extract_strided_slice %35 {offsets = [0, 68], sizes = [2, 256], strides = [1, 1]} : vector<2x384xf32> to vector<2x256xf32>
    %206 = vector.broadcast %204 : f32 to vector<2x256xf32>
    %207 = arith.mulf %205, %206 : vector<2x256xf32>
    %208 = arith.addf %173, %207 : vector<2x256xf32>
    %c33 = arith.constant 33 : index
    %209 = memref.load %arg7[%c33] : memref<98xf32, #tpu.memory_space<smem>>
    %210 = vector.extract_strided_slice %35 {offsets = [0, 69], sizes = [2, 256], strides = [1, 1]} : vector<2x384xf32> to vector<2x256xf32>
    %211 = vector.broadcast %209 : f32 to vector<2x256xf32>
    %212 = arith.mulf %210, %211 : vector<2x256xf32>
    %213 = arith.addf %178, %212 : vector<2x256xf32>
    %c34 = arith.constant 34 : index
    %214 = memref.load %arg7[%c34] : memref<98xf32, #tpu.memory_space<smem>>
    %215 = vector.extract_strided_slice %35 {offsets = [0, 70], sizes = [2, 256], strides = [1, 1]} : vector<2x384xf32> to vector<2x256xf32>
    %216 = vector.broadcast %214 : f32 to vector<2x256xf32>
    %217 = arith.mulf %215, %216 : vector<2x256xf32>
    %218 = arith.addf %183, %217 : vector<2x256xf32>
    %c35 = arith.constant 35 : index
    %219 = memref.load %arg7[%c35] : memref<98xf32, #tpu.memory_space<smem>>
    %220 = vector.extract_strided_slice %35 {offsets = [0, 80], sizes = [2, 256], strides = [1, 1]} : vector<2x384xf32> to vector<2x256xf32>
    %221 = vector.broadcast %219 : f32 to vector<2x256xf32>
    %222 = arith.mulf %220, %221 : vector<2x256xf32>
    %223 = arith.addf %188, %222 : vector<2x256xf32>
    %c36 = arith.constant 36 : index
    %224 = memref.load %arg7[%c36] : memref<98xf32, #tpu.memory_space<smem>>
    %225 = vector.extract_strided_slice %35 {offsets = [0, 81], sizes = [2, 256], strides = [1, 1]} : vector<2x384xf32> to vector<2x256xf32>
    %226 = vector.broadcast %224 : f32 to vector<2x256xf32>
    %227 = arith.mulf %225, %226 : vector<2x256xf32>
    %228 = arith.addf %193, %227 : vector<2x256xf32>
    %c37 = arith.constant 37 : index
    %229 = memref.load %arg7[%c37] : memref<98xf32, #tpu.memory_space<smem>>
    %230 = vector.extract_strided_slice %35 {offsets = [0, 82], sizes = [2, 256], strides = [1, 1]} : vector<2x384xf32> to vector<2x256xf32>
    %231 = vector.broadcast %229 : f32 to vector<2x256xf32>
    %232 = arith.mulf %230, %231 : vector<2x256xf32>
    %233 = arith.addf %198, %232 : vector<2x256xf32>
    %c38 = arith.constant 38 : index
    %234 = memref.load %arg7[%c38] : memref<98xf32, #tpu.memory_space<smem>>
    %235 = vector.extract_strided_slice %35 {offsets = [0, 83], sizes = [2, 256], strides = [1, 1]} : vector<2x384xf32> to vector<2x256xf32>
    %236 = vector.broadcast %234 : f32 to vector<2x256xf32>
    %237 = arith.mulf %235, %236 : vector<2x256xf32>
    %238 = arith.addf %203, %237 : vector<2x256xf32>
    %c39 = arith.constant 39 : index
    %239 = memref.load %arg7[%c39] : memref<98xf32, #tpu.memory_space<smem>>
    %240 = vector.extract_strided_slice %35 {offsets = [0, 84], sizes = [2, 256], strides = [1, 1]} : vector<2x384xf32> to vector<2x256xf32>
    %241 = vector.broadcast %239 : f32 to vector<2x256xf32>
    %242 = arith.mulf %240, %241 : vector<2x256xf32>
    %243 = arith.addf %208, %242 : vector<2x256xf32>
    %c40 = arith.constant 40 : index
    %244 = memref.load %arg7[%c40] : memref<98xf32, #tpu.memory_space<smem>>
    %245 = vector.extract_strided_slice %35 {offsets = [0, 85], sizes = [2, 256], strides = [1, 1]} : vector<2x384xf32> to vector<2x256xf32>
    %246 = vector.broadcast %244 : f32 to vector<2x256xf32>
    %247 = arith.mulf %245, %246 : vector<2x256xf32>
    %248 = arith.addf %213, %247 : vector<2x256xf32>
    %c41 = arith.constant 41 : index
    %249 = memref.load %arg7[%c41] : memref<98xf32, #tpu.memory_space<smem>>
    %250 = vector.extract_strided_slice %35 {offsets = [0, 86], sizes = [2, 256], strides = [1, 1]} : vector<2x384xf32> to vector<2x256xf32>
    %251 = vector.broadcast %249 : f32 to vector<2x256xf32>
    %252 = arith.mulf %250, %251 : vector<2x256xf32>
    %253 = arith.addf %218, %252 : vector<2x256xf32>
    %c42 = arith.constant 42 : index
    %254 = memref.load %arg7[%c42] : memref<98xf32, #tpu.memory_space<smem>>
    %255 = vector.extract_strided_slice %35 {offsets = [0, 96], sizes = [2, 256], strides = [1, 1]} : vector<2x384xf32> to vector<2x256xf32>
    %256 = vector.broadcast %254 : f32 to vector<2x256xf32>
    %257 = arith.mulf %255, %256 : vector<2x256xf32>
    %258 = arith.addf %223, %257 : vector<2x256xf32>
    %c43 = arith.constant 43 : index
    %259 = memref.load %arg7[%c43] : memref<98xf32, #tpu.memory_space<smem>>
    %260 = vector.extract_strided_slice %35 {offsets = [0, 97], sizes = [2, 256], strides = [1, 1]} : vector<2x384xf32> to vector<2x256xf32>
    %261 = vector.broadcast %259 : f32 to vector<2x256xf32>
    %262 = arith.mulf %260, %261 : vector<2x256xf32>
    %263 = arith.addf %228, %262 : vector<2x256xf32>
    %c44 = arith.constant 44 : index
    %264 = memref.load %arg7[%c44] : memref<98xf32, #tpu.memory_space<smem>>
    %265 = vector.extract_strided_slice %35 {offsets = [0, 98], sizes = [2, 256], strides = [1, 1]} : vector<2x384xf32> to vector<2x256xf32>
    %266 = vector.broadcast %264 : f32 to vector<2x256xf32>
    %267 = arith.mulf %265, %266 : vector<2x256xf32>
    %268 = arith.addf %233, %267 : vector<2x256xf32>
    %c45 = arith.constant 45 : index
    %269 = memref.load %arg7[%c45] : memref<98xf32, #tpu.memory_space<smem>>
    %270 = vector.extract_strided_slice %35 {offsets = [0, 99], sizes = [2, 256], strides = [1, 1]} : vector<2x384xf32> to vector<2x256xf32>
    %271 = vector.broadcast %269 : f32 to vector<2x256xf32>
    %272 = arith.mulf %270, %271 : vector<2x256xf32>
    %273 = arith.addf %238, %272 : vector<2x256xf32>
    %c46 = arith.constant 46 : index
    %274 = memref.load %arg7[%c46] : memref<98xf32, #tpu.memory_space<smem>>
    %275 = vector.extract_strided_slice %35 {offsets = [0, 100], sizes = [2, 256], strides = [1, 1]} : vector<2x384xf32> to vector<2x256xf32>
    %276 = vector.broadcast %274 : f32 to vector<2x256xf32>
    %277 = arith.mulf %275, %276 : vector<2x256xf32>
    %278 = arith.addf %243, %277 : vector<2x256xf32>
    %c47 = arith.constant 47 : index
    %279 = memref.load %arg7[%c47] : memref<98xf32, #tpu.memory_space<smem>>
    %280 = vector.extract_strided_slice %35 {offsets = [0, 101], sizes = [2, 256], strides = [1, 1]} : vector<2x384xf32> to vector<2x256xf32>
    %281 = vector.broadcast %279 : f32 to vector<2x256xf32>
    %282 = arith.mulf %280, %281 : vector<2x256xf32>
    %283 = arith.addf %248, %282 : vector<2x256xf32>
    %c48 = arith.constant 48 : index
    %284 = memref.load %arg7[%c48] : memref<98xf32, #tpu.memory_space<smem>>
    %285 = vector.extract_strided_slice %35 {offsets = [0, 102], sizes = [2, 256], strides = [1, 1]} : vector<2x384xf32> to vector<2x256xf32>
    %286 = vector.broadcast %284 : f32 to vector<2x256xf32>
    %287 = arith.mulf %285, %286 : vector<2x256xf32>
    %288 = arith.addf %253, %287 : vector<2x256xf32>
    %c49 = arith.constant 49 : index
    %289 = memref.load %arg7[%c49] : memref<98xf32, #tpu.memory_space<smem>>
    %290 = vector.extract_strided_slice %36 {offsets = [0, 0], sizes = [2, 256], strides = [1, 1]} : vector<2x384xf32> to vector<2x256xf32>
    %291 = vector.broadcast %289 : f32 to vector<2x256xf32>
    %292 = arith.mulf %290, %291 : vector<2x256xf32>
    %293 = arith.addf %258, %292 : vector<2x256xf32>
    %c50 = arith.constant 50 : index
    %294 = memref.load %arg7[%c50] : memref<98xf32, #tpu.memory_space<smem>>
    %295 = vector.extract_strided_slice %36 {offsets = [0, 1], sizes = [2, 256], strides = [1, 1]} : vector<2x384xf32> to vector<2x256xf32>
    %296 = vector.broadcast %294 : f32 to vector<2x256xf32>
    %297 = arith.mulf %295, %296 : vector<2x256xf32>
    %298 = arith.addf %263, %297 : vector<2x256xf32>
    %c51 = arith.constant 51 : index
    %299 = memref.load %arg7[%c51] : memref<98xf32, #tpu.memory_space<smem>>
    %300 = vector.extract_strided_slice %36 {offsets = [0, 2], sizes = [2, 256], strides = [1, 1]} : vector<2x384xf32> to vector<2x256xf32>
    %301 = vector.broadcast %299 : f32 to vector<2x256xf32>
    %302 = arith.mulf %300, %301 : vector<2x256xf32>
    %303 = arith.addf %268, %302 : vector<2x256xf32>
    %c52 = arith.constant 52 : index
    %304 = memref.load %arg7[%c52] : memref<98xf32, #tpu.memory_space<smem>>
    %305 = vector.extract_strided_slice %36 {offsets = [0, 3], sizes = [2, 256], strides = [1, 1]} : vector<2x384xf32> to vector<2x256xf32>
    %306 = vector.broadcast %304 : f32 to vector<2x256xf32>
    %307 = arith.mulf %305, %306 : vector<2x256xf32>
    %308 = arith.addf %273, %307 : vector<2x256xf32>
    %c53 = arith.constant 53 : index
    %309 = memref.load %arg7[%c53] : memref<98xf32, #tpu.memory_space<smem>>
    %310 = vector.extract_strided_slice %36 {offsets = [0, 4], sizes = [2, 256], strides = [1, 1]} : vector<2x384xf32> to vector<2x256xf32>
    %311 = vector.broadcast %309 : f32 to vector<2x256xf32>
    %312 = arith.mulf %310, %311 : vector<2x256xf32>
    %313 = arith.addf %278, %312 : vector<2x256xf32>
    %c54 = arith.constant 54 : index
    %314 = memref.load %arg7[%c54] : memref<98xf32, #tpu.memory_space<smem>>
    %315 = vector.extract_strided_slice %36 {offsets = [0, 5], sizes = [2, 256], strides = [1, 1]} : vector<2x384xf32> to vector<2x256xf32>
    %316 = vector.broadcast %314 : f32 to vector<2x256xf32>
    %317 = arith.mulf %315, %316 : vector<2x256xf32>
    %318 = arith.addf %283, %317 : vector<2x256xf32>
    %c55 = arith.constant 55 : index
    %319 = memref.load %arg7[%c55] : memref<98xf32, #tpu.memory_space<smem>>
    %320 = vector.extract_strided_slice %36 {offsets = [0, 6], sizes = [2, 256], strides = [1, 1]} : vector<2x384xf32> to vector<2x256xf32>
    %321 = vector.broadcast %319 : f32 to vector<2x256xf32>
    %322 = arith.mulf %320, %321 : vector<2x256xf32>
    %323 = arith.addf %288, %322 : vector<2x256xf32>
    %c56 = arith.constant 56 : index
    %324 = memref.load %arg7[%c56] : memref<98xf32, #tpu.memory_space<smem>>
    %325 = vector.extract_strided_slice %36 {offsets = [0, 16], sizes = [2, 256], strides = [1, 1]} : vector<2x384xf32> to vector<2x256xf32>
    %326 = vector.broadcast %324 : f32 to vector<2x256xf32>
    %327 = arith.mulf %325, %326 : vector<2x256xf32>
    %328 = arith.addf %293, %327 : vector<2x256xf32>
    %c57 = arith.constant 57 : index
    %329 = memref.load %arg7[%c57] : memref<98xf32, #tpu.memory_space<smem>>
    %330 = vector.extract_strided_slice %36 {offsets = [0, 17], sizes = [2, 256], strides = [1, 1]} : vector<2x384xf32> to vector<2x256xf32>
    %331 = vector.broadcast %329 : f32 to vector<2x256xf32>
    %332 = arith.mulf %330, %331 : vector<2x256xf32>
    %333 = arith.addf %298, %332 : vector<2x256xf32>
    %c58 = arith.constant 58 : index
    %334 = memref.load %arg7[%c58] : memref<98xf32, #tpu.memory_space<smem>>
    %335 = vector.extract_strided_slice %36 {offsets = [0, 18], sizes = [2, 256], strides = [1, 1]} : vector<2x384xf32> to vector<2x256xf32>
    %336 = vector.broadcast %334 : f32 to vector<2x256xf32>
    %337 = arith.mulf %335, %336 : vector<2x256xf32>
    %338 = arith.addf %303, %337 : vector<2x256xf32>
    %c59 = arith.constant 59 : index
    %339 = memref.load %arg7[%c59] : memref<98xf32, #tpu.memory_space<smem>>
    %340 = vector.extract_strided_slice %36 {offsets = [0, 19], sizes = [2, 256], strides = [1, 1]} : vector<2x384xf32> to vector<2x256xf32>
    %341 = vector.broadcast %339 : f32 to vector<2x256xf32>
    %342 = arith.mulf %340, %341 : vector<2x256xf32>
    %343 = arith.addf %308, %342 : vector<2x256xf32>
    %c60 = arith.constant 60 : index
    %344 = memref.load %arg7[%c60] : memref<98xf32, #tpu.memory_space<smem>>
    %345 = vector.extract_strided_slice %36 {offsets = [0, 20], sizes = [2, 256], strides = [1, 1]} : vector<2x384xf32> to vector<2x256xf32>
    %346 = vector.broadcast %344 : f32 to vector<2x256xf32>
    %347 = arith.mulf %345, %346 : vector<2x256xf32>
    %348 = arith.addf %313, %347 : vector<2x256xf32>
    %c61 = arith.constant 61 : index
    %349 = memref.load %arg7[%c61] : memref<98xf32, #tpu.memory_space<smem>>
    %350 = vector.extract_strided_slice %36 {offsets = [0, 21], sizes = [2, 256], strides = [1, 1]} : vector<2x384xf32> to vector<2x256xf32>
    %351 = vector.broadcast %349 : f32 to vector<2x256xf32>
    %352 = arith.mulf %350, %351 : vector<2x256xf32>
    %353 = arith.addf %318, %352 : vector<2x256xf32>
    %c62 = arith.constant 62 : index
    %354 = memref.load %arg7[%c62] : memref<98xf32, #tpu.memory_space<smem>>
    %355 = vector.extract_strided_slice %36 {offsets = [0, 22], sizes = [2, 256], strides = [1, 1]} : vector<2x384xf32> to vector<2x256xf32>
    %356 = vector.broadcast %354 : f32 to vector<2x256xf32>
    %357 = arith.mulf %355, %356 : vector<2x256xf32>
    %358 = arith.addf %323, %357 : vector<2x256xf32>
    %c63 = arith.constant 63 : index
    %359 = memref.load %arg7[%c63] : memref<98xf32, #tpu.memory_space<smem>>
    %360 = vector.extract_strided_slice %36 {offsets = [0, 32], sizes = [2, 256], strides = [1, 1]} : vector<2x384xf32> to vector<2x256xf32>
    %361 = vector.broadcast %359 : f32 to vector<2x256xf32>
    %362 = arith.mulf %360, %361 : vector<2x256xf32>
    %363 = arith.addf %328, %362 : vector<2x256xf32>
    %c64 = arith.constant 64 : index
    %364 = memref.load %arg7[%c64] : memref<98xf32, #tpu.memory_space<smem>>
    %365 = vector.extract_strided_slice %36 {offsets = [0, 33], sizes = [2, 256], strides = [1, 1]} : vector<2x384xf32> to vector<2x256xf32>
    %366 = vector.broadcast %364 : f32 to vector<2x256xf32>
    %367 = arith.mulf %365, %366 : vector<2x256xf32>
    %368 = arith.addf %333, %367 : vector<2x256xf32>
    %c65 = arith.constant 65 : index
    %369 = memref.load %arg7[%c65] : memref<98xf32, #tpu.memory_space<smem>>
    %370 = vector.extract_strided_slice %36 {offsets = [0, 34], sizes = [2, 256], strides = [1, 1]} : vector<2x384xf32> to vector<2x256xf32>
    %371 = vector.broadcast %369 : f32 to vector<2x256xf32>
    %372 = arith.mulf %370, %371 : vector<2x256xf32>
    %373 = arith.addf %338, %372 : vector<2x256xf32>
    %c66 = arith.constant 66 : index
    %374 = memref.load %arg7[%c66] : memref<98xf32, #tpu.memory_space<smem>>
    %375 = vector.extract_strided_slice %36 {offsets = [0, 35], sizes = [2, 256], strides = [1, 1]} : vector<2x384xf32> to vector<2x256xf32>
    %376 = vector.broadcast %374 : f32 to vector<2x256xf32>
    %377 = arith.mulf %375, %376 : vector<2x256xf32>
    %378 = arith.addf %343, %377 : vector<2x256xf32>
    %c67 = arith.constant 67 : index
    %379 = memref.load %arg7[%c67] : memref<98xf32, #tpu.memory_space<smem>>
    %380 = vector.extract_strided_slice %36 {offsets = [0, 36], sizes = [2, 256], strides = [1, 1]} : vector<2x384xf32> to vector<2x256xf32>
    %381 = vector.broadcast %379 : f32 to vector<2x256xf32>
    %382 = arith.mulf %380, %381 : vector<2x256xf32>
    %383 = arith.addf %348, %382 : vector<2x256xf32>
    %c68 = arith.constant 68 : index
    %384 = memref.load %arg7[%c68] : memref<98xf32, #tpu.memory_space<smem>>
    %385 = vector.extract_strided_slice %36 {offsets = [0, 37], sizes = [2, 256], strides = [1, 1]} : vector<2x384xf32> to vector<2x256xf32>
    %386 = vector.broadcast %384 : f32 to vector<2x256xf32>
    %387 = arith.mulf %385, %386 : vector<2x256xf32>
    %388 = arith.addf %353, %387 : vector<2x256xf32>
    %c69 = arith.constant 69 : index
    %389 = memref.load %arg7[%c69] : memref<98xf32, #tpu.memory_space<smem>>
    %390 = vector.extract_strided_slice %36 {offsets = [0, 38], sizes = [2, 256], strides = [1, 1]} : vector<2x384xf32> to vector<2x256xf32>
    %391 = vector.broadcast %389 : f32 to vector<2x256xf32>
    %392 = arith.mulf %390, %391 : vector<2x256xf32>
    %393 = arith.addf %358, %392 : vector<2x256xf32>
    %c70 = arith.constant 70 : index
    %394 = memref.load %arg7[%c70] : memref<98xf32, #tpu.memory_space<smem>>
    %395 = vector.extract_strided_slice %36 {offsets = [0, 48], sizes = [2, 256], strides = [1, 1]} : vector<2x384xf32> to vector<2x256xf32>
    %396 = vector.broadcast %394 : f32 to vector<2x256xf32>
    %397 = arith.mulf %395, %396 : vector<2x256xf32>
    %398 = arith.addf %363, %397 : vector<2x256xf32>
    %c71 = arith.constant 71 : index
    %399 = memref.load %arg7[%c71] : memref<98xf32, #tpu.memory_space<smem>>
    %400 = vector.extract_strided_slice %36 {offsets = [0, 49], sizes = [2, 256], strides = [1, 1]} : vector<2x384xf32> to vector<2x256xf32>
    %401 = vector.broadcast %399 : f32 to vector<2x256xf32>
    %402 = arith.mulf %400, %401 : vector<2x256xf32>
    %403 = arith.addf %368, %402 : vector<2x256xf32>
    %c72 = arith.constant 72 : index
    %404 = memref.load %arg7[%c72] : memref<98xf32, #tpu.memory_space<smem>>
    %405 = vector.extract_strided_slice %36 {offsets = [0, 50], sizes = [2, 256], strides = [1, 1]} : vector<2x384xf32> to vector<2x256xf32>
    %406 = vector.broadcast %404 : f32 to vector<2x256xf32>
    %407 = arith.mulf %405, %406 : vector<2x256xf32>
    %408 = arith.addf %373, %407 : vector<2x256xf32>
    %c73 = arith.constant 73 : index
    %409 = memref.load %arg7[%c73] : memref<98xf32, #tpu.memory_space<smem>>
    %410 = vector.extract_strided_slice %36 {offsets = [0, 51], sizes = [2, 256], strides = [1, 1]} : vector<2x384xf32> to vector<2x256xf32>
    %411 = vector.broadcast %409 : f32 to vector<2x256xf32>
    %412 = arith.mulf %410, %411 : vector<2x256xf32>
    %413 = arith.addf %378, %412 : vector<2x256xf32>
    %c74 = arith.constant 74 : index
    %414 = memref.load %arg7[%c74] : memref<98xf32, #tpu.memory_space<smem>>
    %415 = vector.extract_strided_slice %36 {offsets = [0, 52], sizes = [2, 256], strides = [1, 1]} : vector<2x384xf32> to vector<2x256xf32>
    %416 = vector.broadcast %414 : f32 to vector<2x256xf32>
    %417 = arith.mulf %415, %416 : vector<2x256xf32>
    %418 = arith.addf %383, %417 : vector<2x256xf32>
    %c75 = arith.constant 75 : index
    %419 = memref.load %arg7[%c75] : memref<98xf32, #tpu.memory_space<smem>>
    %420 = vector.extract_strided_slice %36 {offsets = [0, 53], sizes = [2, 256], strides = [1, 1]} : vector<2x384xf32> to vector<2x256xf32>
    %421 = vector.broadcast %419 : f32 to vector<2x256xf32>
    %422 = arith.mulf %420, %421 : vector<2x256xf32>
    %423 = arith.addf %388, %422 : vector<2x256xf32>
    %c76 = arith.constant 76 : index
    %424 = memref.load %arg7[%c76] : memref<98xf32, #tpu.memory_space<smem>>
    %425 = vector.extract_strided_slice %36 {offsets = [0, 54], sizes = [2, 256], strides = [1, 1]} : vector<2x384xf32> to vector<2x256xf32>
    %426 = vector.broadcast %424 : f32 to vector<2x256xf32>
    %427 = arith.mulf %425, %426 : vector<2x256xf32>
    %428 = arith.addf %393, %427 : vector<2x256xf32>
    %c77 = arith.constant 77 : index
    %429 = memref.load %arg7[%c77] : memref<98xf32, #tpu.memory_space<smem>>
    %430 = vector.extract_strided_slice %36 {offsets = [0, 64], sizes = [2, 256], strides = [1, 1]} : vector<2x384xf32> to vector<2x256xf32>
    %431 = vector.broadcast %429 : f32 to vector<2x256xf32>
    %432 = arith.mulf %430, %431 : vector<2x256xf32>
    %433 = arith.addf %398, %432 : vector<2x256xf32>
    %c78 = arith.constant 78 : index
    %434 = memref.load %arg7[%c78] : memref<98xf32, #tpu.memory_space<smem>>
    %435 = vector.extract_strided_slice %36 {offsets = [0, 65], sizes = [2, 256], strides = [1, 1]} : vector<2x384xf32> to vector<2x256xf32>
    %436 = vector.broadcast %434 : f32 to vector<2x256xf32>
    %437 = arith.mulf %435, %436 : vector<2x256xf32>
    %438 = arith.addf %403, %437 : vector<2x256xf32>
    %c79 = arith.constant 79 : index
    %439 = memref.load %arg7[%c79] : memref<98xf32, #tpu.memory_space<smem>>
    %440 = vector.extract_strided_slice %36 {offsets = [0, 66], sizes = [2, 256], strides = [1, 1]} : vector<2x384xf32> to vector<2x256xf32>
    %441 = vector.broadcast %439 : f32 to vector<2x256xf32>
    %442 = arith.mulf %440, %441 : vector<2x256xf32>
    %443 = arith.addf %408, %442 : vector<2x256xf32>
    %c80 = arith.constant 80 : index
    %444 = memref.load %arg7[%c80] : memref<98xf32, #tpu.memory_space<smem>>
    %445 = vector.extract_strided_slice %36 {offsets = [0, 67], sizes = [2, 256], strides = [1, 1]} : vector<2x384xf32> to vector<2x256xf32>
    %446 = vector.broadcast %444 : f32 to vector<2x256xf32>
    %447 = arith.mulf %445, %446 : vector<2x256xf32>
    %448 = arith.addf %413, %447 : vector<2x256xf32>
    %c81 = arith.constant 81 : index
    %449 = memref.load %arg7[%c81] : memref<98xf32, #tpu.memory_space<smem>>
    %450 = vector.extract_strided_slice %36 {offsets = [0, 68], sizes = [2, 256], strides = [1, 1]} : vector<2x384xf32> to vector<2x256xf32>
    %451 = vector.broadcast %449 : f32 to vector<2x256xf32>
    %452 = arith.mulf %450, %451 : vector<2x256xf32>
    %453 = arith.addf %418, %452 : vector<2x256xf32>
    %c82 = arith.constant 82 : index
    %454 = memref.load %arg7[%c82] : memref<98xf32, #tpu.memory_space<smem>>
    %455 = vector.extract_strided_slice %36 {offsets = [0, 69], sizes = [2, 256], strides = [1, 1]} : vector<2x384xf32> to vector<2x256xf32>
    %456 = vector.broadcast %454 : f32 to vector<2x256xf32>
    %457 = arith.mulf %455, %456 : vector<2x256xf32>
    %458 = arith.addf %423, %457 : vector<2x256xf32>
    %c83 = arith.constant 83 : index
    %459 = memref.load %arg7[%c83] : memref<98xf32, #tpu.memory_space<smem>>
    %460 = vector.extract_strided_slice %36 {offsets = [0, 70], sizes = [2, 256], strides = [1, 1]} : vector<2x384xf32> to vector<2x256xf32>
    %461 = vector.broadcast %459 : f32 to vector<2x256xf32>
    %462 = arith.mulf %460, %461 : vector<2x256xf32>
    %463 = arith.addf %428, %462 : vector<2x256xf32>
    %c84 = arith.constant 84 : index
    %464 = memref.load %arg7[%c84] : memref<98xf32, #tpu.memory_space<smem>>
    %465 = vector.extract_strided_slice %36 {offsets = [0, 80], sizes = [2, 256], strides = [1, 1]} : vector<2x384xf32> to vector<2x256xf32>
    %466 = vector.broadcast %464 : f32 to vector<2x256xf32>
    %467 = arith.mulf %465, %466 : vector<2x256xf32>
    %468 = arith.addf %433, %467 : vector<2x256xf32>
    %c85 = arith.constant 85 : index
    %469 = memref.load %arg7[%c85] : memref<98xf32, #tpu.memory_space<smem>>
    %470 = vector.extract_strided_slice %36 {offsets = [0, 81], sizes = [2, 256], strides = [1, 1]} : vector<2x384xf32> to vector<2x256xf32>
    %471 = vector.broadcast %469 : f32 to vector<2x256xf32>
    %472 = arith.mulf %470, %471 : vector<2x256xf32>
    %473 = arith.addf %438, %472 : vector<2x256xf32>
    %c86 = arith.constant 86 : index
    %474 = memref.load %arg7[%c86] : memref<98xf32, #tpu.memory_space<smem>>
    %475 = vector.extract_strided_slice %36 {offsets = [0, 82], sizes = [2, 256], strides = [1, 1]} : vector<2x384xf32> to vector<2x256xf32>
    %476 = vector.broadcast %474 : f32 to vector<2x256xf32>
    %477 = arith.mulf %475, %476 : vector<2x256xf32>
    %478 = arith.addf %443, %477 : vector<2x256xf32>
    %c87 = arith.constant 87 : index
    %479 = memref.load %arg7[%c87] : memref<98xf32, #tpu.memory_space<smem>>
    %480 = vector.extract_strided_slice %36 {offsets = [0, 83], sizes = [2, 256], strides = [1, 1]} : vector<2x384xf32> to vector<2x256xf32>
    %481 = vector.broadcast %479 : f32 to vector<2x256xf32>
    %482 = arith.mulf %480, %481 : vector<2x256xf32>
    %483 = arith.addf %448, %482 : vector<2x256xf32>
    %c88 = arith.constant 88 : index
    %484 = memref.load %arg7[%c88] : memref<98xf32, #tpu.memory_space<smem>>
    %485 = vector.extract_strided_slice %36 {offsets = [0, 84], sizes = [2, 256], strides = [1, 1]} : vector<2x384xf32> to vector<2x256xf32>
    %486 = vector.broadcast %484 : f32 to vector<2x256xf32>
    %487 = arith.mulf %485, %486 : vector<2x256xf32>
    %488 = arith.addf %453, %487 : vector<2x256xf32>
    %c89 = arith.constant 89 : index
    %489 = memref.load %arg7[%c89] : memref<98xf32, #tpu.memory_space<smem>>
    %490 = vector.extract_strided_slice %36 {offsets = [0, 85], sizes = [2, 256], strides = [1, 1]} : vector<2x384xf32> to vector<2x256xf32>
    %491 = vector.broadcast %489 : f32 to vector<2x256xf32>
    %492 = arith.mulf %490, %491 : vector<2x256xf32>
    %493 = arith.addf %458, %492 : vector<2x256xf32>
    %c90 = arith.constant 90 : index
    %494 = memref.load %arg7[%c90] : memref<98xf32, #tpu.memory_space<smem>>
    %495 = vector.extract_strided_slice %36 {offsets = [0, 86], sizes = [2, 256], strides = [1, 1]} : vector<2x384xf32> to vector<2x256xf32>
    %496 = vector.broadcast %494 : f32 to vector<2x256xf32>
    %497 = arith.mulf %495, %496 : vector<2x256xf32>
    %498 = arith.addf %463, %497 : vector<2x256xf32>
    %c91 = arith.constant 91 : index
    %499 = memref.load %arg7[%c91] : memref<98xf32, #tpu.memory_space<smem>>
    %500 = vector.extract_strided_slice %36 {offsets = [0, 96], sizes = [2, 256], strides = [1, 1]} : vector<2x384xf32> to vector<2x256xf32>
    %501 = vector.broadcast %499 : f32 to vector<2x256xf32>
    %502 = arith.mulf %500, %501 : vector<2x256xf32>
    %503 = arith.addf %468, %502 : vector<2x256xf32>
    %c92 = arith.constant 92 : index
    %504 = memref.load %arg7[%c92] : memref<98xf32, #tpu.memory_space<smem>>
    %505 = vector.extract_strided_slice %36 {offsets = [0, 97], sizes = [2, 256], strides = [1, 1]} : vector<2x384xf32> to vector<2x256xf32>
    %506 = vector.broadcast %504 : f32 to vector<2x256xf32>
    %507 = arith.mulf %505, %506 : vector<2x256xf32>
    %508 = arith.addf %473, %507 : vector<2x256xf32>
    %c93 = arith.constant 93 : index
    %509 = memref.load %arg7[%c93] : memref<98xf32, #tpu.memory_space<smem>>
    %510 = vector.extract_strided_slice %36 {offsets = [0, 98], sizes = [2, 256], strides = [1, 1]} : vector<2x384xf32> to vector<2x256xf32>
    %511 = vector.broadcast %509 : f32 to vector<2x256xf32>
    %512 = arith.mulf %510, %511 : vector<2x256xf32>
    %513 = arith.addf %478, %512 : vector<2x256xf32>
    %c94 = arith.constant 94 : index
    %514 = memref.load %arg7[%c94] : memref<98xf32, #tpu.memory_space<smem>>
    %515 = vector.extract_strided_slice %36 {offsets = [0, 99], sizes = [2, 256], strides = [1, 1]} : vector<2x384xf32> to vector<2x256xf32>
    %516 = vector.broadcast %514 : f32 to vector<2x256xf32>
    %517 = arith.mulf %515, %516 : vector<2x256xf32>
    %518 = arith.addf %483, %517 : vector<2x256xf32>
    %c95 = arith.constant 95 : index
    %519 = memref.load %arg7[%c95] : memref<98xf32, #tpu.memory_space<smem>>
    %520 = vector.extract_strided_slice %36 {offsets = [0, 100], sizes = [2, 256], strides = [1, 1]} : vector<2x384xf32> to vector<2x256xf32>
    %521 = vector.broadcast %519 : f32 to vector<2x256xf32>
    %522 = arith.mulf %520, %521 : vector<2x256xf32>
    %523 = arith.addf %488, %522 : vector<2x256xf32>
    %c96 = arith.constant 96 : index
    %524 = memref.load %arg7[%c96] : memref<98xf32, #tpu.memory_space<smem>>
    %525 = vector.extract_strided_slice %36 {offsets = [0, 101], sizes = [2, 256], strides = [1, 1]} : vector<2x384xf32> to vector<2x256xf32>
    %526 = vector.broadcast %524 : f32 to vector<2x256xf32>
    %527 = arith.mulf %525, %526 : vector<2x256xf32>
    %528 = arith.addf %493, %527 : vector<2x256xf32>
    %c97 = arith.constant 97 : index
    %529 = memref.load %arg7[%c97] : memref<98xf32, #tpu.memory_space<smem>>
    %530 = vector.extract_strided_slice %36 {offsets = [0, 102], sizes = [2, 256], strides = [1, 1]} : vector<2x384xf32> to vector<2x256xf32>
    %531 = vector.broadcast %529 : f32 to vector<2x256xf32>
    %532 = arith.mulf %530, %531 : vector<2x256xf32>
    %533 = arith.addf %498, %532 : vector<2x256xf32>
    %c0_29 = arith.constant 0 : index
    %c0_30 = arith.constant 0 : index
    %534 = vector.load %arg6[%c0_29, %c0_30] : memref<7x256xf32, #tpu.memory_space<vmem>>, vector<7x256xf32>
    %535 = vector.extract_strided_slice %534 {offsets = [0, 0], sizes = [1, 256], strides = [1, 1]} : vector<7x256xf32> to vector<1x256xf32>
    %536 = vector.broadcast %535 : vector<1x256xf32> to vector<2x256xf32>
    %537 = arith.mulf %503, %536 : vector<2x256xf32>
    %538 = arith.addf %518, %537 : vector<2x256xf32>
    %539 = vector.extract_strided_slice %534 {offsets = [1, 0], sizes = [1, 256], strides = [1, 1]} : vector<7x256xf32> to vector<1x256xf32>
    %540 = vector.broadcast %539 : vector<1x256xf32> to vector<2x256xf32>
    %541 = arith.mulf %508, %540 : vector<2x256xf32>
    %542 = arith.addf %538, %541 : vector<2x256xf32>
    %543 = vector.extract_strided_slice %534 {offsets = [2, 0], sizes = [1, 256], strides = [1, 1]} : vector<7x256xf32> to vector<1x256xf32>
    %544 = vector.broadcast %543 : vector<1x256xf32> to vector<2x256xf32>
    %545 = arith.mulf %513, %544 : vector<2x256xf32>
    %546 = arith.addf %542, %545 : vector<2x256xf32>
    %547 = vector.extract_strided_slice %534 {offsets = [4, 0], sizes = [1, 256], strides = [1, 1]} : vector<7x256xf32> to vector<1x256xf32>
    %548 = vector.broadcast %547 : vector<1x256xf32> to vector<2x256xf32>
    %549 = arith.mulf %523, %548 : vector<2x256xf32>
    %550 = arith.addf %546, %549 : vector<2x256xf32>
    %551 = vector.extract_strided_slice %534 {offsets = [5, 0], sizes = [1, 256], strides = [1, 1]} : vector<7x256xf32> to vector<1x256xf32>
    %552 = vector.broadcast %551 : vector<1x256xf32> to vector<2x256xf32>
    %553 = arith.mulf %528, %552 : vector<2x256xf32>
    %554 = arith.addf %550, %553 : vector<2x256xf32>
    %555 = vector.extract_strided_slice %534 {offsets = [6, 0], sizes = [1, 256], strides = [1, 1]} : vector<7x256xf32> to vector<1x256xf32>
    %556 = vector.broadcast %555 : vector<1x256xf32> to vector<2x256xf32>
    %557 = arith.mulf %533, %556 : vector<2x256xf32>
    %558 = arith.addf %554, %557 : vector<2x256xf32>
    %c0_31 = arith.constant 0 : index
    %559 = memref.load %arg8[%c0_31] : memref<2xf32, #tpu.memory_space<smem>>
    %560 = vector.broadcast %559 : f32 to vector<2x256xf32>
    %561 = arith.mulf %558, %560 : vector<2x256xf32>
    %c1_32 = arith.constant 1 : index
    %562 = memref.load %arg8[%c1_32] : memref<2xf32, #tpu.memory_space<smem>>
    %563 = vector.broadcast %562 : f32 to vector<2x256xf32>
    %564 = arith.addf %561, %563 : vector<2x256xf32>
    %565 = arith.negf %564 : vector<2x256xf32>
    %566 = math.exp %565 : vector<2x256xf32>
    %cst_33 = arith.constant 1.000000e+00 : f32
    %567 = vector.broadcast %cst_33 : f32 to vector<2x256xf32>
    %568 = arith.addf %567, %566 : vector<2x256xf32>
    %569 = arith.divf %567, %568 : vector<2x256xf32>
    %570 = vector.shape_cast %569 : vector<2x256xf32> to vector<2x1x256xf32>
    %571 = vector.broadcast %570 : vector<2x1x256xf32> to vector<2x16x256xf32>
    %572 = arith.mulf %28, %571 : vector<2x16x256xf32>
    %c0_34 = arith.constant 0 : index
    %c0_35 = arith.constant 0 : index
    %c0_36 = arith.constant 0 : index
    %573 = vector.load %arg9[%c0_34, %c0_35, %c0_36] : memref<2x16x256xf32, #tpu.memory_space<vmem>>, vector<2x16x256xf32>
    tpu.vector_store %arg9[%c0_34, %c0_35, %c0_36], %572 {strides = array<i32>} : memref<2x16x256xf32, #tpu.memory_space<vmem>>, vector<2x16x256xf32>,
    return
  }
  func.func @transform_0(%arg0: i32) -> (i32, i32, i32) {
    %c0_i32 = arith.constant 0 : i32
    %c0_i32_0 = arith.constant 0 : i32
    %c0_i32_1 = arith.constant 0 : i32
    return %arg0, %c0_i32, %c0_i32_0 : i32, i32, i32
  }
  func.func @transform_1(%arg0: i32) -> (i32, i32) {
    %c0_i32 = arith.constant 0 : i32
    %c0_i32_0 = arith.constant 0 : i32
    %c0_i32_1 = arith.constant 0 : i32
    return %c0_i32, %c0_i32_0 : i32, i32
  }
  func.func @transform_2(%arg0: i32) -> (i32, i32) {
    %c0_i32 = arith.constant 0 : i32
    %c0_i32_0 = arith.constant 0 : i32
    %c0_i32_1 = arith.constant 0 : i32
    return %c0_i32, %c0_i32_0 : i32, i32
  }
  func.func @transform_3(%arg0: i32) -> (i32, i32) {
    %c0_i32 = arith.constant 0 : i32
    %c0_i32_0 = arith.constant 0 : i32
    %c0_i32_1 = arith.constant 0 : i32
    return %c0_i32, %c0_i32_0 : i32, i32
  }
  func.func @transform_4(%arg0: i32) -> (i32, i32) {
    %c0_i32 = arith.constant 0 : i32
    %c0_i32_0 = arith.constant 0 : i32
    %c0_i32_1 = arith.constant 0 : i32
    return %c0_i32, %c0_i32_0 : i32, i32
  }
  func.func @transform_5(%arg0: i32) -> (i32, i32) {
    %c0_i32 = arith.constant 0 : i32
    %c0_i32_0 = arith.constant 0 : i32
    %c0_i32_1 = arith.constant 0 : i32
    return %c0_i32, %c0_i32_0 : i32, i32
  }
  func.func @transform_6(%arg0: i32) -> i32 {
    %c0_i32 = arith.constant 0 : i32
    %c0_i32_0 = arith.constant 0 : i32
    return %c0_i32 : i32
  }
  func.func @transform_7(%arg0: i32) -> i32 {
    %c0_i32 = arith.constant 0 : i32
    %c0_i32_0 = arith.constant 0 : i32
    return %c0_i32 : i32
  }
  func.func @transform_8(%arg0: i32) -> (i32, i32, i32) {
    %c0_i32 = arith.constant 0 : i32
    %c0_i32_0 = arith.constant 0 : i32
    %c0_i32_1 = arith.constant 0 : i32
    return %arg0, %c0_i32, %c0_i32_0 : i32, i32, i32
  }
}

</mosaic_0001>

<bundles_post_ra>
// kernel: tpu_custom_call.1
= control target key start
LH: loop header
LB: loop body
LE: loop exit
PB: predicated region body
PF: predicated region fallthrough
CT: control target
= control target key end

     0   :  { %s5959_s0 = inlined_call_operand.hbm [shape: f32[4,16,256], index: 0, kind: input, shape index: {}]   ;;  %s5960_s1 = inlined_call_operand.vmem [shape: f32[16,2], index: 1, kind: input, shape index: {}]   ;;  %s5961_s2 = inlined_call_operand.vmem [shape: f32[1,2], index: 2, kind: input, shape index: {}]   ;;  %s5962_s3 = inlined_call_operand.vmem [shape: f32[2,16], index: 3, kind: input, shape index: {}]   ;;  %s5963_s4 = inlined_call_operand.vmem [shape: f32[1,16], index: 4, kind: input, shape index: {}]   ;;  %s5964_s5 = inlined_call_operand.vmem [shape: f32[7,256], index: 5, kind: input, shape index: {}]   ;;  %s5965_s6 = inlined_call_operand.vmem [shape: f32[98], index: 6, kind: input, shape index: {}]   ;;  %s5966_s7 = inlined_call_operand.vmem [shape: f32[2], index: 7, kind: input, shape index: {}]   ;;  %s5967_s8 = inlined_call_operand.hbm [shape: f32[4,16,256], index: 8, kind: output, shape index: {}]  }
   0x1   :  { %6079 = sst [smem:[#allocation149_spill]] %s5959_s0 }
   0x2   :  { %6080 = sst [smem:[#allocation150_spill]] %s5960_s1 }
   0x3   :  { %6081 = sst [smem:[#allocation151_spill]] %s5961_s2 }
   0x4   :  { %6082 = sst [smem:[#allocation152_spill]] %s5962_s3 }
   0x5   :  { %6083 = sst [smem:[#allocation153_spill]] %s5963_s4 }
   0x6   :  { %6084 = sst [smem:[#allocation154_spill]] %s5965_s6 }
   0x7   :  { %6085 = sst [smem:[#allocation155_spill]] %s5966_s7 }
   0x8   :  { %13 = vsyncpa [#allocation3], 0 }
   0x9   :  { %15 = vsyncpa [#allocation3 + $0x1], 0 }
   0xa   :  { %16 = vsyncpa [#allocation5], 0 }
   0xb   :  { %17 = vsyncpa [#allocation8], 0 }
   0xc   :  { %18 = vsyncpa [#allocation4], 0 }
   0xd   :  { %20 = vsyncpa [#allocation4 + $0x1], 0  ;;  %s3610_s27 = smov 0   ;;  %s3612_s28 = smov 0  }
   0xe   :  { %s3614_s29 = smov 0   ;;  %s3616_s30 = smov 0  }
   0xf LB: > { %6086 = sst [smem:[#allocation14_spill]] %s3527_s28  ;;  %s3631_s9 = sadd.s32 4294967295, %s3535_s30   ;;  %s3535_s30 = sphi %s3616_s30, %s6439_s30   ;;  %s3531_s29 = sphi %s3614_s29, %s6442_s29   ;;  %s3527_s28 = sphi %s3612_s28, %s6441_s28   ;;  %s3523_s27 = sphi %s3610_s27, %s6440_s27  }
  0x10   : > { %6087 = sst [smem:[#allocation15_spill]] %s3531_s29  ;;  %s3141_s10 = sadd.s32 4294967294, %s3535_s30  }
  0x11   : > { %s3635_s11 = sadd.s32 1, %s3535_s30   ;;  %s33_s12 = sadd.s32 1, %s3531_s29 }
  0x12   : > { %6088 = sst [smem:[#allocation16_spill]] %s3635_s11  ;;  %s30_s13 = ssub.s32 %s3535_s30, %s3635_s11 }
  0x13   : > { %p40_p0 = scmp.ne.s32.totalorder %s3531_s29, %s3527_s28  ;;  %p31_p1 = scmp.eq.s32.totalorder %s30_s13, 0 }
  0x14   : > { %p41_p2 = scmp.eq.s32.totalorder %s3535_s30, 0  ;;  %p46_p3 = scmp.ne.s32.totalorder %s3527_s28, %s3523_s27 }
  0x15   : > { %p5968_p4 = scmp.eq.s32.totalorder %s3631_s9, 0  ;;  %p217_p7 = scmp.eq.s32.totalorder %s3631_s9, 1 }
  0x16   : > { %s3647_s14 = scalar_select %p31_p1, %s3531_s29, %s33_s12  }
  0x17   : > { %p3649_p5 = por %p41_p2, %p40_p0  ;;  %p3655_p6 = por %p5968_p4, %p46_p3 }
  0x18   : > { %6089 = sst [smem:[#allocation17_spill]] %s3647_s14  ;;  %p223_p8 = scmp.eq.s32.totalorder %s3141_s10, 1 }
  0x19   : > { %s6091_s16 = scalar_select %p3655_p6, 1, 0 }
  0x1a   : > { %p3142_p9 = scmp.ge.s32.totalorder %s3535_s30, 1  ;;  %p230_p10 = scmp.lt.s32.totalorder %s3535_s30, 3 }
  0x1b   : > { %p3662_p11 = por %p217_p7, %p40_p0  ;;  %p3666_p12 = por %p223_p8, %p46_p3 }
  0x1c   : > { %p3670_p13 = pnand %p3142_p9, %p230_p10  ;;  %s6095_s6 = sld [smem:[#allocation154_spill]] }
  0x1d   : > { %s6092_s17 = scalar_select %p3662_p11, 1, 0 }
  0x1e   : > { %s6093_s18 = scalar_select %p3666_p12, 1, 0 }
  0x1f   : > { %s6094_s19 = scalar_select %p3670_p13, 1, 0 }
  0x20   : > { %p3304_p1 = pneg %p3670_p13  ;;  %p3321_p2 = scmp.lt.s32.totalorder %s3535_s30, 2 }
  0x21   : > { %s6097_s7 = sld [smem:[#allocation155_spill]] }
  0x22   : > { %s258_s22 = sshll.u32 %s6095_s6, 4  ;;  %p3683_p7 = pnand %p3304_p1, %p5968_p4  ;;  %s259_s22 = int_to_ptr.vmem [resolvable:$true] %s258_s22 }
  0x23   : > { %p3692_p3 = pnand %p3321_p2, %p3649_p5  ;;  %s3401_s12 = scalar_lea.vmem %s259_s22, 16 }
  0x24   : > { %p3402_p8 = scmp.ne.s32.totalorder %s259_s22, %s3401_s12  ;;  %p3403_p9 = pneg %p3683_p7 }
  0x25   : > { %s6098_s10 = scalar_select %p3692_p3, 1, 0 }
  0x26   : > { %p3404_p10 = pnand %p3403_p9, %p3402_p8  ;;  %p3409_p0 = scmp.lt.s32.totalorder %s259_s22, %s259_s22 }
  0x27   : > { %s269_s26 = sshll.u32 %s6097_s7, 4  ;;  %p3410_p4 = scmp.lt.s32.totalorder %s3401_s12, %s3401_s12  ;;  %s270_s26 = int_to_ptr.vmem [resolvable:$true] %s269_s26 }
  0x28   : > { %p3405_p1 = pneg %p3404_p10 }
  0x29   : > { %p3411_p12 = por %p3410_p4, %p3409_p0 }
  0x2b   : > { %p3412_p11 = pnand %p3411_p12, %p3405_p1 }
  0x2d   : > { %3415 = shalt.err (!%p3412_p11)
}
  0x2e   : > { %s3537_s13 = smov [#allocation6]   ;;  %s280_s15 = sand.u32 1, %s3531_s29  }
  0x2f   : > { %3307 = dma.vmem_to_smem (!%p3683_p7), %s259_s22, 16, %s3537_s13, [#allocation5]  }
  0x30   : > { %s3416_s20 = scalar_lea.vmem %s270_s26, 16  ;;  %p3424_p8 = scmp.lt.s32.totalorder %s270_s26, %s270_s26 }
  0x31   : > { %p3417_p5 = scmp.ne.s32.totalorder %s270_s26, %s3416_s20  ;;  %p3425_p10 = scmp.lt.s32.totalorder %s3416_s20, %s3416_s20 }
  0x33   : > { %p3419_p2 = pnand %p3417_p5, %p3403_p9  ;;  %p3426_p13 = por %p3425_p10, %p3424_p8 }
  0x35   : > { %p3420_p6 = pneg %p3419_p2 }
  0x37   : > { %p3427_p3 = pnand %p3426_p13, %p3420_p6 }
  0x39   : > { %3430 = shalt.err (!%p3427_p3)
}
  0x3a   : > { %s3538_s21 = smov [#allocation7]   ;;  %s3146_s22 = sshll.u32 %s280_s15, 6 }
  0x3b   : > { %3310 = dma.vmem_to_smem (!%p3683_p7), %s270_s26, 16, %s3538_s21, [#allocation8]  }
  0x3c   : > { %s3269_s24 = sshll.u32 %s3535_s30, 10  ;;  %s6099_s0 = sld [smem:[#allocation149_spill]] }
  0x3d   : > { %s284_s20 = scalar_lea.vmem [#allocation2], %s3146_s22  ;;  %s3717_s23 = scalar_lea.sflag [#allocation3], %s280_s15 }
  0x3e   : > { %s292_s6 = sshll.u32 %s284_s20, 4  ;;  %p6100_p6 = scmp.ne.s32.totalorder %s6098_s10, 0  ;;  %s3715_s6 = int_to_ptr.vmem [resolvable:$true] %s292_s6 }
  0x40   : > { %p3433_p11 = pneg %p6100_p6 }
  0x42   : > { %s3713_s13 = scalar_lea.hbm %s6099_s0, %s3269_s24  ;;  %s3436_s24 = scalar_lea.hbm %s6099_s0, 2048 }
  0x43   : > { %s3431_s7 = scalar_lea.hbm %s3713_s13, 1024  ;;  %p3437_p0 = scmp.lt.u32.totalorder %s3713_s13, %s6099_s0 }
  0x44   : > { %p3432_p4 = scmp.ne.s32.totalorder %s3713_s13, %s3431_s7  ;;  %p3438_p7 = scmp.lt.u32.totalorder %s3436_s24, %s3431_s7 }
  0x45   : > { %p3440_p9 = scmp.lt.u32.totalorder %s3431_s7, %s3713_s13 }
  0x46   : > { %p3434_p12 = pnand %p3433_p11, %p3432_p4  ;;  %p3439_p3 = por %p3438_p7, %p3437_p0 }
  0x48   : > { %p3435_p13 = pneg %p3434_p12  ;;  %p3441_p1 = por %p3440_p9, %p3439_p3 }
  0x4a   : > { %p3442_p5 = pnand %p3441_p1, %p3435_p13 }
  0x4c   : > { %3445 = shalt.err (!%p3442_p5)
}
  0x4d   : > { %s3446_s15 = scalar_lea.vmem %s3715_s6, 1024  ;;  %s3539_s22 = smov [#allocation2]  }
  0x4e   : > { %p3447_p2 = scmp.ne.s32.totalorder %s3715_s6, %s3446_s15  ;;  %s3451_s20 = sshll.u32 %s3539_s22, 4  ;;  %s3452_s20 = int_to_ptr.vmem [resolvable:$false] %s3451_s20 }
  0x4f   : > { %s3453_s26 = scalar_lea.vmem %s3452_s20, 2048  ;;  %p3454_p4 = scmp.lt.s32.totalorder %s3715_s6, %s3452_s20 }
  0x50   : > { %p3449_p8 = pnand %p3447_p2, %p3433_p11  ;;  %p3455_p12 = scmp.lt.s32.totalorder %s3453_s26, %s3446_s15 }
  0x52   : > { %p3450_p10 = pneg %p3449_p8  ;;  %p3456_p0 = por %p3455_p12, %p3454_p4 }
  0x54   : > { %p3457_p7 = pnand %p3456_p0, %p3450_p10 }
  0x56   : > { %3460 = shalt.err (!%p3457_p7)
}
  0x57   : > { %s3540_s7 = smov 256   ;;  %s3541_s21 = smov 16  }
  0x58   : > { %3314 = dma.hbm_to_vmem [thread:$0]  (!%p6100_p6), %s3713_s13, 1024, %s3715_s6, %s3717_s23, %s3540_s7, %s3540_s7, %s3541_s21  }
  0x59   : > { %p6101_p11 = scmp.ne.s32.totalorder %s6094_s19, 0 }
  0x5b   : > { %304 = sbr.rel (%p6101_p11) target bundleno = 1913 (0x779), region = 52 }
  0x62   : > { %s3748_s24 = sand.u32 1, %s3527_s28   ;;  %p6102_p13 = scmp.ne.s32.totalorder %s6091_s16, 0 }
  0x63   : > { %s6016_s25 = sshll.u32 %s3748_s24, 6  ;;  %s307_s12 = scalar_lea.sflag [#allocation3], %s3748_s24 }
  0x64   : > { %s310_s15 = scalar_lea.vmem [#allocation2], %s6016_s25 }
  0x65   : > { %3506 = dma.done.wait (%p6102_p13), %s307_s12, 1024  }
  0x66   : > { %3508 = vsyncadd (%p6102_p13), %s307_s12, 4294966272  ;;  %p6103_p6 = scmp.eq.s32.totalorder %s3631_s9, 0 }
  0x68   : > { %3510 = dma.done.wait (%p6103_p6), [#allocation5], 16   ;;  %p6104_p3 = pmov %p6103_p6 }
  0x6a   : > { %3512 = vsyncadd (%p6104_p3), [#allocation5], 4294967280  ;;  %p6105_p9 = pmov %p6104_p3 }
  0x6b   : > { %p6106_p1 = pmov %p6104_p3 }
  0x6c   : > { %3514 = dma.done.wait (%p6105_p9), [#allocation8], 16  }
  0x6d   : > { %3516 = vsyncadd (%p6106_p1), [#allocation8], 4294967280 }
  0x6e   : > { %323 = sfence }
  0x6f   : > { %v3766_v0 = vld [vmem:[%s310_s15 + $0x20] sm:$0xff]  ;;  %v3768_v1 = vld [vmem:[%s310_s15 + $0x28] sm:$0xff]  ;;  %v3776_v5 = vld [vmem:[%s310_s15 + $0x30] sm:$0xff]  ;;  %s6107_s1 = sld [smem:[#allocation150_spill]]  ;;  %v3542_v19 = vmov 0.0|0.0   ;;  %vm3543_vm0 = vmmov 0   ;;  %v394_v21 = vlaneseq }
  0x70   : > { %v3770_v2 = vld [vmem:[%s310_s15] sm:$0xff]  ;;  %v380_v3 = vadd.f32 %v3768_v1, %v3766_v0  ;;  %v3774_v4 = vld [vmem:[%s310_s15 + $0x8] sm:$0xff]  ;;  %v3778_v6 = vld [vmem:[%s310_s15 + $0x38] sm:$0xff]  ;;  %v368_v15 = vmax.f32 %v3766_v0, %v3768_v1  ;;  %3289 = vmatprep.subr.bf16.mxu0 %v3542_v19  ;;  %v3544_v20 = vmov 0.0   ;;  %vm405_vm1 = vcmask 130112   ;;  %s6109_s3 = sld [smem:[#allocation152_spill]] }
  0x71   : > { %v374_v7 = vadd.f32 %v3774_v4, %v3770_v2  ;;  %v3782_v8 = vld [vmem:[%s310_s15 + $0x10] sm:$0xff]  ;;  %v3784_v9 = vld [vmem:[%s310_s15 + $0x18] sm:$0xff]  ;;  %v383_v10 = vadd.f32 %v3778_v6, %v3776_v5  ;;  %v362_v13 = vmax.f32 %v3770_v2, %v3774_v4  ;;  %v371_v14 = vmax.f32 %v3776_v5, %v3778_v6  ;;  %3281 = vmatprep.mubr.msk.f32.mxu0 %vm3543_vm0, %v3544_v20  ;;  %s6110_s2 = sld [smem:[#allocation151_spill]]  ;;  %v2687_v61 = vld [vmem:[%s5964_s5 + $0x8] sm:$0x7f]  ;;  %s6017_s15 = smov 1  }
  0x72   : > { %381 = vadd.xlane.f32.xlu1 %v380_v3  ;;  %v377_v11 = vadd.f32 %v3784_v9, %v3782_v8  ;;  %v365_v12 = vmax.f32 %v3782_v8, %v3784_v9  ;;  %3284 = vmatprep.subr.mxu1 %v3544_v20  ;;  %v395_v22 = vand.u32 127, %v394_v21  ;;  %v3804_v26 = vshrl.u32 %v394_v21, 7  ;;  %v2686_v62 = vld [vmem:[%s5964_s5] sm:$0x7f]  ;;  %s6019_s6 = smov 2   ;;  %s3547_s16 = smov 4  }
  0x73   : > { %375 = vadd.xlane.f32.xlu0 %v374_v7  ;;  %3286 = vmatprep.mubr.msk.f32.mxu1 %vm3543_vm0, %v3544_v20  ;;  %vm441_vm2 = vcmask 1043459   ;;  %vm416_vm3 = vcmask 1041409   ;;  %vm444_vm4 = vcmask 1041408   ;;  %vm455_vm5 = vcmask 130048   ;;  %s3548_s19 = smov 5   ;;  %s6113_s4 = sld [smem:[#allocation153_spill]] }
  0x74   : > { %v400_v25 = vadd.s32 4294967288, %v395_v22  ;;  %6108 = vst [vmem:[#allocation18_spill] sm:$0xff] %v3804_v26  ;;  %v398_v32 = vsub.s32 %v395_v22, %v3804_v26  ;;  %vm538_vm6 = vcmask 15360   ;;  %v3817_v60 = vsub.s32 1, %v3804_v26  ;;  %s3549_s23 = smov 51   ;;  %s3167_s22 = sld [smem:[#allocation6 + $0x7]] }
  0x75   : > { %v446_v16 = vld [vmem:[%s6107_s1] sm:$0xff]  ;;  %v447_v17 = vld [vmem:[%s6107_s1 + $0x8] sm:$0xff]  ;;  %v3830_v7 = vsub.s32 2, %v3804_v26  ;;  %s3168_s20 = sld [smem:[#allocation6 + $0x8]]  ;;  %vm725_vm7 = vcmask 416768   ;;  %s3169_s26 = sld [smem:[#allocation6 + $0x9]] }
  0x76   : > { %384 = vadd.xlane.f32.xlu1 %v383_v10  ;;  %v3290_v18 = vpack.c.bf16 %v447_v17, %v446_v16  ;;  %v403_v29 = vsub.s32 %v400_v25, %v3804_v26  ;;  %v530_v54 = vld [vmem:[%s6109_s3] sm:$0x3]  ;;  %6111 = vst [vmem:[#allocation19_spill] sm:$0xff] %v3817_v60  ;;  %v2719_v63 = vrot.slane %v2687_v61, %v3817_v60  ;;  %s6033_s7 = smov 112   ;;  %s3170_s21 = sld [smem:[#allocation6 + $0xa]]  ;;  %vm816_vm8 = vcmask 916480  }
  0x77   : > { %378 = vadd.xlane.f32.xlu0 %v377_v11  ;;  %3285 = vmatpush3.msk.msra.mxu1 %vm444_vm4, %v530_v54  ;;  %v3155_v55 = vld [vmem:[%s6110_s2] ss:$0 sm:$0xff]  ;;  %v2715_v3 = vrot.slane %v2686_v62, %v3817_v60  ;;  %6112 = vst [vmem:[#allocation20_spill] sm:$0xff] %v3830_v7  ;;  %v2754_v10 = vrot.slane %v2686_v62, %v3830_v7  ;;  %s3161_s12 = sld [smem:[#allocation6 + $0x1]]  ;;  %s3173_s10 = sld [smem:[#allocation6 + $0xd]]  ;;  %vm969_vm9 = vcmask 785408  }
  0x78   : > { %3291 = vmatpush3.bf16.msra.mxu0 %v3290_v18  ;;  %v2758_v11 = vrot.slane %v2687_v61, %v3830_v7  ;;  %s3174_s13 = sld [smem:[#allocation6 + $0xe]]  ;;  %s4374_s25 = sld [smem:[#allocation6 + $0x3]]  ;;  %vm1122_vm10 = vcmask 654336   ;;  %vm1275_vm11 = vcmask 523264   ;;  %vm1428_vm12 = vcmask 392192  }
  0x79   : > { %v3157_v18 = vld [vmem:[%s6113_s4] ss:$0 sm:$0xff]  ;;  %s4402_s0 = sld [smem:[#allocation6 + $0x43]]  ;;  %s4404_s1 = sld [smem:[#allocation6 + $0x44]]  ;;  %vm1581_vm13 = vcmask 261120   ;;  %vm2726_vm14 = vcmask 7168  }
  0x7a   : > { %366 = vmax.xlane.f32.xlu1 %v365_v12  ;;  %v2791_v12 = vsub.s32 4, %v3804_v26  ;;  %s4406_s2 = sld [smem:[#allocation6 + $0x46]]  ;;  %s4418_s3 = sld [smem:[#allocation6 + $0x34]]  ;;  %vm2843_vm15 = vcmask 39936   ;;  %vm2803_vm0 = vcmask 31744  }
  0x7b   : > { %363 = vmax.xlane.f32.xlu0 %v362_v13  ;;  %v2831_v13 = vsub.s32 5, %v3804_v26  ;;  %s4420_s4 = sld [smem:[#allocation6 + $0x48]]  ;;  %s6197_s14 = smov 112  }
  0x7c   : > { %s4424_s29 = sld [smem:[#allocation6 + $0x4e]]  ;;  %s4428_s11 = sld [smem:[#allocation6 + $0x54]] }
  0x7d   : > { %v2836_v16 = vrot.slane %v2687_v61, %v2831_v13  ;;  %v2832_v17 = vrot.slane %v2686_v62, %v2831_v13  ;;  %s4426_s28 = sld [smem:[#allocation6 + $0x36]]  ;;  %p6436_p2 = scmp.ne.s32.totalorder %s6092_s17, 0 }
  0x7e   : > { %372 = vmax.xlane.f32.xlu1 %v371_v14  ;;  %v2792_v14 = vrot.slane %v2686_v62, %v2791_v12 }
  0x7f   : > { %369 = vmax.xlane.f32.xlu0 %v368_v15  ;;  %v2796_v15 = vrot.slane %v2687_v61, %v2791_v12 }
  0x8f   : > { %2724 = vrot.lane.b32.xlu1 %v2719_v63, %s6017_s15 }
  0x93   : > { %2761 = vrot.lane.b32.xlu1 %v2754_v10, %s6019_s6 }
  0x95   : > { %2722 = vrot.lane.b32.xlu0 %v2715_v3, %s6017_s15  ;;  %s4380_s15 = sld [smem:[#allocation6 + $0x5]] }
  0x97   : > { %2799 = vrot.lane.b32.xlu1 %v2792_v14, %s3547_s16 }
  0x99   : > { %2763 = vrot.lane.b32.xlu0 %v2758_v11, %s6019_s6  ;;  %s4382_s6 = sld [smem:[#allocation6 + $0x6]] }
  0x9b   : > { %2841 = vrot.lane.b32.xlu1 %v2836_v16, %s3548_s19 }
  0x9d   : > { %2801 = vrot.lane.b32.xlu0 %v2796_v15, %s3547_s16  ;;  %s3171_s16 = sld [smem:[#allocation6 + $0xb]] }
  0xa1   : > { %2839 = vrot.lane.b32.xlu0 %v2832_v17, %s3548_s19  ;;  %s3172_s19 = sld [smem:[#allocation6 + $0xc]] }
  0xff   : > { %v382_v23 = vpop.xlane.xlu1 %381 }
 0x100   : > { %v376_v24 = vpop.xlane.xlu0 %375  ;;  %v388_v33 = vmul.f32 0.00390625, %v382_v23 }
 0x101   : > { %v386_v34 = vmul.f32 0.00390625, %v376_v24 }
 0x102   : > { %v435_v39 = vrot.slane %v388_v33, %v398_v32 }
 0x103   : > { %v385_v27 = vpop.xlane.xlu1 %384  ;;  %v426_v40 = vrot.slane %v386_v34, %v398_v32 }
 0x104   : > { %v379_v28 = vpop.xlane.xlu0 %378  ;;  %v389_v30 = vmul.f32 0.00390625, %v385_v27 }
 0x105   : > { %v387_v31 = vmul.f32 0.00390625, %v379_v28  ;;  %v3842_v28 = vsub.s32 0, %v3804_v26 }
 0x106   : > { %v439_v37 = vrot.slane %v389_v30, %v403_v29 }
 0x107   : > { %v367_v35 = vpop.xlane.xlu1 %366  ;;  %v430_v38 = vrot.slane %v387_v31, %v403_v29  ;;  %6114 = vst [vmem:[#allocation21_spill] sm:$0xff] %v3842_v28 }
 0x108   : > { %v364_v36 = vpop.xlane.xlu0 %363  ;;  %v404_v41 = vrot.slane %v367_v35, %v403_v29  ;;  %v440_v48 = vsel %vm405_vm1, %v439_v37, %v435_v39 }
 0x109   : > { %v399_v42 = vrot.slane %v364_v36, %v398_v32  ;;  %v431_v47 = vsel %vm405_vm1, %v430_v38, %v426_v40 }
 0x10a   : > { %v442_v52 = vsel %vm441_vm2, %v440_v48, %v431_v47  ;;  %vm2704_vm2 = vcmask 23552  }
 0x10b   : > { %v373_v43 = vpop.xlane.xlu1 %372  ;;  %v406_v49 = vsel %vm405_vm1, %v404_v41, %v399_v42 }
 0x10c   : > { %v414_v44 = vrot.slane %v373_v43, %v403_v29  ;;  %v370_v45 = vpop.xlane.xlu0 %369 }
 0x10d   : > { %v410_v46 = vrot.slane %v370_v45, %v398_v32 }
 0x10f   : > { %v415_v50 = vsel %vm405_vm1, %v414_v44, %v410_v46  ;;  %v3846_v32 = vpop.permute.xlu1 %2724  ;;  %vm2883_vm1 = vcmask 48128  }
 0x110   : > { %v417_v51 = vsel %vm416_vm3, %v415_v50, %v406_v49  ;;  %6115 = vst [vmem:[#allocation22_spill] sm:$0xff] %v3846_v32  ;;  %v3848_v33 = vpop.permute.xlu0 %2722 }
 0x111   : > { %v445_v53 = vsel %vm444_vm4, %v417_v51, %v442_v52  ;;  %6116 = vst [vmem:[#allocation23_spill] sm:$0xff] %v3848_v33  ;;  %vm2860_vm4 = vcmask 1031168  }
 0x112   : > { %3282 = vmatmul.mubr.msk.f32.vlgmr.msra.gmra.mrb[0].mxu0 %vm455_vm5, %v445_v53  ;;  %vm2900_vm5 = vcmask 1022976  }
 0x113   : > { %v3850_v34 = vpop.permute.xlu1 %2761 }
 0x114   : > { %6117 = vst [vmem:[#allocation24_spill] sm:$0xff] %v3850_v34  ;;  %v3852_v35 = vpop.permute.xlu0 %2763 }
 0x115   : > { %6118 = vst [vmem:[#allocation25_spill] sm:$0xff] %v3852_v35 }
 0x117   : > { %v3854_v36 = vpop.permute.xlu1 %2799 }
 0x118   : > { %6119 = vst [vmem:[#allocation26_spill] sm:$0xff] %v3854_v36  ;;  %v3856_v37 = vpop.permute.xlu0 %2801 }
 0x119   : > { %6120 = vst [vmem:[#allocation27_spill] sm:$0xff] %v3856_v37 }
 0x11b   : > { %v3858_v38 = vpop.permute.xlu1 %2841 }
 0x11c   : > { %6121 = vst [vmem:[#allocation28_spill] sm:$0xff] %v3858_v38  ;;  %v3860_v39 = vpop.permute.xlu0 %2839 }
 0x11d   : > { %6122 = vst [vmem:[#allocation29_spill] sm:$0xff] %v3860_v39 }
 0x1e5   : > { %v525_v56 = vpop.f32.mrb[0].mxu0 }
 0x1e6   : > { %v526_v57 = vadd.f32 %v3155_v55, %v525_v56  ;;  %v3283_v58 = vpop.f32.mrb[1].mxu0 }
 0x1e8   : > { %v529_v59 = vmax.f32 %v526_v57, 0.0 }
 0x1ea   : > { %3287 = vmatmul.mubr.msk.f32.vlgmr.msra.gmra.mrb[0].mxu1 %vm538_vm6, %v529_v59 }
 0x2bd   : > { %v611_v19 = vpop.f32.mrb[0].mxu1 }
 0x2be   : > { %v612_v20 = vadd.f32 %v3157_v18, %v611_v19  ;;  %v3288_v21 = vpop.f32.mrb[1].mxu1 }
 0x2c0   : > { %v616_v22 = vrot.slane %v612_v20, 2 }
 0x2c2   : > { %v618_v23 = vadd.f32 %v616_v22, %v612_v20 }
 0x2c4   : > { %v3160_v24 = vmul.f32 -1.442695, %v618_v23 }
 0x2c6   : > { %3383 = vpow2.f32 %v3160_v24 }
 0x2d0   : > { %v3384_v25 = vpop.eup %3383 }
 0x2d1   : > { %v622_v27 = vadd.f32 1.0, %v3384_v25 }
 0x2d3   : > { %3385 = vrcp.f32 %v622_v27 }
 0x2dd   : > { %v3386_v29 = vpop.eup %3385 }
 0x2de   : > { %v628_v30 = vrot.slane %v3386_v29, %v3842_v28  ;;  %v639_v31 = vrot.slane %v3386_v29, %v3817_v60 }
 0x2e0   : > { %634 = vbcast.lane.b32.xlu1 %v628_v30, 264  ;;  %630 = vbcast.lane.b32.xlu0 %v628_v30, 256 }
 0x2e4   : > { %641 = vbcast.lane.b32.xlu1 %v639_v31, 256 }
 0x2e8   : > { %645 = vbcast.lane.b32.xlu1 %v639_v31, 264 }
 0x352   : > { %v635_v40 = vpop.permute.xlu1 %634  ;;  %v631_v41 = vpop.permute.xlu0 %630 }
 0x353   : > { %v3863_v42 = vmul.f32 %v635_v40, %v3782_v8  ;;  %v3866_v43 = vmul.f32 %v635_v40, %v3784_v9  ;;  %v3869_v44 = vmul.f32 %v631_v41, %v3770_v2  ;;  %v3872_v45 = vmul.f32 %v631_v41, %v3774_v4 }
 0x355   : > { %6123 = vst [vmem:[#allocation30_spill] sm:$0xff] %v3863_v42  ;;  %6124 = vst [vmem:[#allocation31_spill] sm:$0xff] %v3866_v43  ;;  %v655_v46 = vmax.f32 %v3869_v44, %v3863_v42  ;;  %v662_v47 = vmax.f32 %v3872_v45, %v3866_v43  ;;  %v683_v48 = vadd.f32 %v3863_v42, %v3869_v44 }
 0x356   : > { %6125 = vst [vmem:[#allocation32_spill] sm:$0xff] %v3869_v44  ;;  %6126 = vst [vmem:[#allocation33_spill] sm:$0xff] %v3872_v45  ;;  %v690_v8 = vadd.f32 %v3866_v43, %v3872_v45  ;;  %v642_v9 = vpop.permute.xlu1 %641 }
 0x357   : > { %v656_v49 = vrot.slane %v655_v46, 4  ;;  %v663_v50 = vrot.slane %v662_v47, 4  ;;  %v684_v2 = vrot.slane %v683_v48, 4  ;;  %v3883_v56 = vmul.f32 %v642_v9, %v3766_v0 }
 0x358   : > { %v691_v51 = vrot.slane %v690_v8, 4  ;;  %v3886_v57 = vmul.f32 %v642_v9, %v3768_v1 }
 0x359   : > { %v657_v52 = vmax.f32 %v655_v46, %v656_v49  ;;  %v664_v4 = vmax.f32 %v662_v47, %v663_v50  ;;  %v685_v53 = vadd.f32 %v684_v2, %v683_v48  ;;  %6127 = vst [vmem:[#allocation34_spill] sm:$0xff] %v3883_v56 }
 0x35a   : > { %v692_v54 = vadd.f32 %v691_v51, %v690_v8  ;;  %v646_v55 = vpop.permute.xlu1 %645  ;;  %6128 = vst [vmem:[#allocation35_spill] sm:$0xff] %v3886_v57 }
 0x35b   : > { %v3889_v58 = vmul.f32 %v646_v55, %v3776_v5  ;;  %v3892_v59 = vmul.f32 %v646_v55, %v3778_v6  ;;  %v665_v61 = vrot.slane %v664_v4, 2  ;;  %v658_v62 = vrot.slane %v657_v52, 2 }
 0x35c   : > { %v693_v63 = vrot.slane %v692_v54, 2  ;;  %v686_v3 = vrot.slane %v685_v53, 2 }
 0x35d   : > { %6129 = vst [vmem:[#allocation36_spill] sm:$0xff] %v3889_v58  ;;  %6130 = vst [vmem:[#allocation37_spill] sm:$0xff] %v3892_v59  ;;  %v669_v10 = vmax.f32 %v3883_v56, %v3889_v58  ;;  %v676_v0 = vmax.f32 %v3886_v57, %v3892_v59  ;;  %v697_v1 = vadd.f32 %v3889_v58, %v3883_v56 }
 0x35e   : > { %v704_v5 = vadd.f32 %v3892_v59, %v3886_v57  ;;  %v666_v14 = vmax.f32 %v664_v4, %v665_v61  ;;  %v659_v15 = vmax.f32 %v657_v52, %v658_v62  ;;  %v694_v16 = vadd.f32 %v693_v63, %v692_v54 }
 0x35f   : > { %v670_v11 = vrot.slane %v669_v10, 4  ;;  %v677_v12 = vrot.slane %v676_v0, 4  ;;  %v698_v6 = vrot.slane %v697_v1, 4  ;;  %v687_v17 = vadd.f32 %v686_v3, %v685_v53 }
 0x360   : > { %v705_v13 = vrot.slane %v704_v5, 4  ;;  %v667_v27 = vrot.slane %v666_v14, 1  ;;  %v660_v29 = vrot.slane %v659_v15, 1  ;;  %v695_v30 = vrot.slane %v694_v16, 1 }
 0x361   : > { %v671_v18 = vmax.f32 %v669_v10, %v670_v11  ;;  %v678_v19 = vmax.f32 %v676_v0, %v677_v12  ;;  %v699_v20 = vadd.f32 %v698_v6, %v697_v1  ;;  %v688_v31 = vrot.slane %v687_v17, 1 }
 0x362   : > { %v706_v21 = vadd.f32 %v705_v13, %v704_v5  ;;  %v668_v50 = vmax.f32 %v666_v14, %v667_v27  ;;  %v661_v2 = vmax.f32 %v659_v15, %v660_v29  ;;  %v696_v51 = vadd.f32 %v695_v30, %v694_v16 }
 0x363   : > { %v679_v22 = vrot.slane %v678_v19, 2  ;;  %v672_v23 = vrot.slane %v671_v18, 2  ;;  %v700_v25 = vrot.slane %v699_v20, 2  ;;  %v689_v52 = vadd.f32 %v688_v31, %v687_v17 }
 0x364   : > { %v707_v24 = vrot.slane %v706_v21, 2  ;;  %v712_v10 = vmul.f32 0.0625, %v696_v51  ;;  %v803_v11 = vstv %s3167_s22  ;;  %v868_v27 = vstv %s3170_s21  ;;  %s3176_s22 = sld [smem:[#allocation6 + $0x10]]  ;;  %s3177_s21 = sld [smem:[#allocation6 + $0x11]] }
 0x365   : > { %v680_v40 = vmax.f32 %v678_v19, %v679_v22  ;;  %v673_v41 = vmax.f32 %v671_v18, %v672_v23  ;;  %v701_v47 = vadd.f32 %v700_v25, %v699_v20  ;;  %v711_v0 = vmul.f32 0.0625, %v689_v52 }
 0x366   : > { %v708_v46 = vadd.f32 %v707_v24, %v706_v21  ;;  %v824_v18 = vstv %s3168_s20  ;;  %v846_v23 = vstv %s3169_s26  ;;  %v3931_v29 = vstv %s3161_s12  ;;  %s6031_s20 = smov 96   ;;  %s3210_s26 = sld [smem:[#allocation6 + $0x32]] }
 0x367   : > { %v681_v48 = vrot.slane %v680_v40, 1  ;;  %v674_v8 = vrot.slane %v673_v41, 1  ;;  %v702_v49 = vrot.slane %v701_v47, 1  ;;  %v934_v52 = vstv %s3173_s10  ;;  %s3178_s12 = sld [smem:[#allocation6 + $0x12]]  ;;  %s3181_s10 = sld [smem:[#allocation6 + $0x15]] }
 0x368   : > { %v709_v9 = vrot.slane %v708_v46, 1 }
 0x369   : > { %v682_v4 = vmax.f32 %v680_v40, %v681_v48  ;;  %v675_v53 = vmax.f32 %v673_v41, %v674_v8  ;;  %v703_v55 = vadd.f32 %v702_v49, %v701_v47  ;;  %v890_v47 = vstv %s3171_s16  ;;  %s3179_s16 = sld [smem:[#allocation6 + $0x13]] }
 0x36a   : > { %v710_v54 = vadd.f32 %v709_v9, %v708_v46  ;;  %v912_v9 = vstv %s3172_s19  ;;  %s3180_s19 = sld [smem:[#allocation6 + $0x14]] }
 0x36b   : > { %v720_v61 = vsel %vm416_vm3, %v682_v4, %v668_v50  ;;  %v719_v62 = vsel %vm416_vm3, %v675_v53, %v661_v2  ;;  %v713_v3 = vmul.f32 0.0625, %v703_v55 }
 0x36c   : > { %v714_v63 = vmul.f32 0.0625, %v710_v54  ;;  %723 = vrot.lane.b32.xlu1 %v720_v61, %s3549_s23  ;;  %721 = vrot.lane.b32.xlu0 %v719_v62, %s3549_s23  ;;  %v956_v54 = vstv %s3174_s13  ;;  %s3182_s13 = sld [smem:[#allocation6 + $0x16]] }
 0x36d   : > { %v736_v5 = vsel %vm416_vm3, %v713_v3, %v711_v0 }
 0x36e   : > { %v737_v1 = vsel %vm416_vm3, %v714_v63, %v712_v10  ;;  %vm2820_vm3 = vcmask 1039360  }
 0x370   : > { %740 = vrot.lane.b32.xlu1 %v737_v1, %s3549_s23  ;;  %738 = vrot.lane.b32.xlu0 %v736_v5, %s3549_s23  ;;  %s3175_s23 = sld [smem:[#allocation6 + $0xf]]  ;;  %v999_v1 = vstv %s3176_s22  ;;  %s6029_s22 = smov 80  }
 0x376   : > { %v977_v3 = vstv %s3175_s23  ;;  %s3183_s23 = sld [smem:[#allocation6 + $0x17]] }
 0x3de   : > { %v724_v12 = vpop.permute.xlu1 %723  ;;  %v722_v6 = vpop.permute.xlu0 %721 }
 0x3df   : > { %v3907_v13 = vsel %vm725_vm7, %v722_v6, %v724_v12  ;;  %v3910_v14 = vsel %vm725_vm7, 0.0, %v722_v6  ;;  %v3915_v17 = vsel %vm725_vm7, %v724_v12, 0.0 }
 0x3e0   : > { %v804_v15 = vmul.f32 %v803_v11, %v3910_v14  ;;  %v805_v16 = vmul.f32 %v803_v11, %v3907_v13  ;;  %v806_v19 = vmul.f32 %v803_v11, %v3915_v17  ;;  %v825_v20 = vmul.f32 %v824_v18, %v3910_v14 }
 0x3e1   : > { %v826_v21 = vmul.f32 %v824_v18, %v3907_v13  ;;  %v827_v22 = vmul.f32 %v824_v18, %v3915_v17  ;;  %v847_v24 = vmul.f32 %v846_v23, %v3910_v14  ;;  %v848_v25 = vmul.f32 %v846_v23, %v3907_v13 }
 0x3e2   : > { %810 = vrot.lane.b32.xlu0 %v804_v15, %s6033_s7  ;;  %812 = vrot.lane.b32.xlu1 %v805_v16, %s6033_s7  ;;  %v849_v30 = vmul.f32 %v846_v23, %v3915_v17  ;;  %v869_v31 = vmul.f32 %v868_v27, %v3910_v14  ;;  %v3939_v40 = vmul.f32 %v3931_v29, %v3907_v13  ;;  %v3973_v5 = vpop.permute.xlu1 %740  ;;  %v3975_v11 = vpop.permute.xlu0 %738  ;;  %v3986_v16 = vstv %s3210_s26  ;;  %s3184_s26 = sld [smem:[#allocation6 + $0x18]] }
 0x3e3   : > { %v870_v41 = vmul.f32 %v868_v27, %v3907_v13  ;;  %v871_v46 = vmul.f32 %v868_v27, %v3915_v17  ;;  %v891_v48 = vmul.f32 %v890_v47, %v3910_v14  ;;  %v892_v8 = vmul.f32 %v890_v47, %v3907_v13 }
 0x3e4   : > { %v893_v49 = vmul.f32 %v890_v47, %v3915_v17  ;;  %v913_v50 = vmul.f32 %v912_v9, %v3910_v14  ;;  %v914_v2 = vmul.f32 %v912_v9, %v3907_v13  ;;  %v915_v51 = vmul.f32 %v912_v9, %v3915_v17 }
 0x3e5   : > { %v935_v4 = vmul.f32 %v934_v52, %v3910_v14  ;;  %v936_v53 = vmul.f32 %v934_v52, %v3907_v13  ;;  %v937_v55 = vmul.f32 %v934_v52, %v3915_v17  ;;  %v957_v61 = vmul.f32 %v956_v54, %v3910_v14 }
 0x3e6   : > { %814 = vrot.lane.b32.xlu0 %v806_v19, %s6033_s7  ;;  %831 = vrot.lane.b32.xlu1 %v825_v20, %s6033_s7  ;;  %v958_v62 = vmul.f32 %v956_v54, %v3907_v13  ;;  %v959_v63 = vmul.f32 %v956_v54, %v3915_v17  ;;  %v978_v10 = vmul.f32 %v977_v3, %v3910_v14  ;;  %v1021_v20 = vstv %s3177_s21  ;;  %s3185_s21 = sld [smem:[#allocation6 + $0x19]] }
 0x3e7   : > { %v979_v0 = vmul.f32 %v977_v3, %v3907_v13  ;;  %v980_v12 = vmul.f32 %v977_v3, %v3915_v17  ;;  %v1000_v6 = vmul.f32 %v999_v1, %v3910_v14  ;;  %v3984_v15 = vsel %vm725_vm7, %v3975_v11, %v3973_v5 }
 0x3e8   : > { %6131 = vst [vmem:[#allocation38_spill] sm:$0xff] %v3984_v15  ;;  %v1001_v18 = vmul.f32 %v999_v1, %v3907_v13  ;;  %v1002_v19 = vmul.f32 %v999_v1, %v3915_v17  ;;  %v1023_v23 = vmul.f32 %v1021_v20, %v3907_v13 }
 0x3ea   : > { %833 = vrot.lane.b32.xlu0 %v826_v21, %s6033_s7  ;;  %835 = vrot.lane.b32.xlu1 %v827_v22, %s6033_s7  ;;  %v3994_v21 = vmul.f32 %v3986_v16, %v3984_v15  ;;  %v1022_v22 = vmul.f32 %v1021_v20, %v3910_v14 }
 0x3ec   : > { %6132 = vst [vmem:[#allocation39_spill] sm:$0xff] %v3994_v21 }
 0x3ee   : > { %853 = vrot.lane.b32.xlu0 %v847_v24, %s6033_s7  ;;  %855 = vrot.lane.b32.xlu1 %v848_v25, %s6033_s7  ;;  %v1043_v24 = vstv %s3178_s12  ;;  %v1024_v25 = vmul.f32 %v1021_v20, %v3915_v17  ;;  %s3186_s12 = sld [smem:[#allocation6 + $0x1a]] }
 0x3ef   : > { %v1044_v27 = vmul.f32 %v1043_v24, %v3910_v14 }
 0x3f2   : > { %857 = vrot.lane.b32.xlu0 %v849_v30, %s6033_s7  ;;  %875 = vrot.lane.b32.xlu1 %v869_v31, %s6033_s7  ;;  %v1045_v30 = vmul.f32 %v1043_v24, %v3907_v13  ;;  %v1046_v31 = vmul.f32 %v1043_v24, %v3915_v17 }
 0x3f6   : > { %877 = vrot.lane.b32.xlu0 %v870_v41, %s6033_s7  ;;  %879 = vrot.lane.b32.xlu1 %v871_v46, %s6033_s7  ;;  %v1065_v41 = vstv %s3179_s16  ;;  %s3187_s16 = sld [smem:[#allocation6 + $0x1b]] }
 0x3f7   : > { %v1066_v46 = vmul.f32 %v1065_v41, %v3910_v14  ;;  %v1067_v47 = vmul.f32 %v1065_v41, %v3907_v13 }
 0x3fa   : > { %897 = vrot.lane.b32.xlu0 %v891_v48, %s6033_s7  ;;  %899 = vrot.lane.b32.xlu1 %v892_v8, %s6033_s7  ;;  %v1087_v48 = vstv %s3180_s19  ;;  %v1068_v8 = vmul.f32 %v1065_v41, %v3915_v17  ;;  %s3188_s19 = sld [smem:[#allocation6 + $0x1c]] }
 0x3fb   : > { %v1088_v9 = vmul.f32 %v1087_v48, %v3910_v14 }
 0x3fc   : > { %v1240_v41 = vstv %s3187_s16  ;;  %s3194_s16 = sld [smem:[#allocation6 + $0x22]] }
 0x3fe   : > { %901 = vrot.lane.b32.xlu0 %v893_v49, %s6033_s7  ;;  %919 = vrot.lane.b32.xlu1 %v913_v50, %s6033_s7  ;;  %v1089_v49 = vmul.f32 %v1087_v48, %v3907_v13  ;;  %v1090_v50 = vmul.f32 %v1087_v48, %v3915_v17  ;;  %v1241_v48 = vmul.f32 %v1240_v41, %v3910_v14 }
 0x402   : > { %921 = vrot.lane.b32.xlu0 %v914_v2, %s6033_s7  ;;  %923 = vrot.lane.b32.xlu1 %v915_v51, %s6033_s7  ;;  %v1109_v2 = vstv %s3181_s10  ;;  %s3189_s10 = sld [smem:[#allocation6 + $0x1d]] }
 0x403   : > { %v1110_v51 = vmul.f32 %v1109_v2, %v3910_v14  ;;  %v1111_v52 = vmul.f32 %v1109_v2, %v3907_v13 }
 0x406   : > { %941 = vrot.lane.b32.xlu0 %v935_v4, %s6033_s7  ;;  %943 = vrot.lane.b32.xlu1 %v936_v53, %s6033_s7  ;;  %v1130_v4 = vstv %s3182_s13  ;;  %v1112_v53 = vmul.f32 %v1109_v2, %v3915_v17  ;;  %v1243_v2 = vmul.f32 %v1240_v41, %v3915_v17  ;;  %s3190_s13 = sld [smem:[#allocation6 + $0x1e]] }
 0x407   : > { %v1131_v54 = vmul.f32 %v1130_v4, %v3910_v14 }
 0x40a   : > { %945 = vrot.lane.b32.xlu0 %v937_v55, %s6033_s7  ;;  %963 = vrot.lane.b32.xlu1 %v957_v61, %s6031_s20  ;;  %v1132_v55 = vmul.f32 %v1130_v4, %v3907_v13  ;;  %v1133_v61 = vmul.f32 %v1130_v4, %v3915_v17 }
 0x40e   : > { %965 = vrot.lane.b32.xlu0 %v958_v62, %s6031_s20  ;;  %967 = vrot.lane.b32.xlu1 %v959_v63, %s6031_s20  ;;  %v1152_v62 = vstv %s3183_s23  ;;  %s6027_s23 = smov 64  }
 0x40f   : > { %v1153_v63 = vmul.f32 %v1152_v62, %v3910_v14  ;;  %v1154_v3 = vmul.f32 %v1152_v62, %v3907_v13 }
 0x412   : > { %984 = vrot.lane.b32.xlu0 %v978_v10, %s6031_s20  ;;  %986 = vrot.lane.b32.xlu1 %v979_v0, %s6031_s20  ;;  %v1174_v10 = vstv %s3184_s26  ;;  %v1155_v0 = vmul.f32 %v1152_v62, %v3915_v17  ;;  %s3191_s26 = sld [smem:[#allocation6 + $0x1f]] }
 0x413   : > { %v1175_v1 = vmul.f32 %v1174_v10, %v3910_v14 }
 0x416   : > { %988 = vrot.lane.b32.xlu0 %v980_v12, %s6031_s20  ;;  %1006 = vrot.lane.b32.xlu1 %v1000_v6, %s6031_s20  ;;  %v1176_v12 = vmul.f32 %v1174_v10, %v3907_v13  ;;  %v1177_v6 = vmul.f32 %v1174_v10, %v3915_v17  ;;  %v1305_v10 = vstv %s3190_s13  ;;  %s3197_s13 = sld [smem:[#allocation6 + $0x25]] }
 0x41a   : > { %1008 = vrot.lane.b32.xlu0 %v1001_v18, %s6031_s20  ;;  %1010 = vrot.lane.b32.xlu1 %v1002_v19, %s6031_s20  ;;  %v1196_v18 = vstv %s3185_s21  ;;  %s3192_s21 = sld [smem:[#allocation6 + $0x20]] }
 0x41b   : > { %v1197_v19 = vmul.f32 %v1196_v18, %v3910_v14  ;;  %v1198_v20 = vmul.f32 %v1196_v18, %v3907_v13 }
 0x41c   : > { %v1458_v43 = vstv %s3197_s13  ;;  %s3203_s13 = sld [smem:[#allocation6 + $0x2b]] }
 0x41e   : > { %1028 = vrot.lane.b32.xlu0 %v1022_v22, %s6031_s20  ;;  %1030 = vrot.lane.b32.xlu1 %v1023_v23, %s6031_s20  ;;  %v1218_v22 = vstv %s3186_s12  ;;  %v1199_v23 = vmul.f32 %v1196_v18, %v3915_v17  ;;  %s3193_s12 = sld [smem:[#allocation6 + $0x21]] }
 0x41f   : > { %v1219_v24 = vmul.f32 %v1218_v22, %v3910_v14 }
 0x422   : > { %1032 = vrot.lane.b32.xlu0 %v1024_v25, %s6031_s20  ;;  %1050 = vrot.lane.b32.xlu1 %v1044_v27, %s6031_s20 }
 0x426   : > { %1052 = vrot.lane.b32.xlu0 %v1045_v30, %s6031_s20  ;;  %1054 = vrot.lane.b32.xlu1 %v1046_v31, %s6031_s20  ;;  %v1220_v30 = vmul.f32 %v1218_v22, %v3907_v13  ;;  %v1221_v31 = vmul.f32 %v1218_v22, %v3915_v17  ;;  %v1308_v22 = vmul.f32 %v1305_v10, %v3915_v17 }
 0x42a   : > { %1072 = vrot.lane.b32.xlu0 %v1066_v46, %s6031_s20  ;;  %1074 = vrot.lane.b32.xlu1 %v1067_v47, %s6031_s20 }
 0x42e   : > { %1076 = vrot.lane.b32.xlu0 %v1068_v8, %s6031_s20  ;;  %1094 = vrot.lane.b32.xlu1 %v1088_v9, %s6031_s20  ;;  %v1242_v8 = vmul.f32 %v1240_v41, %v3907_v13  ;;  %v1262_v9 = vstv %s3188_s19  ;;  %s3195_s19 = sld [smem:[#allocation6 + $0x23]] }
 0x432   : > { %1096 = vrot.lane.b32.xlu0 %v1089_v49, %s6031_s20  ;;  %1098 = vrot.lane.b32.xlu1 %v1090_v50, %s6031_s20  ;;  %s4400_s20 = sld [smem:[#allocation6 + $0x42]] }
 0x436   : > { %1116 = vrot.lane.b32.xlu0 %v1110_v51, %s6029_s22  ;;  %1118 = vrot.lane.b32.xlu1 %v1111_v52, %s6029_s22  ;;  %v1263_v51 = vmul.f32 %v1262_v9, %v3910_v14 }
 0x43a   : > { %1120 = vrot.lane.b32.xlu0 %v1112_v53, %s6029_s22  ;;  %1137 = vrot.lane.b32.xlu1 %v1131_v54, %s6029_s22  ;;  %v1264_v53 = vmul.f32 %v1262_v9, %v3907_v13  ;;  %v1265_v54 = vmul.f32 %v1262_v9, %v3915_v17 }
 0x43e   : > { %1139 = vrot.lane.b32.xlu0 %v1132_v55, %s6029_s22  ;;  %1141 = vrot.lane.b32.xlu1 %v1133_v61, %s6029_s22  ;;  %v1283_v55 = vstv %s3189_s10  ;;  %s3196_s10 = sld [smem:[#allocation6 + $0x24]] }
 0x442   : > { %1159 = vrot.lane.b32.xlu0 %v1153_v63, %s6029_s22  ;;  %1161 = vrot.lane.b32.xlu1 %v1154_v3, %s6029_s22  ;;  %v1284_v63 = vmul.f32 %v1283_v55, %v3910_v14  ;;  %v1285_v3 = vmul.f32 %v1283_v55, %v3907_v13 }
 0x444   : > { %v1436_v59 = vstv %s3196_s10  ;;  %s3202_s10 = sld [smem:[#allocation6 + $0x2a]] }
 0x445   : > { %v1437_v58 = vmul.f32 %v1436_v59, %v3910_v14 }
 0x446   : > { %1163 = vrot.lane.b32.xlu0 %v1155_v0, %s6029_s22  ;;  %1181 = vrot.lane.b32.xlu1 %v1175_v1, %s6029_s22 }
 0x44a   : > { %1183 = vrot.lane.b32.xlu0 %v1176_v12, %s6029_s22  ;;  %1185 = vrot.lane.b32.xlu1 %v1177_v6, %s6029_s22  ;;  %v1286_v12 = vmul.f32 %v1283_v55, %v3915_v17  ;;  %v1306_v6 = vmul.f32 %v1305_v10, %v3910_v14  ;;  %v1568_v32 = vstv %s3202_s10  ;;  %s3207_s10 = sld [smem:[#allocation6 + $0x2f]] }
 0x44e   : > { %1203 = vrot.lane.b32.xlu0 %v1197_v19, %s6029_s22  ;;  %1205 = vrot.lane.b32.xlu1 %v1198_v20, %s6029_s22  ;;  %v1307_v20 = vmul.f32 %v1305_v10, %v3907_v13 }
 0x452   : > { %1207 = vrot.lane.b32.xlu0 %v1199_v23, %s6029_s22  ;;  %1225 = vrot.lane.b32.xlu1 %v1219_v24, %s6029_s22  ;;  %v1327_v23 = vstv %s3191_s26  ;;  %s6024_s26 = smov 48  }
 0x453   : > { %v1329_v41 = vmul.f32 %v1327_v23, %v3907_v13 }
 0x454   : > { %v4052_v25 = vpop.permute.xlu1 %812  ;;  %v4054_v27 = vpop.permute.xlu0 %810 }
 0x456   : > { %1227 = vrot.lane.b32.xlu0 %v1220_v30, %s6029_s22  ;;  %1229 = vrot.lane.b32.xlu1 %v1221_v31, %s6029_s22  ;;  %v1328_v31 = vmul.f32 %v1327_v23, %v3910_v14 }
 0x458   : > { %v4060_v46 = vpop.permute.xlu1 %831  ;;  %v4062_v47 = vpop.permute.xlu0 %814 }
 0x45a   : > { %1247 = vrot.lane.b32.xlu0 %v1241_v48, %s6029_s22  ;;  %1249 = vrot.lane.b32.xlu1 %v1242_v8, %s6029_s22  ;;  %v1349_v48 = vstv %s3192_s21  ;;  %s3198_s21 = sld [smem:[#allocation6 + $0x26]] }
 0x45b   : > { %v1351_v55 = vmul.f32 %v1349_v48, %v3907_v13 }
 0x45c   : > { %v4068_v49 = vpop.permute.xlu1 %835  ;;  %v4070_v50 = vpop.permute.xlu0 %833 }
 0x45e   : > { %1251 = vrot.lane.b32.xlu0 %v1243_v2, %s6029_s22  ;;  %1269 = vrot.lane.b32.xlu1 %v1263_v51, %s6027_s23  ;;  %v1330_v2 = vmul.f32 %v1327_v23, %v3915_v17  ;;  %v1350_v51 = vmul.f32 %v1349_v48, %v3910_v14  ;;  %s4396_s22 = sld [smem:[#allocation6 + $0x41]] }
 0x460   : > { %v4076_v52 = vpop.permute.xlu1 %855  ;;  %v4078_v4 = vpop.permute.xlu0 %853  ;;  %v1480_v42 = vstv %s3198_s21  ;;  %s3204_s21 = sld [smem:[#allocation6 + $0x2c]] }
 0x462   : > { %1271 = vrot.lane.b32.xlu0 %v1264_v53, %s6027_s23  ;;  %1273 = vrot.lane.b32.xlu1 %v1265_v54, %s6027_s23 }
 0x464   : > { %v4084_v61 = vpop.permute.xlu1 %875  ;;  %v4086_v62 = vpop.permute.xlu0 %857 }
 0x466   : > { %1290 = vrot.lane.b32.xlu0 %v1284_v63, %s6027_s23  ;;  %1292 = vrot.lane.b32.xlu1 %v1285_v3, %s6027_s23  ;;  %v1352_v63 = vmul.f32 %v1349_v48, %v3915_v17  ;;  %v1371_v3 = vstv %s3193_s12  ;;  %s3199_s12 = sld [smem:[#allocation6 + $0x27]] }
 0x468   : > { %v4092_v0 = vpop.permute.xlu1 %879  ;;  %v4094_v1 = vpop.permute.xlu0 %877 }
 0x46a   : > { %1294 = vrot.lane.b32.xlu0 %v1286_v12, %s6027_s23  ;;  %1312 = vrot.lane.b32.xlu1 %v1306_v6, %s6027_s23  ;;  %v1372_v6 = vmul.f32 %v1371_v3, %v3910_v14 }
 0x46c   : > { %v4100_v18 = vpop.permute.xlu1 %899  ;;  %v4102_v19 = vpop.permute.xlu0 %897  ;;  %v1502_v39 = vstv %s3199_s12  ;;  %s6022_s12 = smov 32  }
 0x46e   : > { %1314 = vrot.lane.b32.xlu0 %v1307_v20, %s6027_s23  ;;  %1316 = vrot.lane.b32.xlu1 %v1308_v22, %s6027_s23  ;;  %v1373_v20 = vmul.f32 %v1371_v3, %v3907_v13  ;;  %v1393_v22 = vstv %s3194_s16  ;;  %s3200_s16 = sld [smem:[#allocation6 + $0x28]] }
 0x46f   : > { %v1394_v48 = vmul.f32 %v1393_v22, %v3910_v14 }
 0x470   : > { %v4108_v24 = vpop.permute.xlu1 %919  ;;  %v4110_v30 = vpop.permute.xlu0 %901 }
 0x472   : > { %1334 = vrot.lane.b32.xlu0 %v1328_v31, %s6027_s23  ;;  %1336 = vrot.lane.b32.xlu1 %v1329_v41, %s6027_s23  ;;  %v1374_v41 = vmul.f32 %v1371_v3, %v3915_v17 }
 0x474   : > { %v4116_v8 = vpop.permute.xlu1 %923  ;;  %v4118_v9 = vpop.permute.xlu0 %921  ;;  %v1524_v38 = vstv %s3200_s16  ;;  %s3205_s16 = sld [smem:[#allocation6 + $0x2d]] }
 0x476   : > { %1338 = vrot.lane.b32.xlu0 %v1330_v2, %s6027_s23  ;;  %1356 = vrot.lane.b32.xlu1 %v1350_v51, %s6027_s23 }
 0x478   : > { %v4124_v53 = vpop.permute.xlu1 %943  ;;  %v4126_v54 = vpop.permute.xlu0 %941 }
 0x47a   : > { %1358 = vrot.lane.b32.xlu0 %v1351_v55, %s6027_s23  ;;  %1360 = vrot.lane.b32.xlu1 %v1352_v63, %s6027_s23  ;;  %v1395_v55 = vmul.f32 %v1393_v22, %v3907_v13  ;;  %v1396_v63 = vmul.f32 %v1393_v22, %v3915_v17 }
 0x47c   : > { %v4132_v10 = vpop.permute.xlu1 %963  ;;  %v4134_v12 = vpop.permute.xlu0 %945 }
 0x47d   : > { %6133 = vst [vmem:[#allocation40_spill] sm:$0xff] %v4132_v10  ;;  %6134 = vst [vmem:[#allocation41_spill] sm:$0xff] %v4134_v12 }
 0x47e   : > { %1378 = vrot.lane.b32.xlu0 %v1372_v6, %s6027_s23  ;;  %1380 = vrot.lane.b32.xlu1 %v1373_v20, %s6027_s23  ;;  %v1415_v6 = vstv %s3195_s19  ;;  %s3201_s19 = sld [smem:[#allocation6 + $0x29]] }
 0x480   : > { %v4140_v23 = vpop.permute.xlu1 %967  ;;  %v4142_v31 = vpop.permute.xlu0 %965 }
 0x481   : > { %6135 = vst [vmem:[#allocation42_spill] sm:$0xff] %v4140_v23  ;;  %6136 = vst [vmem:[#allocation43_spill] sm:$0xff] %v4142_v31 }
 0x482   : > { %1382 = vrot.lane.b32.xlu0 %v1374_v41, %s6027_s23  ;;  %1400 = vrot.lane.b32.xlu1 %v1394_v48, %s6027_s23  ;;  %v1416_v41 = vmul.f32 %v1415_v6, %v3910_v14  ;;  %v1417_v48 = vmul.f32 %v1415_v6, %v3907_v13 }
 0x484   : > { %v4148_v2 = vpop.permute.xlu1 %986  ;;  %v4150_v51 = vpop.permute.xlu0 %984  ;;  %v1546_v28 = vstv %s3201_s19  ;;  %s3206_s19 = sld [smem:[#allocation6 + $0x2e]] }
 0x485   : > { %6137 = vst [vmem:[#allocation44_spill] sm:$0xff] %v4148_v2  ;;  %6138 = vst [vmem:[#allocation45_spill] sm:$0xff] %v4150_v51 }
 0x486   : > { %1402 = vrot.lane.b32.xlu0 %v1395_v55, %s6027_s23  ;;  %1404 = vrot.lane.b32.xlu1 %v1396_v63, %s6027_s23  ;;  %v1418_v63 = vmul.f32 %v1415_v6, %v3915_v17  ;;  %s4394_s23 = sld [smem:[#allocation6 + $0x40]] }
 0x488   : > { %v4156_v3 = vpop.permute.xlu1 %1006  ;;  %v4158_v20 = vpop.permute.xlu0 %988 }
 0x489   : > { %6139 = vst [vmem:[#allocation46_spill] sm:$0xff] %v4156_v3  ;;  %6140 = vst [vmem:[#allocation47_spill] sm:$0xff] %v4158_v20 }
 0x48a   : > { %1422 = vrot.lane.b32.xlu0 %v1416_v41, %s6024_s26  ;;  %1424 = vrot.lane.b32.xlu1 %v1417_v48, %s6024_s26  ;;  %v1438_v41 = vmul.f32 %v1436_v59, %v3907_v13  ;;  %v1439_v48 = vmul.f32 %v1436_v59, %v3915_v17 }
 0x48c   : > { %v4164_v22 = vpop.permute.xlu1 %1010  ;;  %v4166_v55 = vpop.permute.xlu0 %1008 }
 0x48d   : > { %6141 = vst [vmem:[#allocation48_spill] sm:$0xff] %v4164_v22  ;;  %6142 = vst [vmem:[#allocation49_spill] sm:$0xff] %v4166_v55  ;;  %v4501_v22 = vstv %s4428_s11  ;;  %s6353_s11 = smov 48  }
 0x48e   : > { %1426 = vrot.lane.b32.xlu0 %v1418_v63, %s6024_s26  ;;  %1443 = vrot.lane.b32.xlu1 %v1437_v58, %s6024_s26  ;;  %v1459_v63 = vmul.f32 %v1458_v43, %v3910_v14  ;;  %v1460_v58 = vmul.f32 %v1458_v43, %v3907_v13 }
 0x490   : > { %v4172_v57 = vpop.permute.xlu1 %1030  ;;  %v4174_v56 = vpop.permute.xlu0 %1028 }
 0x491   : > { %6143 = vst [vmem:[#allocation50_spill] sm:$0xff] %v4172_v57  ;;  %6144 = vst [vmem:[#allocation51_spill] sm:$0xff] %v4174_v56  ;;  %v4498_v57 = vmul.f32 %v3931_v29, %v3915_v17 }
 0x492   : > { %1445 = vrot.lane.b32.xlu0 %v1438_v41, %s6024_s26  ;;  %1447 = vrot.lane.b32.xlu1 %v1439_v48, %s6024_s26  ;;  %v1461_v41 = vmul.f32 %v1458_v43, %v3915_v17  ;;  %v1481_v48 = vmul.f32 %v1480_v42, %v3910_v14 }
 0x494   : > { %v4180_v6 = vpop.permute.xlu1 %1050  ;;  %v4182_v45 = vpop.permute.xlu0 %1032 }
 0x495   : > { %6145 = vst [vmem:[#allocation52_spill] sm:$0xff] %v4180_v6  ;;  %6146 = vst [vmem:[#allocation53_spill] sm:$0xff] %v4182_v45  ;;  %v4478_v45 = vstv %s4420_s4  ;;  %s6324_s4 = smov 64  }
 0x496   : > { %1465 = vrot.lane.b32.xlu0 %v1459_v63, %s6024_s26  ;;  %1467 = vrot.lane.b32.xlu1 %v1460_v58, %s6024_s26  ;;  %v1482_v63 = vmul.f32 %v1480_v42, %v3907_v13  ;;  %v1483_v58 = vmul.f32 %v1480_v42, %v3915_v17 }
 0x498   : > { %v4188_v59 = vpop.permute.xlu1 %1054  ;;  %v4190_v44 = vpop.permute.xlu0 %1052 }
 0x499   : > { %6147 = vst [vmem:[#allocation54_spill] sm:$0xff] %v4188_v59  ;;  %6148 = vst [vmem:[#allocation55_spill] sm:$0xff] %v4190_v44  ;;  %v4475_v44 = vstv %s4418_s3  ;;  %s6299_s3 = smov 80  }
 0x49a   : > { %1469 = vrot.lane.b32.xlu0 %v1461_v41, %s6024_s26  ;;  %1487 = vrot.lane.b32.xlu1 %v1481_v48, %s6024_s26  ;;  %v1504_v41 = vmul.f32 %v1502_v39, %v3907_v13  ;;  %v1503_v48 = vmul.f32 %v1502_v39, %v3910_v14 }
 0x49c   : > { %v4196_v7 = vpop.permute.xlu1 %1074  ;;  %v4198_v60 = vpop.permute.xlu0 %1072 }
 0x49d   : > { %6149 = vst [vmem:[#allocation56_spill] sm:$0xff] %v4196_v7  ;;  %6150 = vst [vmem:[#allocation57_spill] sm:$0xff] %v4198_v60  ;;  %v4463_v60 = vstv %s4404_s1  ;;  %v4466_v7 = vstv %s4406_s2  ;;  %s4540_s1 = sld [smem:[#allocation6 + $0x35]]  ;;  %s6215_s2 = smov 96  }
 0x49e   : > { %1489 = vrot.lane.b32.xlu0 %v1482_v63, %s6024_s26  ;;  %1491 = vrot.lane.b32.xlu1 %v1483_v58, %s6024_s26  ;;  %v1525_v63 = vmul.f32 %v1524_v38, %v3910_v14  ;;  %v1505_v58 = vmul.f32 %v1502_v39, %v3915_v17  ;;  %6202 = vst [vmem:[#allocation108_spill] sm:$0xff] %v4463_v60 }
 0x4a0   : > { %v4204_v43 = vpop.permute.xlu1 %1094  ;;  %v4206_v36 = vpop.permute.xlu0 %1076 }
 0x4a1   : > { %6151 = vst [vmem:[#allocation58_spill] sm:$0xff] %v4204_v43  ;;  %6152 = vst [vmem:[#allocation59_spill] sm:$0xff] %v4206_v36  ;;  %v4324_v43 = vsel %vm725_vm7, 0.0, %v3975_v11  ;;  %v4451_v36 = vstv %s4400_s20  ;;  %s6376_s20 = smov 32  }
 0x4a2   : > { %1511 = vrot.lane.b32.xlu1 %v1504_v41, %s6024_s26  ;;  %1509 = vrot.lane.b32.xlu0 %v1503_v48, %s6024_s26  ;;  %v1527_v41 = vmul.f32 %v1524_v38, %v3915_v17  ;;  %v1526_v48 = vmul.f32 %v1524_v38, %v3907_v13  ;;  %6181 = vst [vmem:[#allocation88_spill] sm:$0xff] %v4324_v43 }
 0x4a4   : > { %v4212_v42 = vpop.permute.xlu1 %1098  ;;  %v4214_v34 = vpop.permute.xlu0 %1096 }
 0x4a5   : > { %6153 = vst [vmem:[#allocation60_spill] sm:$0xff] %v4212_v42  ;;  %6154 = vst [vmem:[#allocation61_spill] sm:$0xff] %v4214_v34 }
 0x4a6   : > { %1531 = vrot.lane.b32.xlu1 %v1525_v63, %s6024_s26  ;;  %1513 = vrot.lane.b32.xlu0 %v1505_v58, %s6024_s26  ;;  %v1548_v63 = vmul.f32 %v1546_v28, %v3907_v13  ;;  %v1547_v58 = vmul.f32 %v1546_v28, %v3910_v14 }
 0x4a8   : > { %v4220_v33 = vpop.permute.xlu1 %1118  ;;  %v4222_v37 = vpop.permute.xlu0 %1116 }
 0x4a9   : > { %6155 = vst [vmem:[#allocation62_spill] sm:$0xff] %v4220_v33  ;;  %6156 = vst [vmem:[#allocation63_spill] sm:$0xff] %v4222_v37 }
 0x4aa   : > { %1535 = vrot.lane.b32.xlu1 %v1527_v41, %s6024_s26  ;;  %1533 = vrot.lane.b32.xlu0 %v1526_v48, %s6024_s26  ;;  %v1569_v41 = vmul.f32 %v1568_v32, %v3910_v14  ;;  %v1549_v48 = vmul.f32 %v1546_v28, %v3915_v17 }
 0x4ac   : > { %v4228_v35 = vpop.permute.xlu1 %1137  ;;  %v4230_v39 = vpop.permute.xlu0 %1120 }
 0x4ad   : > { %6157 = vst [vmem:[#allocation64_spill] sm:$0xff] %v4228_v35  ;;  %6158 = vst [vmem:[#allocation65_spill] sm:$0xff] %v4230_v39  ;;  %v4454_v39 = vstv %s4402_s0  ;;  %s4488_s0 = sld [smem:[#allocation6 + $0x33]] }
 0x4ae   : > { %1555 = vrot.lane.b32.xlu1 %v1548_v63, %s6024_s26  ;;  %1553 = vrot.lane.b32.xlu0 %v1547_v58, %s6024_s26  ;;  %v1571_v63 = vmul.f32 %v1568_v32, %v3915_v17  ;;  %v1570_v58 = vmul.f32 %v1568_v32, %v3907_v13 }
 0x4b0   : > { %v4236_v38 = vpop.permute.xlu1 %1141  ;;  %v4238_v26 = vpop.permute.xlu0 %1139 }
 0x4b1   : > { %6159 = vst [vmem:[#allocation66_spill] sm:$0xff] %v4236_v38  ;;  %6160 = vst [vmem:[#allocation67_spill] sm:$0xff] %v4238_v26  ;;  %v1589_v38 = vstv %s3203_s13  ;;  %s3208_s13 = sld [smem:[#allocation6 + $0x30]] }
 0x4b2   : > { %1575 = vrot.lane.b32.xlu1 %v1569_v41, %s6022_s12  ;;  %1557 = vrot.lane.b32.xlu0 %v1549_v48, %s6024_s26  ;;  %v1591_v41 = vmul.f32 %v1589_v38, %v3907_v13  ;;  %v1590_v48 = vmul.f32 %v1589_v38, %v3910_v14  ;;  %s4392_s26 = sld [smem:[#allocation6 + $0x3f]] }
 0x4b4   : > { %v4244_v21 = vpop.permute.xlu1 %1161  ;;  %v4246_v35 = vpop.permute.xlu0 %1159 }
 0x4b5   : > { %6161 = vst [vmem:[#allocation68_spill] sm:$0xff] %v4244_v21  ;;  %6162 = vst [vmem:[#allocation69_spill] sm:$0xff] %v4246_v35  ;;  %v1611_v21 = vstv %s3204_s21  ;;  %s3216_s21 = sld [smem:[#allocation6 + $0x38]] }
 0x4b6   : > { %1579 = vrot.lane.b32.xlu1 %v1571_v63, %s6022_s12  ;;  %1577 = vrot.lane.b32.xlu0 %v1570_v58, %s6022_s12  ;;  %v1612_v63 = vmul.f32 %v1611_v21, %v3910_v14  ;;  %v1592_v58 = vmul.f32 %v1589_v38, %v3915_v17 }
 0x4b8   : > { %v4252_v28 = vpop.permute.xlu1 %1181  ;;  %v4254_v26 = vpop.permute.xlu0 %1163 }
 0x4b9   : > { %6163 = vst [vmem:[#allocation70_spill] sm:$0xff] %v4252_v28  ;;  %6164 = vst [vmem:[#allocation71_spill] sm:$0xff] %v4254_v26 }
 0x4ba   : > { %1598 = vrot.lane.b32.xlu1 %v1591_v41, %s6022_s12  ;;  %1596 = vrot.lane.b32.xlu0 %v1590_v48, %s6022_s12  ;;  %v1614_v41 = vmul.f32 %v1611_v21, %v3915_v17  ;;  %v1613_v48 = vmul.f32 %v1611_v21, %v3907_v13 }
 0x4bb   : > { %v1775_v34 = vstv %s3216_s21  ;;  %s4364_s21 = sld [smem:[#allocation6]] }
 0x4bc   : > { %v4260_v32 = vpop.permute.xlu1 %1185  ;;  %v4262_v35 = vpop.permute.xlu0 %1183 }
 0x4bd   : > { %6165 = vst [vmem:[#allocation72_spill] sm:$0xff] %v4260_v32  ;;  %6166 = vst [vmem:[#allocation73_spill] sm:$0xff] %v4262_v35  ;;  %v1633_v32 = vstv %s3205_s16  ;;  %s3217_s16 = sld [smem:[#allocation6 + $0x39]] }
 0x4be   : > { %1618 = vrot.lane.b32.xlu1 %v1612_v63, %s6022_s12  ;;  %1600 = vrot.lane.b32.xlu0 %v1592_v58, %s6022_s12  ;;  %v1635_v63 = vmul.f32 %v1633_v32, %v3907_v13  ;;  %v1634_v58 = vmul.f32 %v1633_v32, %v3910_v14 }
 0x4c0   : > { %v4268_v28 = vpop.permute.xlu1 %1205  ;;  %v4270_v26 = vpop.permute.xlu0 %1203 }
 0x4c1   : > { %6167 = vst [vmem:[#allocation74_spill] sm:$0xff] %v4268_v28  ;;  %6168 = vst [vmem:[#allocation75_spill] sm:$0xff] %v4270_v26  ;;  %v1655_v28 = vstv %s3206_s19  ;;  %s3218_s19 = sld [smem:[#allocation6 + $0x3a]] }
 0x4c2   : > { %1622 = vrot.lane.b32.xlu1 %v1614_v41, %s6022_s12  ;;  %1620 = vrot.lane.b32.xlu0 %v1613_v48, %s6022_s12  ;;  %v1656_v41 = vmul.f32 %v1655_v28, %v3910_v14  ;;  %v1636_v48 = vmul.f32 %v1633_v32, %v3915_v17 }
 0x4c4   : > { %v4276_v35 = vpop.permute.xlu1 %1225  ;;  %v4278_v38 = vpop.permute.xlu0 %1207 }
 0x4c5   : > { %6169 = vst [vmem:[#allocation76_spill] sm:$0xff] %v4276_v35  ;;  %6170 = vst [vmem:[#allocation77_spill] sm:$0xff] %v4278_v38 }
 0x4c6   : > { %1642 = vrot.lane.b32.xlu1 %v1635_v63, %s6022_s12  ;;  %1640 = vrot.lane.b32.xlu0 %v1634_v58, %s6022_s12  ;;  %v1658_v63 = vmul.f32 %v1655_v28, %v3915_v17  ;;  %v1657_v58 = vmul.f32 %v1655_v28, %v3907_v13 }
 0x4c8   : > { %v4284_v21 = vpop.permute.xlu1 %1229  ;;  %v4286_v26 = vpop.permute.xlu0 %1227 }
 0x4c9   : > { %6171 = vst [vmem:[#allocation78_spill] sm:$0xff] %v4284_v21  ;;  %6172 = vst [vmem:[#allocation79_spill] sm:$0xff] %v4286_v26  ;;  %v1677_v21 = vstv %s3207_s10  ;;  %s3219_s10 = sld [smem:[#allocation6 + $0x3b]] }
 0x4ca   : > { %1662 = vrot.lane.b32.xlu1 %v1656_v41, %s6022_s12  ;;  %1644 = vrot.lane.b32.xlu0 %v1636_v48, %s6022_s12  ;;  %v1679_v41 = vmul.f32 %v1677_v21, %v3907_v13  ;;  %v1678_v48 = vmul.f32 %v1677_v21, %v3910_v14 }
 0x4cc   : > { %v4292_v35 = vpop.permute.xlu1 %1249  ;;  %v4294_v38 = vpop.permute.xlu0 %1247 }
 0x4cd   : > { %6173 = vst [vmem:[#allocation80_spill] sm:$0xff] %v4292_v35  ;;  %6174 = vst [vmem:[#allocation81_spill] sm:$0xff] %v4294_v38  ;;  %v1699_v35 = vstv %s3208_s13  ;;  %s3220_s13 = sld [smem:[#allocation6 + $0x3c]] }
 0x4ce   : > { %1666 = vrot.lane.b32.xlu1 %v1658_v63, %s6022_s12  ;;  %1664 = vrot.lane.b32.xlu0 %v1657_v58, %s6022_s12  ;;  %v1700_v63 = vmul.f32 %v1699_v35, %v3910_v14  ;;  %v1680_v58 = vmul.f32 %v1677_v21, %v3915_v17 }
 0x4d0   : > { %v4300_v26 = vpop.permute.xlu1 %1269  ;;  %v4302_v32 = vpop.permute.xlu0 %1251 }
 0x4d1   : > { %6175 = vst [vmem:[#allocation82_spill] sm:$0xff] %v4300_v26  ;;  %6176 = vst [vmem:[#allocation83_spill] sm:$0xff] %v4302_v32  ;;  %v795_v26 = vstv %s4382_s6  ;;  %s3229_s6 = sld [smem:[#allocation6 + $0x45]] }
 0x4d2   : > { %1686 = vrot.lane.b32.xlu1 %v1679_v41, %s6022_s12  ;;  %1684 = vrot.lane.b32.xlu0 %v1678_v48, %s6022_s12  ;;  %v1702_v41 = vmul.f32 %v1699_v35, %v3915_v17  ;;  %v1701_v48 = vmul.f32 %v1699_v35, %v3907_v13  ;;  %v4336_v35 = vsel %vm725_vm7, %v3973_v5, 0.0 }
 0x4d3   : > { %6184 = vst [vmem:[#allocation91_spill] sm:$0xff] %v4336_v35 }
 0x4d4   : > { %v4308_v28 = vpop.permute.xlu1 %1273  ;;  %v4310_v38 = vpop.permute.xlu0 %1271 }
 0x4d5   : > { %6177 = vst [vmem:[#allocation84_spill] sm:$0xff] %v4308_v28  ;;  %6178 = vst [vmem:[#allocation85_spill] sm:$0xff] %v4310_v38  ;;  %v787_v28 = vstv %s4380_s15  ;;  %v1947_v38 = vstv %s4394_s23  ;;  %s3251_s15 = sld [smem:[#allocation6 + $0x5b]]  ;;  %s3246_s23 = sld [smem:[#allocation6 + $0x56]] }
 0x4d6   : > { %1706 = vrot.lane.b32.xlu1 %v1700_v63, %s6022_s12  ;;  %1688 = vrot.lane.b32.xlu0 %v1680_v58, %s6022_s12  ;;  %v1777_v58 = vmul.f32 %v1775_v34, %v3984_v15  ;;  %v4546_v12 = vmul.f32 %v787_v28, %v3915_v17 }
 0x4d8   : > { %v4316_v32 = vpop.permute.xlu1 %1292  ;;  %v4318_v42 = vpop.permute.xlu0 %1290  ;;  %6207 = vst [vmem:[#allocation113_spill] sm:$0xff] %v4546_v12 }
 0x4d9   : > { %6179 = vst [vmem:[#allocation86_spill] sm:$0xff] %v4316_v32  ;;  %6180 = vst [vmem:[#allocation87_spill] sm:$0xff] %v4318_v42  ;;  %v1776_v42 = vmul.f32 %v1775_v34, %v4324_v43  ;;  %v1795_v32 = vstv %s3217_s16  ;;  %s4372_s16 = sld [smem:[#allocation6 + $0x2]] }
 0x4da   : > { %1710 = vrot.lane.b32.xlu1 %v1702_v41, %s6022_s12  ;;  %1708 = vrot.lane.b32.xlu0 %v1701_v48, %s6022_s12  ;;  %v1796_v48 = vmul.f32 %v1795_v32, %v4324_v43  ;;  %s4390_s12 = sld [smem:[#allocation6 + $0x3e]] }
 0x4dc   : > { %v4328_v21 = vpop.permute.xlu1 %1312  ;;  %v4330_v63 = vpop.permute.xlu0 %1294 }
 0x4dd   : > { %6182 = vst [vmem:[#allocation89_spill] sm:$0xff] %v4328_v21  ;;  %6183 = vst [vmem:[#allocation90_spill] sm:$0xff] %v4330_v63  ;;  %v1778_v21 = vmul.f32 %v1775_v34, %v4336_v35 }
 0x4de   : > { %1784 = vrot.lane.b32.xlu1 %v1777_v58, %s6033_s7  ;;  %1782 = vrot.lane.b32.xlu0 %v1776_v42, %s6033_s7  ;;  %v1798_v58 = vmul.f32 %v1795_v32, %v4336_v35  ;;  %v1797_v42 = vmul.f32 %v1795_v32, %v3984_v15 }
 0x4e0   : > { %v4340_v11 = vpop.permute.xlu1 %1316  ;;  %v4342_v41 = vpop.permute.xlu0 %1314 }
 0x4e1   : > { %6185 = vst [vmem:[#allocation92_spill] sm:$0xff] %v4340_v11  ;;  %6186 = vst [vmem:[#allocation93_spill] sm:$0xff] %v4342_v41  ;;  %v1817_v11 = vstv %s3218_s19  ;;  %s3221_s19 = sld [smem:[#allocation6 + $0x3d]] }
 0x4e2   : > { %1802 = vrot.lane.b32.xlu1 %v1796_v48, %s6033_s7  ;;  %1786 = vrot.lane.b32.xlu0 %v1778_v21, %s6033_s7  ;;  %v1819_v48 = vmul.f32 %v1817_v11, %v3984_v15  ;;  %v1818_v21 = vmul.f32 %v1817_v11, %v4324_v43 }
 0x4e4   : > { %v4348_v5 = vpop.permute.xlu1 %1336  ;;  %v4350_v63 = vpop.permute.xlu0 %1334 }
 0x4e5   : > { %6187 = vst [vmem:[#allocation94_spill] sm:$0xff] %v4348_v5  ;;  %6188 = vst [vmem:[#allocation95_spill] sm:$0xff] %v4350_v63  ;;  %v1839_v5 = vstv %s3219_s10  ;;  %s4376_s10 = sld [smem:[#allocation6 + $0x4]] }
 0x4e6   : > { %1806 = vrot.lane.b32.xlu1 %v1798_v58, %s6033_s7  ;;  %1804 = vrot.lane.b32.xlu0 %v1797_v42, %s6033_s7  ;;  %v1840_v42 = vmul.f32 %v1839_v5, %v4324_v43 }
 0x4e8   : > { %v4356_v41 = vpop.permute.xlu1 %1356  ;;  %v4358_v34 = vpop.permute.xlu0 %1338 }
 0x4e9   : > { %6189 = vst [vmem:[#allocation96_spill] sm:$0xff] %v4356_v41  ;;  %6190 = vst [vmem:[#allocation97_spill] sm:$0xff] %v4358_v34  ;;  %v1820_v41 = vmul.f32 %v1817_v11, %v4336_v35  ;;  %v1842_v11 = vmul.f32 %v1839_v5, %v4336_v35  ;;  %v771_v34 = vstv %s4374_s25  ;;  %s3245_s25 = sld [smem:[#allocation6 + $0x55]] }
 0x4ea   : > { %1826 = vrot.lane.b32.xlu1 %v1819_v48, %s6033_s7  ;;  %1824 = vrot.lane.b32.xlu0 %v1818_v21, %s6033_s7  ;;  %v4526_v23 = vmul.f32 %v771_v34, %v3910_v14 }
 0x4eb   : > { %v779_v63 = vstv %s4376_s10  ;;  %s3253_s10 = sld [smem:[#allocation6 + $0x5d]] }
 0x4ec   : > { %v4366_v32 = vpop.permute.xlu1 %1360  ;;  %v4368_v58 = vpop.permute.xlu0 %1358  ;;  %v4535_v10 = vmul.f32 %v779_v63, %v3907_v13  ;;  %v4543_v31 = vmul.f32 %v779_v63, %v3915_v17 }
 0x4ed   : > { %6191 = vst [vmem:[#allocation98_spill] sm:$0xff] %v4366_v32  ;;  %6192 = vst [vmem:[#allocation99_spill] sm:$0xff] %v4368_v58  ;;  %v1841_v32 = vmul.f32 %v1839_v5, %v3984_v15  ;;  %v1861_v58 = vstv %s3220_s13  ;;  %s4414_s13 = sld [smem:[#allocation6 + $0x47]] }
 0x4ee   : > { %1846 = vrot.lane.b32.xlu1 %v1840_v42, %s6033_s7  ;;  %1828 = vrot.lane.b32.xlu0 %v1820_v41, %s6033_s7  ;;  %v1863_v42 = vmul.f32 %v1861_v58, %v3984_v15  ;;  %6206 = vst [vmem:[#allocation112_spill] sm:$0xff] %v4535_v10 }
 0x4f0   : > { %v4384_v48 = vpop.permute.xlu1 %1380  ;;  %v4386_v21 = vpop.permute.xlu0 %1378 }
 0x4f1   : > { %6193 = vst [vmem:[#allocation100_spill] sm:$0xff] %v4384_v48  ;;  %6194 = vst [vmem:[#allocation101_spill] sm:$0xff] %v4386_v21 }
 0x4f2   : > { %1850 = vrot.lane.b32.xlu1 %v1842_v11, %s6033_s7  ;;  %1848 = vrot.lane.b32.xlu0 %v1841_v32, %s6033_s7  ;;  %v1862_v11 = vmul.f32 %v1861_v58, %v4324_v43  ;;  %s4416_s7 = sld [smem:[#allocation6 + $0x4d]]  ;;  %v1883_v32 = vstv %s3221_s19  ;;  %s3248_s19 = sld [smem:[#allocation6 + $0x58]] }
 0x4f3   : > { %v1885_v33 = vmul.f32 %v1883_v32, %v3984_v15  ;;  %v4469_v59 = vstv %s4414_s13  ;;  %s3243_s13 = sld [smem:[#allocation6 + $0x53]] }
 0x4f4   : > { %v4408_v41 = vpop.permute.xlu1 %1400  ;;  %v4410_v5 = vpop.permute.xlu0 %1382 }
 0x4f5   : > { %6195 = vst [vmem:[#allocation102_spill] sm:$0xff] %v4408_v41  ;;  %6196 = vst [vmem:[#allocation103_spill] sm:$0xff] %v4410_v5  ;;  %v749_v41 = vstv %s4364_s21  ;;  %v763_v5 = vstv %s4372_s16  ;;  %s4446_s21 = sld [smem:[#allocation6 + $0x31]]  ;;  %s3242_s16 = sld [smem:[#allocation6 + $0x52]] }
 0x4f6   : > { %1870 = vrot.lane.b32.xlu1 %v1863_v42, %s6197_s14  ;;  %1868 = vrot.lane.b32.xlu0 %v1862_v11, %s6197_s14  ;;  %v1884_v42 = vmul.f32 %v1883_v32, %v4324_v43  ;;  %v1864_v11 = vmul.f32 %v1861_v58, %v4336_v35  ;;  %v1969_v58 = vstv %s4396_s22  ;;  %v4494_v56 = vmul.f32 %v749_v41, %v3907_v13  ;;  %s3241_s22 = sld [smem:[#allocation6 + $0x51]] }
 0x4f7   : > { %v4517_v51 = vmul.f32 %v763_v5, %v3907_v13  ;;  %v4520_v2 = vmul.f32 %v763_v5, %v3915_v17 }
 0x4f8   : > { %v4432_v21 = vpop.permute.xlu1 %1404  ;;  %v4434_v48 = vpop.permute.xlu0 %1402  ;;  %v4472_v6 = vstv %s4416_s7  ;;  %s3235_s7 = sld [smem:[#allocation6 + $0x4b]] }
 0x4f9   : > { %6198 = vst [vmem:[#allocation104_spill] sm:$0xff] %v4432_v21  ;;  %6199 = vst [vmem:[#allocation105_spill] sm:$0xff] %v4434_v48  ;;  %v1905_v21 = vstv %s4390_s12  ;;  %v1927_v48 = vstv %s4392_s26  ;;  %s3252_s26 = sld [smem:[#allocation6 + $0x5c]] }
 0x4fa   : > { %1890 = vrot.lane.b32.xlu1 %v1884_v42, %s6197_s14  ;;  %1872 = vrot.lane.b32.xlu0 %v1864_v11, %s6197_s14  ;;  %v1886_v11 = vmul.f32 %v1883_v32, %v4336_v35  ;;  %v4491_v32 = vmul.f32 %v749_v41, %v3910_v14  ;;  %v1907_v41 = vmul.f32 %v1905_v21, %v3984_v15  ;;  %s3236_s12 = sld [smem:[#allocation6 + $0x4c]] }
 0x4fb   : > { %v1906_v20 = vmul.f32 %v1905_v21, %v4324_v43  ;;  %v1928_v10 = vmul.f32 %v1927_v48, %v4324_v43  ;;  %v1908_v12 = vmul.f32 %v1905_v21, %v4336_v35  ;;  %v1735_v21 = vstv %s4488_s0  ;;  %s3255_s0 = sld [smem:[#allocation6 + $0x5f]] }
 0x4fc   : > { %v4456_v37 = vpop.permute.xlu1 %1424  ;;  %v4458_v42 = vpop.permute.xlu0 %1422 }
 0x4fd   : > { %6200 = vst [vmem:[#allocation106_spill] sm:$0xff] %v4456_v37  ;;  %6201 = vst [vmem:[#allocation107_spill] sm:$0xff] %v4458_v42  ;;  %v4483_v42 = vstv %s4424_s29  ;;  %v4486_v37 = vstv %s4426_s28  ;;  %s5097_s28 = sld [smem:[#allocation6 + $0x4a]]  ;;  %s5125_s29 = sld [smem:[#allocation6 + $0x37]] }
 0x4fe   : > { %1894 = vrot.lane.b32.xlu1 %v1886_v11, %s6197_s14  ;;  %1892 = vrot.lane.b32.xlu0 %v1885_v33, %s6197_s14  ;;  %v4505_v33 = vmul.f32 %v3931_v29, %v3910_v14  ;;  %v4508_v11 = vmul.f32 %v763_v5, %v3910_v14  ;;  %v4523_v29 = vmul.f32 %v771_v34, %v3915_v17 }
 0x500   : > { %v4510_v3 = vpop.permute.xlu1 %1443  ;;  %v4512_v55 = vpop.permute.xlu0 %1426 }
 0x501   : > { %6203 = vst [vmem:[#allocation109_spill] sm:$0xff] %v4510_v3  ;;  %6204 = vst [vmem:[#allocation110_spill] sm:$0xff] %v4512_v55  ;;  %v4529_v3 = vmul.f32 %v771_v34, %v3907_v13  ;;  %v4532_v55 = vmul.f32 %v779_v63, %v3910_v14  ;;  %v4549_v34 = vmul.f32 %v787_v28, %v3910_v14 }
 0x502   : > { %1914 = vrot.lane.b32.xlu1 %v1907_v41, %s6197_s14  ;;  %1912 = vrot.lane.b32.xlu0 %v1906_v20, %s6197_s14  ;;  %v4555_v41 = vmul.f32 %v795_v26, %v3910_v14  ;;  %v4558_v20 = vmul.f32 %v795_v26, %v3907_v13  ;;  %v1949_v14 = vmul.f32 %v1947_v38, %v3984_v15 }
 0x503   : > { %6205 = vst [vmem:[#allocation111_spill] sm:$0xff] %v4532_v55  ;;  %6208 = vst [vmem:[#allocation114_spill] sm:$0xff] %v4549_v34  ;;  %v4552_v55 = vmul.f32 %v787_v28, %v3907_v13  ;;  %v4567_v34 = vmul.f32 %v795_v26, %v3915_v17  ;;  %v1930_v28 = vmul.f32 %v1927_v48, %v4336_v35 }
 0x504   : > { %6210 = vst [vmem:[#allocation116_spill] sm:$0xff] %v4555_v41  ;;  %6211 = vst [vmem:[#allocation117_spill] sm:$0xff] %v4558_v20  ;;  %v4560_v5 = vpop.permute.xlu1 %1447  ;;  %v4562_v63 = vpop.permute.xlu0 %1445  ;;  %v1948_v13 = vmul.f32 %v1947_v38, %v4324_v43  ;;  %v4579_v26 = vmul.f32 %v1969_v58, %v4336_v35  ;;  %v4582_v17 = vmul.f32 %v1969_v58, %v3984_v15 }
 0x505   : > { %6209 = vst [vmem:[#allocation115_spill] sm:$0xff] %v4552_v55  ;;  %6212 = vst [vmem:[#allocation118_spill] sm:$0xff] %v4560_v5  ;;  %v1929_v55 = vmul.f32 %v1927_v48, %v3984_v15  ;;  %v1970_v5 = vmul.f32 %v1969_v58, %v4324_v43  ;;  %v4586_v48 = vmul.f32 %v4451_v36, %v3984_v15 }
 0x506   : > { %6213 = vst [vmem:[#allocation119_spill] sm:$0xff] %v4562_v63  ;;  %6214 = vst [vmem:[#allocation120_spill] sm:$0xff] %v4567_v34  ;;  %1934 = vrot.lane.b32.xlu1 %v1928_v10, %s6215_s2  ;;  %1916 = vrot.lane.b32.xlu0 %v1908_v12, %s6197_s14  ;;  %v1950_v63 = vmul.f32 %v1947_v38, %v4336_v35  ;;  %v4590_v10 = vmul.f32 %v4451_v36, %v4324_v43  ;;  %s5206_s14 = sld [smem:[#allocation6 + $0x4f]] }
 0x507   : > { %v4598_v38 = vmul.f32 %v4454_v39, %v4324_v43  ;;  %v4602_v58 = vmul.f32 %v4451_v36, %v4336_v35  ;;  %v4606_v20 = vmul.f32 %v4454_v39, %v4336_v35  ;;  %v4610_v41 = vmul.f32 %v4454_v39, %v3984_v15 }
 0x508   : > { %v4592_v12 = vpop.permute.xlu1 %1467  ;;  %v4594_v34 = vpop.permute.xlu0 %1465  ;;  %v4622_v36 = vmul.f32 %v4466_v7, %v3984_v15  ;;  %v4632_v39 = vmul.f32 %v3986_v16, %v4324_v43 }
 0x509   : > { %6216 = vst [vmem:[#allocation121_spill] sm:$0xff] %v4592_v12  ;;  %6217 = vst [vmem:[#allocation122_spill] sm:$0xff] %v4594_v34  ;;  %v4614_v12 = vmul.f32 %v4463_v60, %v3984_v15  ;;  %v4618_v34 = vmul.f32 %v4463_v60, %v4324_v43  ;;  %v4636_v60 = vmul.f32 %v4469_v59, %v4324_v43 }
 0x50a   : > { %6218 = vst [vmem:[#allocation123_spill] sm:$0xff] %v4602_v58  ;;  %6220 = vst [vmem:[#allocation125_spill] sm:$0xff] %v4622_v36  ;;  %v4626_v58 = vmul.f32 %v4466_v7, %v4324_v43  ;;  %1938 = vrot.lane.b32.xlu1 %v1930_v28, %s6215_s2  ;;  %1936 = vrot.lane.b32.xlu0 %v1929_v55, %s6215_s2  ;;  %v1751_v36 = vstv %s4540_s1  ;;  %v4649_v55 = vmul.f32 %v4469_v59, %v3984_v15  ;;  %s3250_s1 = sld [smem:[#allocation6 + $0x5a]] }
 0x50b   : > { %6219 = vst [vmem:[#allocation124_spill] sm:$0xff] %v4618_v34  ;;  %6222 = vst [vmem:[#allocation127_spill] sm:$0xff] %v4632_v39  ;;  %v4640_v34 = vmul.f32 %v4466_v7, %v4336_v35  ;;  %v4653_v28 = vmul.f32 %v4472_v6, %v3984_v15  ;;  %v4657_v39 = vmul.f32 %v4472_v6, %v4324_v43 }
 0x50c   : > { %6221 = vst [vmem:[#allocation126_spill] sm:$0xff] %v4626_v58  ;;  %6223 = vst [vmem:[#allocation128_spill] sm:$0xff] %v4636_v60  ;;  %v4645_v58 = vmul.f32 %v4469_v59, %v4336_v35  ;;  %v4659_v60 = vpop.permute.xlu1 %1487  ;;  %v4661_v7 = vpop.permute.xlu0 %1469  ;;  %v4669_v59 = vmul.f32 %v4478_v45, %v4324_v43 }
 0x50d   : > { %6225 = vst [vmem:[#allocation130_spill] sm:$0xff] %v4649_v55  ;;  %6226 = vst [vmem:[#allocation131_spill] sm:$0xff] %v4653_v28  ;;  %v4673_v28 = vmul.f32 %v4472_v6, %v4336_v35  ;;  %v4689_v55 = vmul.f32 %v4483_v42, %v4324_v43  ;;  %v4693_v6 = vmul.f32 %v4486_v37, %v4324_v43 }
 0x50e   : > { %6224 = vst [vmem:[#allocation129_spill] sm:$0xff] %v4645_v58  ;;  %6227 = vst [vmem:[#allocation132_spill] sm:$0xff] %v4657_v39  ;;  %v4665_v58 = vmul.f32 %v4475_v44, %v4324_v43  ;;  %v4677_v39 = vmul.f32 %v4478_v45, %v4336_v35  ;;  %1956 = vrot.lane.b32.xlu1 %v1949_v14, %s6215_s2  ;;  %1954 = vrot.lane.b32.xlu0 %v1948_v13, %s6215_s2  ;;  %v6241_v14 = vstv %s4446_s21  ;;  %s3249_s21 = sld [smem:[#allocation6 + $0x59]] }
 0x50f   : > { %6228 = vst [vmem:[#allocation133_spill] sm:$0xff] %v4659_v60  ;;  %6230 = vst [vmem:[#allocation135_spill] sm:$0xff] %v4669_v59  ;;  %v4681_v60 = vmul.f32 %v4478_v45, %v3984_v15  ;;  %v4699_v45 = vmul.f32 %v4501_v22, %v4324_v43  ;;  %v6242_v13 = vmov %v6241_v14  ;;  %v4755_v59 = vmul.f32 %v1751_v36, %v4324_v43 }
 0x510   : > { %6229 = vst [vmem:[#allocation134_spill] sm:$0xff] %v4665_v58  ;;  %6231 = vst [vmem:[#allocation136_spill] sm:$0xff] %v4673_v28  ;;  %v4685_v58 = vmul.f32 %v4483_v42, %v3984_v15  ;;  %v4752_v28 = vmul.f32 %v4475_v44, %v3984_v15 }
 0x511   : > { %6232 = vst [vmem:[#allocation137_spill] sm:$0xff] %v4677_v39  ;;  %6233 = vst [vmem:[#allocation138_spill] sm:$0xff] %v4681_v60  ;;  %v4716_v60 = vmul.f32 %v6241_v14, %v4324_v43  ;;  %v4721_v39 = vmul.f32 %v6242_v13, %v3984_v15  ;;  %v4738_v14 = vmul.f32 %v1735_v21, %v4336_v35 }
 0x512   : > { %6234 = vst [vmem:[#allocation139_spill] sm:$0xff] %v4685_v58  ;;  %6235 = vst [vmem:[#allocation140_spill] sm:$0xff] %v4689_v55  ;;  %v4703_v58 = vmul.f32 %v4483_v42, %v4336_v35  ;;  %v4707_v55 = vmul.f32 %v4501_v22, %v4336_v35  ;;  %v4725_v42 = vmul.f32 %v3986_v16, %v4336_v35  ;;  %1976 = vrot.lane.b32.xlu1 %v1970_v5, %s6215_s2 }
 0x513   : > { %6236 = vst [vmem:[#allocation141_spill] sm:$0xff] %v4693_v6  ;;  %6237 = vst [vmem:[#allocation142_spill] sm:$0xff] %v4699_v45  ;;  %v4711_v6 = vmul.f32 %v4501_v22, %v3984_v15  ;;  %v4729_v45 = vpop.permute.xlu0 %1489  ;;  %v4735_v22 = vmul.f32 %v1735_v21, %v3984_v15  ;;  %v4742_v13 = vmul.f32 %v4475_v44, %v4336_v35  ;;  %1958 = vrot.lane.b32.xlu0 %v1950_v63, %s6215_s2 }
 0x514   : > { %6238 = vst [vmem:[#allocation143_spill] sm:$0xff] %v4703_v58  ;;  %6239 = vst [vmem:[#allocation144_spill] sm:$0xff] %v4707_v55  ;;  %v4727_v58 = vpop.permute.xlu1 %1491  ;;  %v4732_v55 = vmul.f32 %v1735_v21, %v4324_v43  ;;  %v817_v16 = vsel %vm816_vm8, %v4054_v27, %v4052_v25  ;;  %v837_v21 = vsel %vm816_vm8, %v4060_v46, %v4070_v50  ;;  %v6289_v43 = vld [vmem:[#allocation107_spill] sm:$0xff] }
 0x515   : > { %6240 = vst [vmem:[#allocation145_spill] sm:$0xff] %v4711_v6  ;;  %6243 = vst [vmem:[#allocation146_spill] sm:$0xff] %v4742_v13  ;;  %v818_v6 = vsel %vm816_vm8, %v4052_v25, %v4062_v47  ;;  %v838_v13 = vsel %vm816_vm8, %v4070_v50, %v4068_v49  ;;  %v4766_v25 = vmul.f32 %v1751_v36, %v3984_v15 }
 0x516   : > { %v859_v44 = vsel %vm816_vm8, %v4078_v4, %v4076_v52  ;;  %v4772_v27 = vmul.f32 %v1751_v36, %v4336_v35  ;;  %v4776_v46 = vmul.f32 %v4486_v37, %v4336_v35  ;;  %v4780_v47 = vmul.f32 %v4486_v37, %v3984_v15  ;;  %1980 = vrot.lane.b32.xlu1 %v4579_v26, %s6215_s2  ;;  %v6249_v26 = vld [vmem:[#allocation40_spill] sm:$0xff] }
 0x517   : > { %v821_v50 = vadd.f32 %v817_v16, %v4491_v32  ;;  %v822_v5 = vadd.f32 %v818_v6, %v4494_v56  ;;  %v860_v63 = vsel %vm816_vm8, %v4076_v52, %v4086_v62  ;;  %v881_v4 = vsel %vm816_vm8, %v4084_v61, %v4094_v1  ;;  %v4792_v35 = vpop.permute.xlu0 %1509  ;;  %1978 = vrot.lane.b32.xlu0 %v4582_v17, %s6215_s2  ;;  %v6250_v17 = vld [vmem:[#allocation112_spill] sm:$0xff] }
 0x518   : > { %6244 = vst [vmem:[#allocation147_spill] sm:$0xff] %v4776_v46  ;;  %6245 = vst [vmem:[#allocation148_spill] sm:$0xff] %v4780_v47  ;;  %v4790_v36 = vpop.permute.xlu1 %1511  ;;  %v844_v37 = vadd.f32 %v4068_v49, %v4498_v57  ;;  %v842_v15 = vadd.f32 %v837_v21, %v4505_v33  ;;  %v843_v32 = vadd.f32 %v838_v13, %v3939_v40  ;;  %v6246_v33 = vld [vmem:[#allocation111_spill] sm:$0xff]  ;;  %v6252_v21 = vld [vmem:[#allocation42_spill] sm:$0xff] }
 0x519   : > { %v882_v56 = vsel %vm816_vm8, %v4094_v1, %v4092_v0  ;;  %v864_v52 = vadd.f32 %v859_v44, %v4508_v11  ;;  %v866_v61 = vadd.f32 %v4086_v62, %v4520_v2  ;;  %v903_v6 = vsel %vm816_vm8, %v4102_v19, %v4100_v18  ;;  %v6247_v11 = vld [vmem:[#allocation41_spill] sm:$0xff] }
 0x51a   : > { %v865_v57 = vadd.f32 %v860_v63, %v4517_v51  ;;  %v888_v40 = vadd.f32 %v4092_v0, %v4523_v29  ;;  %v886_v49 = vadd.f32 %v881_v4, %v4526_v23  ;;  %v904_v62 = vsel %vm816_vm8, %v4100_v18, %v4110_v30  ;;  %v6248_v29 = vld [vmem:[#allocation43_spill] sm:$0xff]  ;;  %2000 = vrot.lane.b32.xlu1 %v4586_v48, %s6215_s2  ;;  %v6255_v4 = vld [vmem:[#allocation116_spill] sm:$0xff]  ;;  %v6272_v46 = vld [vmem:[#allocation57_spill] sm:$0xff] }
 0x51b   : > { %v887_v1 = vadd.f32 %v882_v56, %v4529_v3  ;;  %v925_v19 = vsel %vm816_vm8, %v4108_v24, %v4118_v9  ;;  %v926_v2 = vsel %vm816_vm8, %v4118_v9, %v4116_v8  ;;  %v947_v0 = vsel %vm816_vm8, %v4126_v54, %v4124_v53  ;;  %v4830_v23 = vpop.permute.xlu0 %1513  ;;  %v6251_v54 = vld [vmem:[#allocation113_spill] sm:$0xff]  ;;  %1998 = vrot.lane.b32.xlu0 %v4590_v10, %s6215_s2  ;;  %v6260_v48 = vld [vmem:[#allocation47_spill] sm:$0xff] }
 0x51c   : > { %v4828_v51 = vpop.permute.xlu1 %1531  ;;  %v908_v18 = vadd.f32 %v903_v6, %v6246_v33  ;;  %v910_v3 = vadd.f32 %v4110_v30, %v4543_v31  ;;  %v948_v24 = vsel %vm816_vm8, %v4124_v53, %v6247_v11  ;;  %v970_v9 = vsel %vm969_vm9, %v6249_v26, %v6248_v29  ;;  %v6253_v30 = vld [vmem:[#allocation114_spill] sm:$0xff]  ;;  %v6254_v31 = vld [vmem:[#allocation115_spill] sm:$0xff]  ;;  %v6256_v6 = vld [vmem:[#allocation44_spill] sm:$0xff] }
 0x51d   : > { %v909_v13 = vadd.f32 %v904_v62, %v6250_v17  ;;  %v932_v16 = vadd.f32 %v4116_v8, %v6251_v54  ;;  %v971_v44 = vsel %vm969_vm9, %v6248_v29, %v6252_v21  ;;  %v930_v53 = vadd.f32 %v925_v19, %v6253_v30  ;;  %v6257_v62 = vld [vmem:[#allocation45_spill] sm:$0xff]  ;;  %v6259_v29 = vld [vmem:[#allocation120_spill] sm:$0xff]  ;;  %v6262_v30 = vld [vmem:[#allocation46_spill] sm:$0xff] }
 0x51e   : > { %v931_v63 = vadd.f32 %v926_v2, %v6254_v31  ;;  %v952_v56 = vadd.f32 %v947_v0, %v6255_v4  ;;  %v990_v8 = vsel %vm969_vm9, %v6257_v62, %v6256_v6  ;;  %v6258_v33 = vld [vmem:[#allocation117_spill] sm:$0xff]  ;;  %v954_v17 = vadd.f32 %v6247_v11, %v6259_v29  ;;  %v6263_v4 = vld [vmem:[#allocation48_spill] sm:$0xff]  ;;  %v6264_v62 = vld [vmem:[#allocation50_spill] sm:$0xff]  ;;  %2020 = vrot.lane.b32.xlu1 %v4598_v38, %s6215_s2 }
 0x51f   : > { %v953_v26 = vadd.f32 %v948_v24, %v6258_v33  ;;  %v974_v54 = vadd.f32 %v970_v9, %v821_v50  ;;  %v991_v10 = vsel %vm969_vm9, %v6256_v6, %v6260_v48  ;;  %v4865_v19 = vpop.permute.xlu0 %1533  ;;  %v975_v2 = vadd.f32 %v971_v44, %v822_v5  ;;  %v6261_v0 = vld [vmem:[#allocation49_spill] sm:$0xff]  ;;  %v6265_v11 = vld [vmem:[#allocation51_spill] sm:$0xff]  ;;  %v6271_v38 = vld [vmem:[#allocation56_spill] sm:$0xff] }
 0x520   : > { %v4863_v21 = vpop.permute.xlu1 %1535  ;;  %v1012_v31 = vsel %vm969_vm9, %v6262_v30, %v6261_v0  ;;  %v1013_v24 = vsel %vm969_vm9, %v6261_v0, %v6263_v4  ;;  %v1034_v50 = vsel %vm969_vm9, %v6265_v11, %v6264_v62  ;;  %v995_v9 = vadd.f32 %v990_v8, %v842_v15  ;;  %v6266_v33 = vld [vmem:[#allocation53_spill] sm:$0xff]  ;;  %v6267_v44 = vld [vmem:[#allocation123_spill] sm:$0xff]  ;;  %v6269_v15 = vld [vmem:[#allocation52_spill] sm:$0xff] }
 0x521   : > { %v4877_v6 = vadd.f32 %v6260_v48, %v844_v37  ;;  %v1035_v5 = vsel %vm969_vm9, %v6264_v62, %v6266_v33  ;;  %2002 = vrot.lane.b32.xlu0 %v6267_v44, %s6215_s2  ;;  %v996_v29 = vadd.f32 %v991_v10, %v843_v32  ;;  %v4887_v0 = vadd.f32 %v6263_v4, %v866_v61  ;;  %v6268_v30 = vld [vmem:[#allocation55_spill] sm:$0xff]  ;;  %v6270_v8 = vld [vmem:[#allocation54_spill] sm:$0xff] }
 0x522   : > { %v1056_v37 = vsel %vm969_vm9, %v6269_v15, %v6268_v30  ;;  %v1057_v48 = vsel %vm969_vm9, %v6268_v30, %v6270_v8  ;;  %v1017_v62 = vadd.f32 %v1012_v31, %v864_v52  ;;  %v4895_v11 = vadd.f32 %v1013_v24, %v865_v57  ;;  %v6275_v15 = vld [vmem:[#allocation62_spill] sm:$0xff]  ;;  %v6276_v30 = vld [vmem:[#allocation63_spill] sm:$0xff]  ;;  %v6277_v57 = vld [vmem:[#allocation65_spill] sm:$0xff]  ;;  %2024 = vrot.lane.b32.xlu1 %v4606_v20, %s6215_s2 }
 0x523   : > { %v4897_v47 = vadd.f32 %v1034_v50, %v886_v49  ;;  %v1078_v32 = vsel %vm969_vm9, %v6272_v46, %v6271_v38  ;;  %v4904_v61 = vpop.permute.xlu0 %1553  ;;  %v4906_v4 = vadd.f32 %v1035_v5, %v887_v1  ;;  %v4909_v44 = vadd.f32 %v6266_v33, %v888_v40  ;;  %v6278_v1 = vld [vmem:[#allocation59_spill] sm:$0xff]  ;;  %v6279_v33 = vld [vmem:[#allocation85_spill] sm:$0xff]  ;;  %v6281_v5 = vld [vmem:[#allocation84_spill] sm:$0xff] }
 0x524   : > { %v4902_v10 = vpop.permute.xlu1 %1555  ;;  %6274 = vst [vmem:[#allocation41_spill] sm:$0xff] %v4904_v61  ;;  %v1123_v52 = vsel %vm1122_vm10, %v6276_v30, %v6275_v15  ;;  %v1124_v49 = vsel %vm1122_vm10, %v6275_v15, %v6277_v57  ;;  %v4918_v31 = vadd.f32 %v6270_v8, %v910_v3  ;;  %v4920_v46 = vadd.f32 %v1056_v37, %v908_v18  ;;  %v6280_v3 = vld [vmem:[#allocation82_spill] sm:$0xff]  ;;  %v6282_v37 = vld [vmem:[#allocation61_spill] sm:$0xff]  ;;  %v6286_v57 = vld [vmem:[#allocation67_spill] sm:$0xff] }
 0x525   : > { %6273 = vst [vmem:[#allocation111_spill] sm:$0xff] %v4902_v10  ;;  %v4922_v24 = vadd.f32 %v1057_v48, %v909_v13  ;;  %2022 = vrot.lane.b32.xlu0 %v4610_v41, %s6215_s2  ;;  %v4928_v40 = vadd.f32 %v1078_v32, %v930_v53  ;;  %v1079_v50 = vsel %vm969_vm9, %v6271_v38, %v6278_v1  ;;  %v6283_v8 = vld [vmem:[#allocation58_spill] sm:$0xff]  ;;  %v6284_v48 = vld [vmem:[#allocation60_spill] sm:$0xff] }
 0x526   : > { %v1276_v18 = vsel %vm1275_vm11, %v6280_v3, %v6279_v33  ;;  %v1277_v13 = vsel %vm1275_vm11, %v6279_v33, %v6281_v5  ;;  %v1100_v20 = vsel %vm969_vm9, %v6283_v8, %v6282_v37  ;;  %v1101_v41 = vsel %vm969_vm9, %v6282_v37, %v6284_v48  ;;  %v6287_v3 = vld [vmem:[#allocation64_spill] sm:$0xff]  ;;  %v6288_v5 = vld [vmem:[#allocation106_spill] sm:$0xff]  ;;  %2044 = vrot.lane.b32.xlu1 %v4614_v12, %s6215_s2 }
 0x527   : > { %v1127_v53 = vadd.f32 %v1123_v52, %v974_v54  ;;  %v1128_v32 = vadd.f32 %v1124_v49, %v975_v2  ;;  %v4945_v38 = vpop.permute.xlu0 %1557  ;;  %v4948_v30 = vadd.f32 %v6278_v1, %v932_v16  ;;  %v1143_v33 = vsel %vm1122_vm10, %v6287_v3, %v6286_v57  ;;  %v6290_v61 = vld [vmem:[#allocation110_spill] sm:$0xff]  ;;  %v6291_v16 = vld [vmem:[#allocation124_spill] sm:$0xff] }
 0x528   : > { %v1576_v15 = vpop.permute.xlu1 %1575  ;;  %6285 = vst [vmem:[#allocation43_spill] sm:$0xff] %v4945_v38  ;;  %v1429_v8 = vsel %vm1428_vm12, %v6289_v43, %v6288_v5  ;;  %v1430_v37 = vsel %vm1428_vm12, %v6288_v5, %v6290_v61  ;;  %v4959_v54 = vadd.f32 %v1079_v50, %v931_v63  ;;  %v4966_v49 = vadd.f32 %v6284_v48, %v954_v17  ;;  %v6292_v3 = vld [vmem:[#allocation86_spill] sm:$0xff]  ;;  %v6293_v61 = vld [vmem:[#allocation87_spill] sm:$0xff]  ;;  %v6296_v17 = vld [vmem:[#allocation69_spill] sm:$0xff] }
 0x529   : > { %v1280_v2 = vadd.f32 %v1276_v18, %v1127_v53  ;;  %v1281_v52 = vadd.f32 %v1277_v13, %v1128_v32  ;;  %2042 = vrot.lane.b32.xlu0 %v6291_v16, %s6215_s2  ;;  %v4968_v1 = vadd.f32 %v1100_v20, %v952_v56  ;;  %v4970_v43 = vadd.f32 %v1101_v41, %v953_v26  ;;  %v6294_v50 = vld [vmem:[#allocation66_spill] sm:$0xff]  ;;  %v6295_v16 = vld [vmem:[#allocation68_spill] sm:$0xff]  ;;  %v6297_v20 = vld [vmem:[#allocation119_spill] sm:$0xff] }
 0x52a   : > { %v1296_v63 = vsel %vm1275_vm11, %v6293_v61, %v6292_v3  ;;  %v1144_v18 = vsel %vm1122_vm10, %v6286_v57, %v6294_v50  ;;  %v1148_v12 = vadd.f32 %v1143_v33, %v995_v9  ;;  %v1165_v56 = vsel %vm1122_vm10, %v6296_v17, %v6295_v16  ;;  %v6298_v26 = vld [vmem:[#allocation109_spill] sm:$0xff]  ;;  %v6301_v33 = vld [vmem:[#allocation126_spill] sm:$0xff] }
 0x52b   : > { %v1433_v13 = vadd.f32 %v1429_v8, %v1280_v2  ;;  %v1434_v53 = vadd.f32 %v1430_v37, %v1281_v52  ;;  %v1578_v5 = vpop.permute.xlu0 %1577  ;;  %v1449_v48 = vsel %vm1428_vm12, %v6298_v26, %v6297_v20  ;;  %v6300_v9 = vld [vmem:[#allocation125_spill] sm:$0xff]  ;;  %v1150_v8 = vadd.f32 %v6294_v50, %v4877_v6  ;;  %v6302_v2 = vld [vmem:[#allocation71_spill] sm:$0xff]  ;;  %v6304_v50 = vld [vmem:[#allocation118_spill] sm:$0xff] }
 0x52c   : > { %v1580_v32 = vpop.permute.xlu1 %1579  ;;  %v1582_v41 = vsel %vm1581_vm13, %v1576_v15, %v1578_v5  ;;  %v1301_v38 = vadd.f32 %v1296_v63, %v1148_v12  ;;  %2088 = vrot.lane.b32.xlu1 %v6300_v9, %s6299_s3  ;;  %v1149_v37 = vadd.f32 %v1144_v18, %v996_v29  ;;  %v1166_v52 = vsel %vm1122_vm10, %v6295_v16, %v6302_v2  ;;  %v6303_v15 = vld [vmem:[#allocation90_spill] sm:$0xff]  ;;  %v6309_v26 = vld [vmem:[#allocation89_spill] sm:$0xff] }
 0x52d   : > { %v1583_v61 = vsel %vm1581_vm13, %v1578_v5, %v1580_v32  ;;  %v1586_v10 = vadd.f32 %v1582_v41, %v1433_v13  ;;  %2086 = vrot.lane.b32.xlu0 %v6301_v33, %s6299_s3  ;;  %v1297_v63 = vsel %vm1275_vm11, %v6292_v3, %v6303_v15  ;;  %v1170_v12 = vadd.f32 %v1165_v56, %v1017_v62  ;;  %v6308_v56 = vld [vmem:[#allocation93_spill] sm:$0xff]  ;;  %v6312_v33 = vld [vmem:[#allocation127_spill] sm:$0xff] }
 0x52e   : > { %v1587_v57 = vadd.f32 %v1583_v61, %v1434_v53  ;;  %v1454_v13 = vadd.f32 %v1449_v48, %v1301_v38  ;;  %v1172_v6 = vadd.f32 %v6302_v2, %v4887_v0  ;;  %v1303_v29 = vadd.f32 %v6303_v15, %v1150_v8  ;;  %v6307_v0 = vld [vmem:[#allocation70_spill] sm:$0xff]  ;;  %v6310_v48 = vld [vmem:[#allocation92_spill] sm:$0xff] }
 0x52f   : > { %v1597_v32 = vpop.permute.xlu0 %1596  ;;  %v4999_v5 = vadd.f32 %v4716_v60, %v1586_v10  ;;  %v1450_v18 = vsel %vm1428_vm12, %v6297_v20, %v6304_v50  ;;  %v1171_v38 = vadd.f32 %v1166_v52, %v4895_v11  ;;  %v1302_v3 = vadd.f32 %v1297_v63, %v1149_v37  ;;  %v6305_v60 = vld [vmem:[#allocation128_spill] sm:$0xff]  ;;  %v6313_v52 = vld [vmem:[#allocation121_spill] sm:$0xff]  ;;  %v6314_v15 = vld [vmem:[#allocation122_spill] sm:$0xff] }
 0x530   : > { %v1599_v53 = vpop.permute.xlu1 %1598  ;;  %v5002_v17 = vadd.f32 %v4721_v39, %v1587_v57  ;;  %2106 = vrot.lane.b32.xlu1 %v6305_v60, %s6299_s3  ;;  %v6306_v39 = vld [vmem:[#allocation73_spill] sm:$0xff]  ;;  %v1318_v20 = vsel %vm1275_vm11, %v6309_v26, %v6308_v56  ;;  %v1319_v11 = vsel %vm1275_vm11, %v6308_v56, %v6310_v48  ;;  %v1456_v41 = vadd.f32 %v6304_v50, %v1303_v29  ;;  %v6311_v61 = vld [vmem:[#allocation72_spill] sm:$0xff]  ;;  %v6317_v60 = vld [vmem:[#allocation94_spill] sm:$0xff] }
 0x531   : > { %v1602_v62 = vsel %vm1581_vm13, %v1597_v32, %v1599_v53  ;;  %2090 = vrot.lane.b32.xlu0 %v4640_v34, %s6299_s3  ;;  %v1187_v10 = vsel %vm1122_vm10, %v6307_v0, %v6306_v39  ;;  %v1188_v57 = vsel %vm1122_vm10, %v6306_v39, %v6311_v61  ;;  %v1325_v34 = vadd.f32 %v6310_v48, %v1172_v6  ;;  %v6318_v39 = vld [vmem:[#allocation95_spill] sm:$0xff] }
 0x532   : > { %v1607_v16 = vadd.f32 %v1602_v62, %v1454_v13  ;;  %v1455_v9 = vadd.f32 %v1450_v18, %v1302_v3  ;;  %v1471_v63 = vsel %vm1428_vm12, %v6314_v15, %v6313_v52  ;;  %v1472_v13 = vsel %vm1428_vm12, %v6313_v52, %v4661_v7  ;;  %v6315_v18 = vld [vmem:[#allocation129_spill] sm:$0xff]  ;;  %v6316_v3 = vld [vmem:[#allocation130_spill] sm:$0xff] }
 0x533   : > { %v1601_v2 = vpop.permute.xlu0 %1600  ;;  %v1323_v50 = vadd.f32 %v1318_v20, %v1170_v12  ;;  %v1324_v62 = vadd.f32 %v1319_v11, %v1171_v38  ;;  %v1340_v0 = vsel %vm1275_vm11, %v6318_v39, %v6317_v60  ;;  %v1478_v56 = vadd.f32 %v4661_v7, %v1325_v34  ;;  %v6320_v12 = vld [vmem:[#allocation74_spill] sm:$0xff]  ;;  %v6321_v38 = vld [vmem:[#allocation75_spill] sm:$0xff] }
 0x534   : > { %v5031_v8 = vadd.f32 %v6312_v33, %v1607_v16  ;;  %v1619_v37 = vpop.permute.xlu1 %1618  ;;  %v1603_v32 = vsel %vm1581_vm13, %v1599_v53, %v1601_v2  ;;  %v1609_v29 = vadd.f32 %v1601_v2, %v1456_v41  ;;  %2110 = vrot.lane.b32.xlu1 %v6315_v18, %s6299_s3  ;;  %v1192_v16 = vadd.f32 %v1187_v10, %v4897_v47  ;;  %v6323_v47 = vld [vmem:[#allocation133_spill] sm:$0xff] }
 0x535   : > { %v1608_v6 = vadd.f32 %v1603_v32, %v1455_v9  ;;  %2108 = vrot.lane.b32.xlu0 %v6316_v3, %s6299_s3  ;;  %v1209_v26 = vsel %vm1122_vm10, %v6321_v38, %v6320_v12  ;;  %v1476_v20 = vadd.f32 %v1471_v63, %v1323_v50  ;;  %v1477_v48 = vadd.f32 %v1472_v13, %v1324_v62  ;;  %v6322_v9 = vld [vmem:[#allocation39_spill] sm:$0xff]  ;;  %v6326_v13 = vld [vmem:[#allocation132_spill] sm:$0xff]  ;;  %v6327_v50 = vld [vmem:[#allocation97_spill] sm:$0xff] }
 0x536   : > { %v5050_v53 = vadd.f32 %v4725_v42, %v1609_v29  ;;  %v1493_v10 = vsel %vm1428_vm12, %v6323_v47, %v4729_v45  ;;  %v1345_v34 = vadd.f32 %v1340_v0, %v1192_v16  ;;  %v6325_v63 = vld [vmem:[#allocation131_spill] sm:$0xff]  ;;  %v1194_v32 = vadd.f32 %v6311_v61, %v4909_v44 }
 0x537   : > { %v1621_v41 = vpop.permute.xlu0 %1620  ;;  %v5056_v33 = vadd.f32 %v6322_v9, %v1608_v6  ;;  %v1193_v29 = vadd.f32 %v1188_v57, %v4906_v4  ;;  %v6329_v6 = vld [vmem:[#allocation77_spill] sm:$0xff]  ;;  %v1214_v4 = vadd.f32 %v1209_v26, %v4920_v46  ;;  %v6332_v38 = vld [vmem:[#allocation99_spill] sm:$0xff]  ;;  %v6333_v26 = vld [vmem:[#allocation96_spill] sm:$0xff] }
 0x538   : > { %6319 = vst [vmem:[#allocation40_spill] sm:$0xff] %v5050_v53  ;;  %v1623_v11 = vpop.permute.xlu1 %1622  ;;  %v1624_v7 = vsel %vm1581_vm13, %v1619_v37, %v1621_v41  ;;  %2240 = vrot.lane.b32.xlu1 %v6325_v63, %s6324_s4  ;;  %v1341_v37 = vsel %vm1275_vm11, %v6317_v60, %v6327_v50  ;;  %v1210_v18 = vsel %vm1122_vm10, %v6320_v12, %v6329_v6 }
 0x539   : > { %v1631_v2 = vadd.f32 %v1623_v11, %v1478_v56  ;;  %v1625_v42 = vsel %vm1581_vm13, %v1621_v41, %v1623_v11  ;;  %v1629_v52 = vadd.f32 %v1624_v7, %v1476_v20  ;;  %2238 = vrot.lane.b32.xlu0 %v6326_v13, %s6324_s4  ;;  %v1498_v3 = vadd.f32 %v1493_v10, %v1345_v34  ;;  %v6334_v20 = vld [vmem:[#allocation98_spill] sm:$0xff]  ;;  %v6335_v11 = vld [vmem:[#allocation79_spill] sm:$0xff]  ;;  %v6336_v41 = vld [vmem:[#allocation76_spill] sm:$0xff] }
 0x53a   : > { %v1630_v15 = vadd.f32 %v1625_v42, %v1477_v48  ;;  %v1347_v61 = vadd.f32 %v6327_v50, %v1194_v32  ;;  %v1216_v60 = vadd.f32 %v6329_v6, %v4918_v31  ;;  %v1346_v56 = vadd.f32 %v1341_v37, %v1193_v29  ;;  %v6339_v29 = vld [vmem:[#allocation137_spill] sm:$0xff]  ;;  %v6340_v50 = vld [vmem:[#allocation138_spill] sm:$0xff]  ;;  %v6342_v6 = vld [vmem:[#allocation100_spill] sm:$0xff] }
 0x53b   : > { %v5074_v62 = vadd.f32 %v4738_v14, %v1631_v2  ;;  %v1641_v39 = vpop.permute.xlu0 %1640  ;;  %v5080_v0 = vadd.f32 %v4732_v55, %v1629_v52  ;;  %v1494_v14 = vsel %vm1428_vm12, %v4729_v45, %v4727_v58  ;;  %v6330_v55 = vld [vmem:[#allocation135_spill] sm:$0xff]  ;;  %v1215_v46 = vadd.f32 %v1210_v18, %v4922_v24  ;;  %v6337_v2 = vld [vmem:[#allocation134_spill] sm:$0xff] }
 0x53c   : > { %v1643_v16 = vpop.permute.xlu1 %1642  ;;  %v5083_v44 = vadd.f32 %v4735_v22, %v1630_v15  ;;  %2128 = vrot.lane.b32.xlu1 %v6330_v55, %s6299_s3  ;;  %v6331_v22 = vld [vmem:[#allocation136_spill] sm:$0xff]  ;;  %v1362_v45 = vsel %vm1275_vm11, %v6333_v26, %v6332_v38  ;;  %v1363_v31 = vsel %vm1275_vm11, %v6332_v38, %v6334_v20  ;;  %v1500_v48 = vadd.f32 %v4727_v58, %v1347_v61  ;;  %v6341_v37 = vld [vmem:[#allocation78_spill] sm:$0xff] }
 0x53d   : > { %6328 = vst [vmem:[#allocation112_spill] sm:$0xff] %v5074_v62  ;;  %v1646_v57 = vsel %vm1581_vm13, %v1641_v39, %v1643_v16  ;;  %2242 = vrot.lane.b32.xlu0 %v6331_v22, %s6324_s4  ;;  %v1231_v9 = vsel %vm1122_vm10, %v6336_v41, %v6335_v11  ;;  %v1369_v47 = vadd.f32 %v6334_v20, %v1216_v60  ;;  %v6350_v41 = vld [vmem:[#allocation80_spill] sm:$0xff]  ;;  %v2621_v62 = vstv %s3255_s0  ;;  %s3271_s0 = sshll.u32 %s3631_s9, 10  ;;  %s3032_s9 = scalar_lea.sflag [#allocation4], %s3748_s24 }
 0x53e   : > { %v1651_v12 = vadd.f32 %v1646_v57, %v1498_v3  ;;  %v1499_v10 = vadd.f32 %v1494_v14, %v1346_v56  ;;  %v1515_v34 = vsel %vm1428_vm12, %v4792_v35, %v4790_v36  ;;  %v1516_v58 = vsel %vm1428_vm12, %v4790_v36, %v4830_v23  ;;  %v6343_v36 = vld [vmem:[#allocation101_spill] sm:$0xff] }
 0x53f   : > { %v1645_v42 = vpop.permute.xlu0 %1644  ;;  %v1367_v63 = vadd.f32 %v1362_v45, %v1214_v4  ;;  %v1368_v13 = vadd.f32 %v1363_v31, %v1215_v46  ;;  %v1232_v35 = vsel %vm1122_vm10, %v6335_v11, %v6341_v37  ;;  %v1384_v18 = vsel %vm1275_vm11, %v6343_v36, %v6342_v6  ;;  %v6348_v45 = vld [vmem:[#allocation140_spill] sm:$0xff]  ;;  %v6349_v31 = vld [vmem:[#allocation103_spill] sm:$0xff] }
 0x540   : > { %v5112_v7 = vadd.f32 %v6337_v2, %v1651_v12  ;;  %v1663_v24 = vpop.permute.xlu1 %1662  ;;  %v1647_v52 = vsel %vm1581_vm13, %v1643_v16, %v1645_v42  ;;  %v1653_v15 = vadd.f32 %v1645_v42, %v1500_v48  ;;  %2132 = vrot.lane.b32.xlu1 %v6339_v29, %s6299_s3  ;;  %v1522_v3 = vadd.f32 %v4830_v23, %v1369_v47  ;;  %v6344_v16 = vld [vmem:[#allocation146_spill] sm:$0xff] }
 0x541   : > { %v1652_v32 = vadd.f32 %v1647_v52, %v1499_v10  ;;  %2130 = vrot.lane.b32.xlu0 %v6340_v50, %s6299_s3  ;;  %v1236_v4 = vadd.f32 %v1231_v9, %v4928_v40  ;;  %v1520_v61 = vadd.f32 %v1515_v34, %v1367_v63  ;;  %v1521_v14 = vadd.f32 %v1516_v58, %v1368_v13  ;;  %v6347_v40 = vld [vmem:[#allocation139_spill] sm:$0xff]  ;;  %v6351_v9 = vld [vmem:[#allocation81_spill] sm:$0xff] }
 0x542   : > { %6338 = vst [vmem:[#allocation113_spill] sm:$0xff] %v5112_v7  ;;  %v5135_v39 = vadd.f32 %v6344_v16, %v1653_v15  ;;  %v1537_v12 = vsel %vm1428_vm12, %v4828_v51, %v4865_v19  ;;  %v1238_v20 = vadd.f32 %v6341_v37, %v4948_v30  ;;  %v1237_v51 = vadd.f32 %v1232_v35, %v4959_v54  ;;  %v6352_v54 = vld [vmem:[#allocation83_spill] sm:$0xff]  ;;  %v6356_v50 = vld [vmem:[#allocation105_spill] sm:$0xff]  ;;  %v6357_v37 = vld [vmem:[#allocation102_spill] sm:$0xff] }
 0x543   : > { %v1665_v60 = vpop.permute.xlu0 %1664  ;;  %v5139_v56 = vadd.f32 %v4752_v28, %v1652_v32  ;;  %v1389_v46 = vadd.f32 %v1384_v18, %v1236_v4  ;;  %v5151_v28 = vstv %s5097_s28  ;;  %v1385_v48 = vsel %vm1275_vm11, %v6342_v6, %v6349_v31  ;;  %v6355_v13 = vld [vmem:[#allocation143_spill] sm:$0xff]  ;;  %v6358_v35 = vld [vmem:[#allocation104_spill] sm:$0xff]  ;;  %v6359_v16 = vld [vmem:[#allocation141_spill] sm:$0xff]  ;;  %s3257_s28 = sld [smem:[#allocation6 + $0x61]] }
 0x544   : > { %6345 = vst [vmem:[#allocation42_spill] sm:$0xff] %v5135_v39  ;;  %v1667_v57 = vpop.permute.xlu1 %1666  ;;  %v1668_v23 = vsel %vm1581_vm13, %v1663_v24, %v1665_v60  ;;  %2260 = vrot.lane.b32.xlu1 %v6347_v40, %s6324_s4  ;;  %v1253_v47 = vsel %vm1122_vm10, %v6351_v9, %v6350_v41  ;;  %v1254_v34 = vsel %vm1122_vm10, %v6350_v41, %v6352_v54  ;;  %v1767_v32 = vstv %s5125_s29  ;;  %v6369_v41 = vld [vmem:[#allocation147_spill] sm:$0xff]  ;;  %s3233_s29 = sld [smem:[#allocation6 + $0x49]] }
 0x545   : > { %6346 = vst [vmem:[#allocation114_spill] sm:$0xff] %v5139_v56  ;;  %v1675_v55 = vadd.f32 %v1667_v57, %v1522_v3  ;;  %v1669_v22 = vsel %vm1581_vm13, %v1665_v60, %v1667_v57  ;;  %v1673_v38 = vadd.f32 %v1668_v23, %v1520_v61  ;;  %2258 = vrot.lane.b32.xlu0 %v6348_v45, %s6324_s4  ;;  %v6362_v57 = vld [vmem:[#allocation41_spill] sm:$0xff]  ;;  %v6366_v45 = vld [vmem:[#allocation88_spill] sm:$0xff] }
 0x546   : > { %v1674_v26 = vadd.f32 %v1669_v22, %v1521_v14  ;;  %v1542_v10 = vadd.f32 %v1537_v12, %v1389_v46  ;;  %v1538_v58 = vsel %vm1428_vm12, %v4865_v19, %v4863_v21  ;;  %v1260_v15 = vadd.f32 %v6352_v54, %v4966_v49  ;;  %v6361_v14 = vld [vmem:[#allocation111_spill] sm:$0xff]  ;;  %v6370_v54 = vld [vmem:[#allocation148_spill] sm:$0xff] }
 0x547   : > { %v5160_v11 = vadd.f32 %v4772_v27, %v1675_v55  ;;  %v1685_v24 = vpop.permute.xlu0 %1684  ;;  %v5166_v42 = vadd.f32 %v4755_v59, %v1673_v38  ;;  %v1391_v27 = vadd.f32 %v6349_v31, %v1238_v20  ;;  %v1390_v59 = vadd.f32 %v1385_v48, %v1237_v51  ;;  %v6363_v12 = vld [vmem:[#allocation43_spill] sm:$0xff]  ;;  %v6364_v38 = vld [vmem:[#allocation144_spill] sm:$0xff] }
 0x548   : > { %v1687_v2 = vpop.permute.xlu1 %1686  ;;  %v5169_v30 = vadd.f32 %v4766_v25, %v1674_v26  ;;  %v6354_v25 = vld [vmem:[#allocation142_spill] sm:$0xff]  ;;  %v1258_v29 = vadd.f32 %v1253_v47, %v4968_v1  ;;  %v1406_v19 = vsel %vm1275_vm11, %v6357_v37, %v6356_v50  ;;  %v1407_v6 = vsel %vm1275_vm11, %v6356_v50, %v6358_v35  ;;  %v6365_v26 = vld [vmem:[#allocation145_spill] sm:$0xff]  ;;  %v6367_v51 = vld [vmem:[#allocation91_spill] sm:$0xff] }
 0x549   : > { %v1690_v52 = vsel %vm1581_vm13, %v1685_v24, %v1687_v2  ;;  %2390 = vrot.lane.b32.xlu1 %v6354_v25, %s6353_s11  ;;  %2262 = vrot.lane.b32.xlu0 %v6355_v13, %s6324_s4  ;;  %v1544_v49 = vadd.f32 %v4863_v21, %v1391_v27  ;;  %v1259_v36 = vadd.f32 %v1254_v34, %v4970_v43  ;;  %v6368_v31 = vld [vmem:[#allocation108_spill] sm:$0xff]  ;;  %v6371_v13 = vld [vmem:[#allocation38_spill] sm:$0xff] }
 0x54a   : > { %v1695_v63 = vadd.f32 %v1690_v52, %v1542_v10  ;;  %v1413_v18 = vadd.f32 %v6358_v35, %v1260_v15  ;;  %v1543_v3 = vadd.f32 %v1538_v58, %v1390_v59  ;;  %v1559_v60 = vsel %vm1428_vm12, %v6362_v57, %v6361_v14 }
 0x54b   : > { %v1689_v1 = vpop.permute.xlu0 %1688  ;;  %v1560_v55 = vsel %vm1428_vm12, %v6361_v14, %v6363_v12  ;;  %v1411_v43 = vadd.f32 %v1406_v19, %v1258_v29  ;;  %v1412_v22 = vadd.f32 %v1407_v6, %v1259_v36  ;;  %v2166_v20 = vmul.f32 %v5151_v28, %v6366_v45 }
 0x54c   : > { %v5197_v4 = vadd.f32 %v6359_v16, %v1695_v63  ;;  %v1707_v61 = vpop.permute.xlu1 %1706  ;;  %v1691_v21 = vsel %vm1581_vm13, %v1687_v2, %v1689_v1  ;;  %v1697_v23 = vadd.f32 %v1689_v1, %v1544_v49  ;;  %v1566_v40 = vadd.f32 %v6363_v12, %v1413_v18 }
 0x54d   : > { %v1696_v46 = vadd.f32 %v1691_v21, %v1543_v3  ;;  %2394 = vrot.lane.b32.xlu1 %v6364_v38, %s6353_s11  ;;  %2392 = vrot.lane.b32.xlu0 %v6365_v26, %s6353_s11  ;;  %v2038_v48 = vmul.f32 %v6368_v31, %v6367_v51  ;;  %v1564_v47 = vadd.f32 %v1559_v60, %v1411_v43  ;;  %v2273_v18 = vstv %s5206_s14  ;;  %s5460_s14 = sld [smem:[#allocation6 + $0x50]] }
 0x54e   : > { %6360 = vst [vmem:[#allocation115_spill] sm:$0xff] %v5197_v4  ;;  %v5218_v9 = vadd.f32 %v6369_v41, %v1697_v23  ;;  %v1565_v10 = vadd.f32 %v1560_v55, %v1412_v22  ;;  %v1768_v27 = vmul.f32 %v1767_v32, %v6366_v45  ;;  %v1770_v59 = vmul.f32 %v1767_v32, %v6367_v51 }
 0x54f   : > { %v1709_v24 = vpop.permute.xlu0 %1708  ;;  %v5221_v34 = vadd.f32 %v6370_v54, %v1696_v46  ;;  %v1769_v29 = vmul.f32 %v1767_v32, %v6371_v13  ;;  %v2168_v35 = vmul.f32 %v5151_v28, %v6367_v51  ;;  %v2167_v6 = vmul.f32 %v5151_v28, %v6371_v13 }
 0x550   : > { %v1711_v2 = vpop.permute.xlu1 %1710  ;;  %v1712_v52 = vsel %vm1581_vm13, %v1707_v61, %v1709_v24  ;;  %v2275_v16 = vmul.f32 %v2273_v18, %v6371_v13  ;;  %v2274_v61 = vmul.f32 %v2273_v18, %v6366_v45  ;;  %v2403_v1 = vstv %s3245_s25  ;;  %s3562_s25 = smov [#allocation9]  }
 0x551   : > { %v1719_v58 = vadd.f32 %v1711_v2, %v1566_v40  ;;  %v1713_v15 = vsel %vm1581_vm13, %v1709_v24, %v1711_v2  ;;  %v1717_v63 = vadd.f32 %v1712_v52, %v1564_v47  ;;  %2172 = vrot.lane.b32.xlu1 %v2166_v20, %s6299_s3  ;;  %2046 = vrot.lane.b32.xlu0 %v2038_v48, %s6215_s2  ;;  %v2535_v43 = vstv %s3251_s15  ;;  %s3465_s15 = sshll.u32 %s3562_s25, 4  ;;  %s3466_s15 = int_to_ptr.vmem [resolvable:$false] %s3465_s15 }
 0x552   : > { %v1718_v25 = vadd.f32 %v1713_v15, %v1565_v10  ;;  %v2404_v57 = vmul.f32 %v2403_v1, %v6366_v45  ;;  %v2276_v60 = vmul.f32 %v2273_v18, %v6367_v51  ;;  %v2406_v21 = vmul.f32 %v2403_v1, %v6367_v51 }
 0x553   : > { %v5230_v50 = vadd.f32 %v1770_v59, %v1719_v58  ;;  %v5234_v19 = vpop.permute.xlu0 %1782  ;;  %v5240_v49 = vadd.f32 %v1768_v27, %v1717_v63  ;;  %v2405_v23 = vmul.f32 %v2403_v1, %v6371_v13  ;;  %v2537_v38 = vmul.f32 %v2535_v43, %v6371_v13 }
 0x554   : > { %v5232_v37 = vpop.permute.xlu1 %1784  ;;  %v5242_v36 = vadd.f32 %v1769_v29, %v1718_v25  ;;  %v2536_v26 = vmul.f32 %v2535_v43, %v6366_v45  ;;  %v2057_v40 = vstv %s3229_s6  ;;  %v2538_v41 = vmul.f32 %v2535_v43, %v6367_v51  ;;  %s3467_s6 = scalar_lea.vmem %s3466_s15, 2048 }
 0x555   : > { %6372 = vst [vmem:[#allocation116_spill] sm:$0xff] %v5230_v50  ;;  %6373 = vst [vmem:[#allocation44_spill] sm:$0xff] %v5240_v49  ;;  %2176 = vrot.lane.b32.xlu1 %v2168_v35, %s6299_s3  ;;  %2174 = vrot.lane.b32.xlu0 %v2167_v6, %s6299_s3  ;;  %v2058_v48 = vmul.f32 %v2057_v40, %v6366_v45  ;;  %v2060_v2 = vmul.f32 %v2057_v40, %v6367_v51  ;;  %v2187_v54 = vstv %s3235_s7 }
 0x556   : > { %6374 = vst [vmem:[#allocation45_spill] sm:$0xff] %v5242_v36  ;;  %v2059_v24 = vmul.f32 %v2057_v40, %v6371_v13  ;;  %v2189_v52 = vmul.f32 %v2187_v54, %v6371_v13  ;;  %v2188_v15 = vmul.f32 %v2187_v54, %v6366_v45  ;;  %v2317_v59 = vstv %s3241_s22  ;;  %s3556_s22 = smov 6  }
 0x557   : > { %v5249_v3 = vpop.permute.xlu0 %1786  ;;  %v2318_v29 = vmul.f32 %v2317_v59, %v6366_v45  ;;  %v2190_v35 = vmul.f32 %v2187_v54, %v6367_v51  ;;  %v2425_v1 = vstv %s3246_s23  ;;  %v2555_v43 = vstv %s3252_s26  ;;  %s5540_s23 = sld [smem:[#allocation6 + $0x57]]  ;;  %s5569_s26 = sld [smem:[#allocation6 + $0x5e]] }
 0x558   : > { %v5247_v32 = vpop.permute.xlu1 %1802  ;;  %v2556_v40 = vmul.f32 %v2555_v43, %v6366_v45  ;;  %v2557_v54 = vmul.f32 %v2555_v43, %v6371_v13  ;;  %v2623_v4 = vmul.f32 %v2621_v62, %v6371_v13 }
 0x559   : > { %2282 = vrot.lane.b32.xlu1 %v2275_v16, %s6324_s4  ;;  %2280 = vrot.lane.b32.xlu0 %v2274_v61, %s6324_s4  ;;  %v2320_v16 = vmul.f32 %v2317_v59, %v6367_v51  ;;  %v2319_v61 = vmul.f32 %v2317_v59, %v6371_v13 }
 0x55b   : > { %v5257_v14 = vpop.permute.xlu0 %1804 }
 0x55c   : > { %v5255_v28 = vpop.permute.xlu1 %1806 }
 0x55d   : > { %2410 = vrot.lane.b32.xlu1 %v2404_v57, %s6353_s11  ;;  %2284 = vrot.lane.b32.xlu0 %v2276_v60, %s6324_s4 }
 0x55f   : > { %v5265_v55 = vpop.permute.xlu0 %1824 }
 0x560   : > { %v5263_v12 = vpop.permute.xlu1 %1826 }
 0x561   : > { %2414 = vrot.lane.b32.xlu1 %v2406_v21, %s6353_s11  ;;  %2412 = vrot.lane.b32.xlu0 %v2405_v23, %s6353_s11  ;;  %v2427_v21 = vmul.f32 %v2425_v1, %v6371_v13  ;;  %v2426_v23 = vmul.f32 %v2425_v1, %v6366_v45 }
 0x563   : > { %v5273_v46 = vpop.permute.xlu0 %1828 }
 0x564   : > { %v5271_v22 = vpop.permute.xlu1 %1846 }
 0x565   : > { %6375 = vst [vmem:[#allocation117_spill] sm:$0xff] %v5271_v22  ;;  %2544 = vrot.lane.b32.xlu1 %v2537_v38, %s6376_s20  ;;  %2542 = vrot.lane.b32.xlu0 %v2536_v26, %s6376_s20 }
 0x567   : > { %v5281_v31 = vpop.permute.xlu0 %1848 }
 0x568   : > { %v5279_v20 = vpop.permute.xlu1 %1850  ;;  %6378 = vst [vmem:[#allocation47_spill] sm:$0xff] %v5281_v31 }
 0x569   : > { %6377 = vst [vmem:[#allocation120_spill] sm:$0xff] %v5279_v20  ;;  %2064 = vrot.lane.b32.xlu1 %v2058_v48, %s6215_s2  ;;  %2546 = vrot.lane.b32.xlu0 %v2538_v41, %s6376_s20  ;;  %v2428_v48 = vmul.f32 %v2425_v1, %v6367_v51 }
 0x56b   : > { %v5289_v10 = vpop.permute.xlu0 %1868 }
 0x56c   : > { %v5287_v47 = vpop.permute.xlu1 %1870 }
 0x56d   : > { %2068 = vrot.lane.b32.xlu1 %v2060_v2, %s6215_s2  ;;  %2066 = vrot.lane.b32.xlu0 %v2059_v24, %s6215_s2  ;;  %v2558_v24 = vmul.f32 %v2555_v43, %v6367_v51  ;;  %s3256_s2 = sld [smem:[#allocation6 + $0x60]] }
 0x56f   : > { %v5297_v58 = vpop.permute.xlu0 %1872 }
 0x570   : > { %v5295_v27 = vpop.permute.xlu1 %1890 }
 0x571   : > { %6379 = vst [vmem:[#allocation49_spill] sm:$0xff] %v5295_v27  ;;  %2196 = vrot.lane.b32.xlu1 %v2189_v52, %s6299_s3  ;;  %2194 = vrot.lane.b32.xlu0 %v2188_v15, %s6299_s3  ;;  %v2209_v52 = vstv %s3236_s12  ;;  %s3559_s12 = smov 126  }
 0x573   : > { %v5305_v25 = vpop.permute.xlu0 %1892  ;;  %v2643_v50 = vstv %s3256_s2 }
 0x574   : > { %v5303_v63 = vpop.permute.xlu1 %1894 }
 0x575   : > { %2324 = vrot.lane.b32.xlu1 %v2318_v29, %s6324_s4  ;;  %2198 = vrot.lane.b32.xlu0 %v2190_v35, %s6299_s3  ;;  %v2211_v29 = vmul.f32 %v2209_v52, %v6371_v13  ;;  %v2210_v35 = vmul.f32 %v2209_v52, %v6366_v45 }
 0x577   : > { %v5313_v18 = vpop.permute.xlu0 %1912 }
 0x578   : > { %v5311_v6 = vpop.permute.xlu1 %1914  ;;  %6381 = vst [vmem:[#allocation48_spill] sm:$0xff] %v5313_v18 }
 0x579   : > { %6380 = vst [vmem:[#allocation46_spill] sm:$0xff] %v5311_v6  ;;  %2328 = vrot.lane.b32.xlu1 %v2320_v16, %s6324_s4  ;;  %2326 = vrot.lane.b32.xlu0 %v2319_v61, %s6324_s4  ;;  %v2339_v16 = vstv %s3242_s16  ;;  %s3560_s16 = smov 125  }
 0x57b   : > { %v5321_v60 = vpop.permute.xlu0 %1916 }
 0x57c   : > { %v5319_v57 = vpop.permute.xlu1 %1934  ;;  %6382 = vst [vmem:[#allocation50_spill] sm:$0xff] %v5321_v60  ;;  %v2644_v60 = vmul.f32 %v2643_v50, %v6366_v45 }
 0x57d   : > { %2434 = vrot.lane.b32.xlu1 %v2427_v21, %s6353_s11  ;;  %2432 = vrot.lane.b32.xlu0 %v2426_v23, %s6353_s11  ;;  %v2340_v21 = vmul.f32 %v2339_v16, %v6366_v45  ;;  %v2212_v23 = vmul.f32 %v2209_v52, %v6367_v51 }
 0x57f   : > { %v5329_v26 = vpop.permute.xlu0 %1936 }
 0x580   : > { %v5327_v38 = vpop.permute.xlu1 %1938 }
 0x581   : > { %2562 = vrot.lane.b32.xlu1 %v2556_v40, %s6376_s20  ;;  %2436 = vrot.lane.b32.xlu0 %v2428_v48, %s6353_s11  ;;  %v2342_v48 = vmul.f32 %v2339_v16, %v6367_v51 }
 0x583   : > { %v5337_v2 = vpop.permute.xlu0 %1954 }
 0x584   : > { %v5335_v41 = vpop.permute.xlu1 %1956 }
 0x585   : > { %2566 = vrot.lane.b32.xlu1 %v2558_v24, %s6376_s20  ;;  %2564 = vrot.lane.b32.xlu0 %v2557_v54, %s6376_s20  ;;  %v2341_v24 = vmul.f32 %v2339_v16, %v6371_v13  ;;  %v2469_v54 = vstv %s3248_s19  ;;  %s2909_s19 = sld [smem:[#allocation7]] }
 0x587   : > { %v5345_v59 = vpop.permute.xlu0 %1958 }
 0x588   : > { %v5343_v15 = vpop.permute.xlu1 %1976 }
 0x589   : > { %2218 = vrot.lane.b32.xlu1 %v2211_v29, %s6299_s3  ;;  %2216 = vrot.lane.b32.xlu0 %v2210_v35, %s6299_s3  ;;  %v2471_v35 = vmul.f32 %v2469_v54, %v6371_v13 }
 0x58b   : > { %v5353_v1 = vpop.permute.xlu0 %1978 }
 0x58c   : > { %v5351_v61 = vpop.permute.xlu1 %1980 }
 0x58d   : > { %2346 = vrot.lane.b32.xlu1 %v2340_v21, %s6324_s4  ;;  %2220 = vrot.lane.b32.xlu0 %v2212_v23, %s6299_s3  ;;  %v2470_v21 = vmul.f32 %v2469_v54, %v6366_v45  ;;  %v2577_v23 = vstv %s3253_s10  ;;  %s3258_s10 = sld [smem:[#allocation7 + $0x1]] }
 0x58f   : > { %v5361_v40 = vpop.permute.xlu0 %1998 }
 0x590   : > { %v5359_v43 = vpop.permute.xlu1 %2000  ;;  %6384 = vst [vmem:[#allocation53_spill] sm:$0xff] %v5361_v40 }
 0x591   : > { %6383 = vst [vmem:[#allocation51_spill] sm:$0xff] %v5359_v43  ;;  %2350 = vrot.lane.b32.xlu1 %v2342_v48, %s6324_s4  ;;  %2348 = vrot.lane.b32.xlu0 %v2341_v24, %s6324_s4  ;;  %v2578_v48 = vmul.f32 %v2577_v23, %v6366_v45  ;;  %v2472_v24 = vmul.f32 %v2469_v54, %v6367_v51  ;;  %v2361_v43 = vstv %s3243_s13  ;;  %s6429_s13 = sshll.u32 %s3748_s24, 6 }
 0x592   : > { %v2363_v31 = vmul.f32 %v2361_v43, %v6371_v13 }
 0x593   : > { %v5369_v52 = vpop.permute.xlu0 %2002 }
 0x594   : > { %v5367_v29 = vpop.permute.xlu1 %2020  ;;  %6385 = vst [vmem:[#allocation123_spill] sm:$0xff] %v5369_v52 }
 0x595   : > { %2478 = vrot.lane.b32.xlu1 %v2471_v35, %s6353_s11  ;;  %2476 = vrot.lane.b32.xlu0 %v2470_v21, %s6353_s11  ;;  %v2580_v35 = vmul.f32 %v2577_v23, %v6367_v51  ;;  %v2579_v21 = vmul.f32 %v2577_v23, %v6371_v13 }
 0x597   : > { %v5377_v7 = vpop.permute.xlu0 %2022 }
 0x598   : > { %v5375_v16 = vpop.permute.xlu1 %2024 }
 0x599   : > { %2584 = vrot.lane.b32.xlu1 %v2578_v48, %s6376_s20  ;;  %2480 = vrot.lane.b32.xlu0 %v2472_v24, %s6353_s11  ;;  %v2362_v48 = vmul.f32 %v2361_v43, %v6366_v45  ;;  %v2491_v24 = vstv %s3249_s21  ;;  %s351_s21 = scalar_lea.vmem [#allocation9], %s6429_s13 }
 0x59a   : > { %v2492_v20 = vmul.f32 %v2491_v24, %v6366_v45 }
 0x59b   : > { %v5385_v56 = vpop.permute.xlu0 %2042 }
 0x59c   : > { %v5383_v40 = vpop.permute.xlu1 %2044  ;;  %6386 = vst [vmem:[#allocation55_spill] sm:$0xff] %v5385_v56 }
 0x59d   : > { %2588 = vrot.lane.b32.xlu1 %v2580_v35, %s6376_s20  ;;  %2586 = vrot.lane.b32.xlu0 %v2579_v21, %s6376_s20  ;;  %v2364_v35 = vmul.f32 %v2361_v43, %v6367_v51 }
 0x59f   : > { %v2087_v54 = vpop.permute.xlu0 %2086 }
 0x5a0   : > { %v2089_v22 = vpop.permute.xlu1 %2088 }
 0x5a1   : > { %2370 = vrot.lane.b32.xlu1 %v2363_v31, %s6324_s4  ;;  %2368 = vrot.lane.b32.xlu0 %v2362_v48, %s6324_s4  ;;  %v2494_v31 = vmul.f32 %v2491_v24, %v6367_v51  ;;  %v2493_v48 = vmul.f32 %v2491_v24, %v6371_v13  ;;  %v2092_v18 = vsel %vm1122_vm10, %v2087_v54, %v2089_v22 }
 0x5a3   : > { %v2091_v23 = vpop.permute.xlu0 %2090 }
 0x5a4   : > { %v5395_v52 = vpop.permute.xlu1 %2106  ;;  %v2093_v6 = vsel %vm1122_vm10, %v2089_v22, %v2091_v23  ;;  %v5462_v22 = vstv %s3233_s29  ;;  %s5909_s29 = scalar_lea.hbm %s5967_s8, %s3271_s0 }
 0x5a5   : > { %2498 = vrot.lane.b32.xlu1 %v2492_v20, %s6353_s11  ;;  %2372 = vrot.lane.b32.xlu0 %v2364_v35, %s6324_s4  ;;  %v2622_v20 = vmul.f32 %v2621_v62, %v6366_v45  ;;  %v2513_v35 = vstv %s3250_s1  ;;  %s3046_s1 = sshll.u32 %s351_s21, 4  ;;  %s5911_s1 = int_to_ptr.vmem [resolvable:$true] %s3046_s1 }
 0x5a6   : > { %v2514_v36 = vmul.f32 %v2513_v35, %v6366_v45  ;;  %p3468_p4 = scmp.lt.s32.totalorder %s5911_s1, %s3466_s15 }
 0x5a7   : > { %v5403_v39 = vpop.permute.xlu0 %2108 }
 0x5a8   : > { %v5401_v21 = vpop.permute.xlu1 %2110 }
 0x5a9   : > { %6387 = vst [vmem:[#allocation52_spill] sm:$0xff] %v5401_v21  ;;  %2502 = vrot.lane.b32.xlu1 %v2494_v31, %s6353_s11  ;;  %2500 = vrot.lane.b32.xlu0 %v2493_v48, %s6353_s11  ;;  %v2624_v31 = vmul.f32 %v2621_v62, %v6367_v51  ;;  %v1788_v62 = vsel %vm816_vm8, %v5234_v19, %v5232_v37 }
 0x5aa   : > { %v1941_v19 = vsel %vm969_vm9, %v5329_v26, %v5327_v38 }
 0x5ab   : > { %v2239_v43 = vpop.permute.xlu0 %2238 }
 0x5ac   : > { %v2241_v53 = vpop.permute.xlu1 %2240 }
 0x5ad   : > { %2630 = vrot.lane.b32.xlu1 %v2623_v4, %s6376_s20  ;;  %2628 = vrot.lane.b32.xlu0 %v2622_v20, %s6376_s20  ;;  %v2516_v4 = vmul.f32 %v2513_v35, %v6367_v51  ;;  %v2515_v20 = vmul.f32 %v2513_v35, %v6371_v13  ;;  %v2645_v35 = vmul.f32 %v2643_v50, %v6371_v13 }
 0x5af   : > { %v2243_v24 = vpop.permute.xlu0 %2242 }
 0x5b0   : > { %v5413_v56 = vpop.permute.xlu1 %2128 }
 0x5b1   : > { %2520 = vrot.lane.b32.xlu1 %v2514_v36, %s6353_s11  ;;  %2632 = vrot.lane.b32.xlu0 %v2624_v31, %s6376_s20  ;;  %v1789_v36 = vsel %vm816_vm8, %v5232_v37, %v5249_v3  ;;  %v1792_v37 = vadd.f32 %v1788_v62, %v4999_v5  ;;  %v2244_v5 = vsel %vm1275_vm11, %v2239_v43, %v2241_v53  ;;  %v6390_v62 = vld [vmem:[#allocation18_spill] sm:$0xff] }
 0x5b2   : > { %v1793_v3 = vadd.f32 %v1789_v36, %v5002_v17  ;;  %v2245_v17 = vsel %vm1275_vm11, %v2241_v53, %v2243_v24  ;;  %v2871_v36 = vsub.s32 6, %v6390_v62  ;;  %v5474_v24 = vld [vmem:[%s5964_s5 + $0x8] sm:$0x7f] }
 0x5b3   : > { %v5421_v49 = vpop.permute.xlu0 %2130 }
 0x5b4   : > { %v5419_v48 = vpop.permute.xlu1 %2132 }
 0x5b5   : > { %2524 = vrot.lane.b32.xlu1 %v2516_v4, %s6353_s11  ;;  %2522 = vrot.lane.b32.xlu0 %v2515_v20, %s6353_s11  ;;  %v1940_v4 = vsel %vm969_vm9, %v5319_v57, %v5329_v26  ;;  %v2665_v20 = vstv %s3257_s28  ;;  %v2646_v26 = vmul.f32 %v2643_v50, %v6367_v51 }
 0x5b6   : > { %v2666_v38 = vmul.f32 %v2665_v20, %v6366_v45  ;;  %v2668_v43 = vmul.f32 %v2665_v20, %v6367_v51  ;;  %v2667_v53 = vmul.f32 %v2665_v20, %v6371_v13  ;;  %v5486_v20 = vld [vmem:[%s5964_s5] sm:$0x7f] }
 0x5b7   : > { %v5435_v27 = vpop.permute.xlu0 %2258 }
 0x5b8   : > { %v5433_v31 = vpop.permute.xlu1 %2260  ;;  %6389 = vst [vmem:[#allocation56_spill] sm:$0xff] %v5435_v27  ;;  %v1944_v27 = vadd.f32 %v1940_v4, %v1792_v37 }
 0x5b9   : > { %6388 = vst [vmem:[#allocation54_spill] sm:$0xff] %v5433_v31  ;;  %2652 = vrot.lane.b32.xlu1 %v2645_v35, %s6376_s20  ;;  %2650 = vrot.lane.b32.xlu0 %v2644_v60, %s6376_s20  ;;  %v1945_v31 = vadd.f32 %v1941_v19, %v1793_v3  ;;  %v2872_v3 = vrot.slane %v5486_v20, %v2871_v36 }
 0x5ba   : > { %v2096_v60 = vadd.f32 %v2092_v18, %v1944_v27  ;;  %v1897_v27 = vsel %vm816_vm8, %v5305_v25, %v5303_v63 }
 0x5bb   : > { %v5451_v21 = vpop.permute.xlu0 %2262  ;;  %v2097_v35 = vadd.f32 %v2093_v6, %v1945_v31  ;;  %v2876_v31 = vrot.slane %v5474_v24, %v2871_v36  ;;  %v1902_v36 = vadd.f32 %v1897_v27, %v5221_v34 }
 0x5bc   : > { %v2391_v57 = vpop.permute.xlu1 %2390  ;;  %v2248_v54 = vadd.f32 %v2244_v5, %v2096_v60  ;;  %v1830_v5 = vsel %vm816_vm8, %v5265_v55, %v5263_v12 }
 0x5bd   : > { %2672 = vrot.lane.b32.xlu1 %v2666_v38, %s6376_s20  ;;  %2654 = vrot.lane.b32.xlu0 %v2646_v26, %s6376_s20  ;;  %v2249_v23 = vadd.f32 %v2245_v17, %v2097_v35  ;;  %v1875_v38 = vsel %vm816_vm8, %v5287_v47, %v5297_v58  ;;  %v1903_v26 = vadd.f32 %v5303_v63, %v5218_v9 }
 0x5be   : > { %v1881_v17 = vadd.f32 %v5297_v58, %v5160_v11  ;;  %v2027_v9 = vsel %vm969_vm9, %v5377_v7, %v5375_v16  ;;  %v1880_v34 = vadd.f32 %v1875_v38, %v5169_v30  ;;  %v1835_v30 = vadd.f32 %v1830_v5, %v5080_v0 }
 0x5bf   : > { %v2393_v50 = vpop.permute.xlu0 %2392 }
 0x5c0   : > { %v2395_v4 = vpop.permute.xlu1 %2394  ;;  %v2396_v6 = vsel %vm1428_vm12, %v2391_v57, %v2393_v50  ;;  %v1874_v57 = vsel %vm816_vm8, %v5289_v10, %v5287_v47  ;;  %v2145_v10 = vmul.f32 %v5462_v22, %v6371_v13  ;;  %v2026_v47 = vsel %vm969_vm9, %v5367_v29, %v5377_v7 }
 0x5c1   : > { %v2397_v18 = vsel %vm1428_vm12, %v2393_v50, %v2395_v4  ;;  %v5477_v19 = vadd.f32 %v2396_v6, %v2248_v54  ;;  %2676 = vrot.lane.b32.xlu1 %v2668_v43, %s6376_s20  ;;  %2674 = vrot.lane.b32.xlu0 %v2667_v53, %s6376_s20  ;;  %v1879_v11 = vadd.f32 %v1874_v57, %v5166_v42  ;;  %v2295_v54 = vstv %s5460_s14  ;;  %s3461_s14 = scalar_lea.vmem %s5911_s1, 1024 }
 0x5c2   : > { %v5479_v37 = vadd.f32 %v2397_v18, %v2249_v23  ;;  %v1808_v29 = vsel %vm816_vm8, %v5247_v32, %v5257_v14  ;;  %v1982_v7 = vsel %vm969_vm9, %v5343_v15, %v5353_v1  ;;  %v2033_v23 = vadd.f32 %v5375_v16, %v1881_v17  ;;  %p3462_p5 = scmp.ne.s32.totalorder %s5911_s1, %s3461_s14  ;;  %p3469_p12 = scmp.lt.s32.totalorder %s3467_s6, %s3461_s14 }
 0x5c3   : > { %v2047_v35 = vpop.permute.xlu0 %2046  ;;  %v2144_v42 = vmul.f32 %v5462_v22, %v6366_v45  ;;  %v1831_v4 = vsel %vm816_vm8, %v5263_v12, %v5273_v46  ;;  %v2031_v50 = vadd.f32 %v2026_v47, %v1879_v11  ;;  %v2032_v43 = vadd.f32 %v2027_v9, %v1880_v34 }
 0x5c4   : > { %v2173_v60 = vpop.permute.xlu1 %2172  ;;  %v2049_v55 = vsel %vm969_vm9, %v5383_v40, %v2047_v35  ;;  %v5513_v63 = vadd.f32 %v2047_v35, %v1903_v26  ;;  %v2134_v32 = vsel %vm1122_vm10, %v5413_v56, %v5421_v49  ;;  %v1987_v0 = vadd.f32 %v1982_v7, %v1835_v30  ;;  %v6393_v7 = vld [vmem:[#allocation56_spill] sm:$0xff]  ;;  %p3463_p8 = pnand %p3462_p5, %p6436_p2  ;;  %p3470_p0 = por %p3469_p12, %p3468_p4 }
 0x5c5   : > { %v5517_v58 = vadd.f32 %v2049_v55, %v1902_v36  ;;  %2881 = vrot.lane.b32.xlu1 %v2876_v31, %s3556_s22  ;;  %2879 = vrot.lane.b32.xlu0 %v2872_v3, %s3556_s22  ;;  %v1809_v56 = vsel %vm816_vm8, %v5257_v14, %v5255_v28  ;;  %v1983_v31 = vsel %vm969_vm9, %v5353_v1, %v5351_v61 }
 0x5c6   : > { %v2296_v3 = vmul.f32 %v2295_v54, %v6366_v45  ;;  %v1813_v57 = vadd.f32 %v1808_v29, %v5031_v8  ;;  %v1836_v38 = vadd.f32 %v1831_v4, %v5083_v44  ;;  %v2139_v26 = vadd.f32 %v2134_v32, %v1987_v0  ;;  %v6392_v29 = vld [vmem:[#allocation54_spill] sm:$0xff]  ;;  %p3464_p10 = pneg %p3463_p8 }
 0x5c7   : > { %v2175_v27 = vpop.permute.xlu0 %2174  ;;  %v2146_v36 = vmul.f32 %v5462_v22, %v6367_v51  ;;  %v1960_v14 = vsel %vm969_vm9, %v5337_v2, %v5335_v41  ;;  %v1961_v1 = vsel %vm969_vm9, %v5335_v41, %v5345_v59  ;;  %v2135_v8 = vsel %vm1122_vm10, %v5421_v49, %v5419_v48  ;;  %v6391_v2 = vld [vmem:[#allocation52_spill] sm:$0xff] }
 0x5c8   : > { %v2177_v53 = vpop.permute.xlu1 %2176  ;;  %v2178_v16 = vsel %vm1122_vm10, %v2173_v60, %v2175_v27  ;;  %v1814_v60 = vadd.f32 %v1809_v56, %v5056_v33  ;;  %v1988_v35 = vadd.f32 %v1983_v31, %v1836_v38  ;;  %v2112_v41 = vsel %vm1122_vm10, %v5395_v52, %v5403_v39  ;;  %p3471_p7 = pnand %p3470_p0, %p3464_p10 }
 0x5c9   : > { %v5536_v15 = vadd.f32 %v2177_v53, %v2033_v23  ;;  %v2179_v6 = vsel %vm1122_vm10, %v2175_v27, %v2177_v53  ;;  %v5542_v18 = vadd.f32 %v2178_v16, %v2031_v50  ;;  %2152 = vrot.lane.b32.xlu1 %v2145_v10, %s6299_s3  ;;  %2150 = vrot.lane.b32.xlu0 %v2144_v42, %s6299_s3  ;;  %v2447_v42 = vstv %s5540_s23 }
 0x5ca   : > { %v5544_v12 = vadd.f32 %v2179_v6, %v2032_v43  ;;  %v2113_v49 = vsel %vm1122_vm10, %v5403_v39, %v6391_v2  ;;  %v2298_v10 = vmul.f32 %v2295_v54, %v6367_v51  ;;  %v1965_v47 = vadd.f32 %v1960_v14, %v1813_v57 }
 0x5cb   : > { %v2281_v17 = vpop.permute.xlu0 %2280  ;;  %v1966_v33 = vadd.f32 %v1961_v1, %v1814_v60  ;;  %v2140_v9 = vadd.f32 %v2135_v8, %v1988_v35  ;;  %v2297_v34 = vmul.f32 %v2295_v54, %v6371_v13  ;;  %v2264_v23 = vsel %vm1275_vm11, %v6393_v7, %v6392_v29  ;;  %v6394_v60 = vld [vmem:[#allocation46_spill] sm:$0xff]  ;;  %v6395_v35 = vld [vmem:[#allocation48_spill] sm:$0xff] }
 0x5cc   : > { %v2283_v5 = vpop.permute.xlu1 %2282  ;;  %v2265_v52 = vsel %vm1275_vm11, %v6392_v29, %v5451_v21  ;;  %v2117_v30 = vadd.f32 %v2112_v41, %v1965_v47  ;;  %v2449_v32 = vmul.f32 %v2447_v42, %v6371_v13  ;;  %v2448_v16 = vmul.f32 %v2447_v42, %v6366_v45  ;;  %v6396_v41 = vld [vmem:[#allocation50_spill] sm:$0xff]  ;;  %v6398_v47 = vld [vmem:[#allocation116_spill] sm:$0xff] }
 0x5cd   : > { %v2286_v44 = vsel %vm1275_vm11, %v2281_v17, %v2283_v5  ;;  %2302 = vrot.lane.b32.xlu1 %v2296_v3, %s6324_s4  ;;  %2154 = vrot.lane.b32.xlu0 %v2146_v36, %s6299_s3  ;;  %v2118_v4 = vadd.f32 %v2113_v49, %v1966_v33  ;;  %v2599_v56 = vstv %s5569_s26  ;;  %v1919_v49 = vsel %vm816_vm8, %v6394_v60, %v6396_v41  ;;  %s6405_s3 = smov 2  }
 0x5ce   : > { %v5572_v22 = vadd.f32 %v2286_v44, %v2139_v26  ;;  %v2269_v54 = vadd.f32 %v2264_v23, %v2117_v30  ;;  %v2600_v26 = vmul.f32 %v2599_v56, %v6366_v45  ;;  %v2602_v8 = vmul.f32 %v2599_v56, %v6367_v51 }
 0x5cf   : > { %v5583_v11 = vpop.permute.xlu0 %2284  ;;  %v2270_v43 = vadd.f32 %v2265_v52, %v2118_v4  ;;  %v2601_v44 = vmul.f32 %v2599_v56, %v6371_v13  ;;  %v1918_v45 = vsel %vm816_vm8, %v6395_v35, %v6394_v60  ;;  %v1925_v33 = vadd.f32 %v6396_v41, %v6398_v47  ;;  %v6403_v60 = vld [vmem:[#allocation40_spill] sm:$0xff] }
 0x5d0   : > { %v2411_v55 = vpop.permute.xlu1 %2410  ;;  %v2287_v39 = vsel %vm1275_vm11, %v2283_v5, %v5583_v11  ;;  %v2450_v5 = vmul.f32 %v2447_v42, %v6367_v51  ;;  %v6397_v51 = vld [vmem:[#allocation49_spill] sm:$0xff]  ;;  %v1815_v35 = vadd.f32 %v5255_v28, %v6403_v60 }
 0x5d1   : > { %v5595_v50 = vadd.f32 %v2287_v39, %v2140_v9  ;;  %2306 = vrot.lane.b32.xlu1 %v2298_v10, %s6324_s4  ;;  %2304 = vrot.lane.b32.xlu0 %v2297_v34, %s6324_s4  ;;  %v1896_v13 = vsel %vm816_vm8, %v6397_v51, %v5305_v25  ;;  %v6399_v9 = vld [vmem:[#allocation44_spill] sm:$0xff]  ;;  %v6400_v34 = vld [vmem:[#allocation45_spill] sm:$0xff]  ;;  %v6402_v25 = vld [vmem:[#allocation115_spill] sm:$0xff]  ;;  %s6408_s4 = smov 1  }
 0x5d2   : > { %v1924_v29 = vadd.f32 %v1919_v49, %v6400_v34  ;;  %v1901_v4 = vadd.f32 %v1896_v13, %v6402_v25 }
 0x5d3   : > { %v2413_v27 = vpop.permute.xlu0 %2412 }
 0x5d4   : > { %v5599_v53 = vpop.permute.xlu1 %2414  ;;  %v2416_v6 = vsel %vm1428_vm12, %v2411_v55, %v2413_v27  ;;  %v1923_v55 = vadd.f32 %v1918_v45, %v6399_v9 }
 0x5d5   : > { %v2417_v0 = vsel %vm1428_vm12, %v2413_v27, %v5599_v53  ;;  %v5607_v31 = vadd.f32 %v2416_v6, %v2269_v54  ;;  %2456 = vrot.lane.b32.xlu1 %v2449_v32, %s6353_s11  ;;  %2454 = vrot.lane.b32.xlu0 %v2448_v16, %s6353_s11 }
 0x5d6   : > { %v5609_v3 = vadd.f32 %v2417_v0, %v2270_v43 }
 0x5d7   : > { %v2543_v38 = vpop.permute.xlu0 %2542 }
 0x5d8   : > { %v2545_v57 = vpop.permute.xlu1 %2544 }
 0x5d9   : > { %v2548_v17 = vsel %vm1581_vm13, %v2543_v38, %v2545_v57  ;;  %2606 = vrot.lane.b32.xlu1 %v2600_v26, %s6376_s20  ;;  %2458 = vrot.lane.b32.xlu0 %v2450_v5, %s6353_s11  ;;  %s3557_s11 = smov 127  }
 0x5da   : > { %v5617_v36 = vadd.f32 %v2548_v17, %v5477_v19 }
 0x5db   : > { %v2547_v1 = vpop.permute.xlu0 %2546 }
 0x5dc   : > { %v2065_v14 = vpop.permute.xlu1 %2064  ;;  %v2549_v19 = vsel %vm1581_vm13, %v2545_v57, %v2547_v1 }
 0x5dd   : > { %v5631_v10 = vadd.f32 %v2549_v19, %v5479_v37  ;;  %2610 = vrot.lane.b32.xlu1 %v2602_v8, %s6376_s20  ;;  %2608 = vrot.lane.b32.xlu0 %v2601_v44, %s6376_s20  ;;  %v6401_v37 = vld [vmem:[#allocation55_spill] sm:$0xff]  ;;  %s3558_s20 = smov 3  }
 0x5de   : > { %v2048_v52 = vsel %vm969_vm9, %v6401_v37, %v5383_v40 }
 0x5df   : > { %v2067_v23 = vpop.permute.xlu0 %2066  ;;  %v2053_v27 = vadd.f32 %v2048_v52, %v1901_v4 }
 0x5e0   : > { %v2069_v7 = vpop.permute.xlu1 %2068  ;;  %v2070_v42 = vsel %vm969_vm9, %v2065_v14, %v2067_v23 }
 0x5e1   : > { %v5645_v39 = vadd.f32 %v2069_v7, %v1925_v33  ;;  %v2071_v30 = vsel %vm969_vm9, %v2067_v23, %v2069_v7  ;;  %v5650_v54 = vadd.f32 %v2070_v42, %v1923_v55  ;;  %v6406_v23 = vld [vmem:[#allocation112_spill] sm:$0xff] }
 0x5e2   : > { %v2076_v43 = vadd.f32 %v2071_v30, %v1924_v29  ;;  %v1837_v37 = vadd.f32 %v5273_v46, %v6406_v23 }
 0x5e3   : > { %v2195_v16 = vpop.permute.xlu0 %2194 }
 0x5e4   : > { %v2197_v32 = vpop.permute.xlu1 %2196  ;;  %v1989_v30 = vadd.f32 %v5351_v61, %v1837_v37 }
 0x5e5   : > { %v2200_v6 = vsel %vm1122_vm10, %v2195_v16, %v2197_v32 }
 0x5e6   : > { %v5653_v0 = vadd.f32 %v2200_v6, %v2053_v27  ;;  %v2141_v25 = vadd.f32 %v5419_v48, %v1989_v30 }
 0x5e7   : > { %v2199_v40 = vpop.permute.xlu0 %2198 }
 0x5e8   : > { %v2325_v56 = vpop.permute.xlu1 %2324  ;;  %v2201_v57 = vsel %vm1122_vm10, %v2197_v32, %v2199_v40  ;;  %v5657_v38 = vadd.f32 %v2199_v40, %v5513_v63  ;;  %v6407_v40 = vld [vmem:[#allocation25_spill] sm:$0xff] }
 0x5e9   : > { %v5660_v26 = vadd.f32 %v2201_v57, %v5517_v58  ;;  %v1967_v58 = vadd.f32 %v5345_v59, %v1815_v35  ;;  %v6404_v59 = vld [vmem:[#allocation22_spill] sm:$0xff] }
 0x5eb   : > { %v2327_v17 = vpop.permute.xlu0 %2326  ;;  %v2119_v19 = vadd.f32 %v6391_v2, %v1967_v58 }
 0x5ec   : > { %v2329_v5 = vpop.permute.xlu1 %2328  ;;  %v2330_v14 = vsel %vm1275_vm11, %v2325_v56, %v2327_v17 }
 0x5ed   : > { %v2331_v1 = vsel %vm1275_vm11, %v2327_v17, %v2329_v5  ;;  %v5665_v8 = vadd.f32 %v2330_v14, %v5542_v18  ;;  %v2271_v13 = vadd.f32 %v5451_v21, %v2119_v19  ;;  %v2337_v35 = vadd.f32 %v2329_v5, %v5536_v15 }
 0x5ee   : > { %v5668_v44 = vadd.f32 %v2331_v1, %v5544_v12 }
 0x5ef   : > { %v2433_v45 = vpop.permute.xlu0 %2432  ;;  %v2423_v12 = vadd.f32 %v5599_v53, %v2271_v13  ;;  %v6409_v13 = vld [vmem:[#allocation21_spill] sm:$0xff] }
 0x5f0   : > { %v2435_v63 = vpop.permute.xlu1 %2434 }
 0x5f1   : > { %v2438_v41 = vsel %vm1428_vm12, %v2433_v45, %v2435_v63 }
 0x5f2   : > { %v5675_v49 = vadd.f32 %v2438_v41, %v5572_v22 }
 0x5f3   : > { %v2437_v18 = vpop.permute.xlu0 %2436 }
 0x5f4   : > { %v2563_v51 = vpop.permute.xlu1 %2562  ;;  %v2439_v15 = vsel %vm1428_vm12, %v2435_v63, %v2437_v18 }
 0x5f7   : > { %v5682_v28 = vpop.permute.xlu0 %2564 }
 0x5f8   : > { %v5680_v47 = vpop.permute.xlu1 %2566 }
 0x5f9   : > { %v2575_v33 = vadd.f32 %v5680_v47, %v2423_v12  ;;  %v2691_v12 = vrot.slane %v5486_v20, %v6409_v13 }
 0x5fb   : > { %v2733_v9 = vmul.f32 %v6404_v59, %v2575_v33  ;;  %v5688_v22 = vpop.permute.xlu0 %2216  ;;  %v6410_v33 = vld [vmem:[#allocation27_spill] sm:$0xff]  ;;  %v2696_v5 = vmul.f32 %v2691_v12, %v5617_v36 }
 0x5fc   : > { %v5686_v55 = vpop.permute.xlu1 %2218  ;;  %v6411_v36 = vld [vmem:[#allocation23_spill] sm:$0xff] }
 0x5fd   : > { %2741 = vrot.lane.b32.xlu0 %v2733_v9, %s6405_s3 }
 0x5ff   : > { %v5693_v34 = vpop.permute.xlu0 %2220 }
 0x600   : > { %v5691_v2 = vpop.permute.xlu1 %2346  ;;  %v2223_v21 = vsel %vm1122_vm10, %v5686_v55, %v5693_v34 }
 0x601   : > { %v5698_v53 = vadd.f32 %v2223_v21, %v2076_v43  ;;  %v2293_v43 = vadd.f32 %v5583_v11, %v2141_v25  ;;  %v2568_v21 = vsel %vm1581_vm13, %v2563_v51, %v5682_v28  ;;  %v2444_v51 = vadd.f32 %v2439_v15, %v5595_v50 }
 0x602   : > { %v2573_v30 = vadd.f32 %v2568_v21, %v5607_v31  ;;  %v6413_v21 = vld [vmem:[#allocation28_spill] sm:$0xff] }
 0x603   : > { %v5700_v7 = vpop.permute.xlu0 %2348  ;;  %v2445_v32 = vadd.f32 %v2437_v18, %v2293_v43 }
 0x604   : > { %v2351_v29 = vpop.permute.xlu1 %2350  ;;  %v2731_v18 = vmul.f32 %v6411_v36, %v2573_v30 }
 0x605   : > { %v2359_v43 = vadd.f32 %v2351_v29, %v5657_v38  ;;  %v6412_v38 = vld [vmem:[#allocation24_spill] sm:$0xff] }
 0x607   : > { %v2477_v42 = vpop.permute.xlu0 %2476 }
 0x608   : > { %v5704_v52 = vpop.permute.xlu1 %2478 }
 0x60b   : > { %v5710_v27 = vpop.permute.xlu0 %2480 }
 0x60c   : > { %v5708_v4 = vpop.permute.xlu1 %2584  ;;  %v2489_v45 = vadd.f32 %v5710_v27, %v2337_v35  ;;  %v2765_v35 = vsel %vm538_vm6, %v6412_v38, %v6407_v40 }
 0x60f   : > { %v5713_v6 = vpop.permute.xlu0 %2586 }
 0x610   : > { %v2589_v16 = vpop.permute.xlu1 %2588 }
 0x611   : > { %v2597_v56 = vadd.f32 %v2589_v16, %v2445_v32  ;;  %v2591_v20 = vsel %vm1581_vm13, %v5713_v6, %v2589_v16  ;;  %v2482_v32 = vsel %vm1428_vm12, %v2477_v42, %v5704_v52  ;;  %v2353_v16 = vsel %vm1275_vm11, %v5700_v7, %v2351_v29 }
 0x612   : > { %v2596_v31 = vadd.f32 %v2591_v20, %v2444_v51  ;;  %v2569_v29 = vsel %vm1581_vm13, %v5682_v28, %v5680_v47  ;;  %v6414_v20 = vld [vmem:[#allocation26_spill] sm:$0xff] }
 0x613   : > { %v2771_v46 = vmul.f32 %v6407_v40, %v2597_v56  ;;  %v2369_v17 = vpop.permute.xlu0 %2368  ;;  %v2358_v40 = vadd.f32 %v2353_v16, %v5660_v26  ;;  %v2574_v26 = vadd.f32 %v2569_v29, %v5609_v3 }
 0x614   : > { %v5716_v57 = vpop.permute.xlu1 %2370 }
 0x615   : > { %2779 = vrot.lane.b32.xlu1 %v2771_v46, %s6408_s4 }
 0x617   : > { %v5721_v48 = vpop.permute.xlu0 %2372 }
 0x618   : > { %v5719_v61 = vpop.permute.xlu1 %2498 }
 0x61b   : > { %v5723_v1 = vpop.permute.xlu0 %2500 }
 0x61c   : > { %v2503_v14 = vpop.permute.xlu1 %2502 }
 0x61d   : > { %v2511_v56 = vadd.f32 %v2503_v14, %v2359_v43  ;;  %v2505_v12 = vsel %vm1428_vm12, %v5723_v1, %v2503_v14  ;;  %v2590_v43 = vsel %vm1581_vm13, %v5708_v4, %v5713_v6  ;;  %v2483_v4 = vsel %vm1428_vm12, %v5704_v52, %v5710_v27 }
 0x61e   : > { %v2510_v30 = vadd.f32 %v2505_v12, %v2358_v40 }
 0x61f   : > { %v2629_v60 = vpop.permute.xlu0 %2628 }
 0x620   : > { %v5725_v11 = vpop.permute.xlu1 %2630 }
 0x621   : > { %v2634_v50 = vsel %vm1581_vm13, %v2629_v60, %v5725_v11  ;;  %v2222_v60 = vsel %vm1122_vm10, %v5688_v22, %v5686_v55 }
 0x622   : > { %v2227_v28 = vadd.f32 %v2222_v60, %v5650_v54 }
 0x623   : > { %v5729_v41 = vpop.permute.xlu0 %2632 }
 0x624   : > { %v2521_v58 = vpop.permute.xlu1 %2520  ;;  %v2641_v19 = vadd.f32 %v5729_v41, %v2489_v45  ;;  %v2487_v45 = vadd.f32 %v2482_v32, %v5665_v8  ;;  %v2770_v8 = vmul.f32 %v2765_v35, %v2596_v31 }
 0x626   : > { %v2810_v9 = vmul.f32 %v6410_v33, %v2641_v19  ;;  %v2695_v19 = vrot.slane %v5474_v24, %v6409_v13  ;;  %v2374_v24 = vsel %vm1275_vm11, %v2369_v17, %v5716_v57 }
 0x627   : > { %v5739_v37 = vpop.permute.xlu0 %2522  ;;  %v2379_v14 = vadd.f32 %v2374_v24, %v2227_v28 }
 0x628   : > { %v5737_v23 = vpop.permute.xlu1 %2524  ;;  %2818 = vrot.lane.b32.xlu0 %v2810_v9, %s3557_s11  ;;  %v2639_v9 = vadd.f32 %v2634_v50, %v2487_v45  ;;  %v2526_v22 = vsel %vm1428_vm12, %v2521_v58, %v5739_v37  ;;  %v2697_v17 = vmul.f32 %v2695_v19, %v5631_v10  ;;  %v6415_v10 = vld [vmem:[#allocation29_spill] sm:$0xff] }
 0x629   : > { %v2531_v3 = vadd.f32 %v2526_v22, %v2379_v14  ;;  %v2844_v58 = vsel %vm2843_vm15, %v6415_v10, %v6413_v21  ;;  %v6416_v22 = vld [vmem:[#allocation42_spill] sm:$0xff] }
 0x62a   : > { %v2808_v51 = vmul.f32 %v6414_v20, %v2639_v9 }
 0x62b   : > { %v5747_v25 = vpop.permute.xlu0 %2650 }
 0x62c   : > { %2700 = vrot.lane.b32.xlu0 %v2696_v5, %s3558_s20  ;;  %v5754_v63 = vpop.permute.xlu1 %2652 }
 0x62f   : > { %v2655_v46 = vpop.permute.xlu0 %2654 }
 0x630   : > { %v2663_v42 = vadd.f32 %v2655_v46, %v2511_v56  ;;  %2737 = vrot.lane.b32.xlu0 %v2731_v18, %s6405_s3  ;;  %v2673_v5 = vpop.permute.xlu1 %2672  ;;  %v2657_v47 = vsel %vm1581_vm13, %v5754_v63, %v2655_v46  ;;  %v2727_v18 = vsel %vm2726_vm14, %v6411_v36, %v6404_v59  ;;  %v2229_v56 = vadd.f32 %v5693_v34, %v5645_v39 }
 0x631   : > { %v2662_v54 = vadd.f32 %v2657_v47, %v2510_v30  ;;  %v2732_v31 = vmul.f32 %v2727_v18, %v2574_v26  ;;  %v2352_v59 = vsel %vm1275_vm11, %v5691_v2, %v5700_v7  ;;  %v2595_v36 = vadd.f32 %v2590_v43, %v5675_v49 }
 0x632   : > { %v2850_v15 = vmul.f32 %v6413_v21, %v2663_v42  ;;  %v2635_v46 = vsel %vm1581_vm13, %v5725_v11, %v5729_v41  ;;  %v2488_v39 = vadd.f32 %v2483_v4, %v5668_v44  ;;  %v2381_v34 = vadd.f32 %v5721_v48, %v2229_v56  ;;  %v6421_v4 = vld [vmem:[#allocation51_spill] sm:$0xff] }
 0x633   : > { %v2675_v55 = vpop.permute.xlu0 %2674  ;;  %v2849_v16 = vmul.f32 %v2844_v58, %v2662_v54  ;;  %v2357_v2 = vadd.f32 %v2352_v59, %v5653_v0  ;;  %v2504_v49 = vsel %vm1428_vm12, %v5719_v61, %v5723_v1  ;;  %v2769_v7 = vmul.f32 %v6412_v38, %v2595_v36  ;;  %v6418_v54 = vld [vmem:[#allocation123_spill] sm:$0xff]  ;;  %v6422_v59 = vld [vmem:[#allocation114_spill] sm:$0xff] }
 0x634   : > { %2777 = vrot.lane.b32.xlu0 %v2770_v8, %s6408_s4  ;;  %2858 = vrot.lane.b32.xlu1 %v2850_v15, %s3559_s12  ;;  %v2678_v32 = vsel %vm1581_vm13, %v2673_v5, %v2675_v55  ;;  %v2677_v6 = vpop.permute.xlu1 %2676  ;;  %v2640_v52 = vadd.f32 %v2635_v46, %v2488_v39  ;;  %v2533_v27 = vadd.f32 %v5737_v23, %v2381_v34  ;;  %v6424_v39 = vld [vmem:[#allocation113_spill] sm:$0xff] }
 0x635   : > { %v2683_v50 = vadd.f32 %v2678_v32, %v2531_v3  ;;  %v2656_v44 = vsel %vm1581_vm13, %v5747_v25, %v5754_v63  ;;  %v2509_v45 = vadd.f32 %v2504_v49, %v2357_v2  ;;  %v2804_v0 = vsel %vm2803_vm0, %v6414_v20, %v6410_v33  ;;  %v6419_v32 = vld [vmem:[#allocation47_spill] sm:$0xff] }
 0x636   : > { %v2685_v42 = vadd.f32 %v2677_v6, %v2533_v27  ;;  %v2375_v61 = vsel %vm1275_vm11, %v5716_v57, %v5721_v48  ;;  %v2809_v1 = vmul.f32 %v2804_v0, %v2640_v52  ;;  %v2527_v25 = vsel %vm1428_vm12, %v5739_v37, %v5737_v23 }
 0x637   : > { %v2880_v35 = vpop.permute.xlu0 %2879  ;;  %v2661_v38 = vadd.f32 %v2656_v44, %v2509_v45  ;;  %v2380_v63 = vadd.f32 %v2375_v61, %v5698_v53  ;;  %v2679_v33 = vsel %vm1581_vm13, %v2675_v55, %v2677_v6  ;;  %v2005_v6 = vsel %vm969_vm9, %v6421_v4, %v6418_v54 }
 0x638   : > { %2814 = vrot.lane.b32.xlu0 %v2808_v51, %s3557_s11  ;;  %2702 = vrot.lane.b32.xlu1 %v2697_v17, %s3558_s20  ;;  %v2888_v11 = vmul.f32 %v2880_v35, %v2683_v50  ;;  %v2882_v41 = vpop.permute.xlu1 %2881  ;;  %v6417_v17 = vld [vmem:[#allocation120_spill] sm:$0xff]  ;;  %v6423_v50 = vld [vmem:[#allocation53_spill] sm:$0xff] }
 0x639   : > { %v2890_v19 = vmul.f32 %v2882_v41, %v2685_v42  ;;  %v2532_v29 = vadd.f32 %v2527_v25, %v2380_v63  ;;  %v2848_v60 = vmul.f32 %v6415_v10, %v2661_v38  ;;  %v2884_v57 = vsel %vm2883_vm1, %v2880_v35, %v2882_v41 }
 0x63a   : > { %v1859_v14 = vadd.f32 %v6417_v17, %v6416_v22  ;;  %v1853_v18 = vsel %vm816_vm8, %v6419_v32, %v6417_v17  ;;  %v2004_v46 = vsel %vm969_vm9, %v6423_v50, %v6421_v4 }
 0x63b   : > { %v2684_v48 = vadd.f32 %v2679_v33, %v2532_v29  ;;  %v2151_v23 = vpop.permute.xlu0 %2150  ;;  %v1858_v36 = vadd.f32 %v1853_v18, %v6422_v59 }
 0x63c   : > { %2739 = vrot.lane.b32.xlu1 %v2732_v31, %s6405_s3  ;;  %2856 = vrot.lane.b32.xlu0 %v2849_v16, %s3559_s12  ;;  %v2153_v53 = vpop.permute.xlu1 %2152  ;;  %v2011_v43 = vadd.f32 %v6418_v54, %v1859_v14  ;;  %v6420_v31 = vld [vmem:[#allocation117_spill] sm:$0xff] }
 0x63d   : > { %v2889_v12 = vmul.f32 %v2884_v57, %v2684_v48  ;;  %v1852_v56 = vsel %vm816_vm8, %v6420_v31, %v6419_v32  ;;  %v2010_v2 = vadd.f32 %v2005_v6, %v1858_v36  ;;  %v2156_v27 = vsel %vm1122_vm10, %v2151_v23, %v2153_v53 }
 0x63e   : > { %v1857_v34 = vadd.f32 %v1852_v56, %v6424_v39  ;;  %v2915_v56 = vstv %s3258_s10 }
 0x63f   : > { %v2155_v37 = vpop.permute.xlu0 %2154 }
 0x640   : > { %2775 = vrot.lane.b32.xlu1 %v2769_v7, %s6408_s4  ;;  %2894 = vrot.lane.b32.xlu0 %v2888_v11, %s3560_s16  ;;  %v2303_v8 = vpop.permute.xlu1 %2302  ;;  %v2163_v3 = vadd.f32 %v2155_v37, %v2011_v43  ;;  %v2157_v35 = vsel %vm1122_vm10, %v2153_v53, %v2155_v37  ;;  %v2009_v44 = vadd.f32 %v2004_v46, %v1857_v34  ;;  %v2910_v43 = vstv %s2909_s19 }
 0x641   : > { %v2162_v41 = vadd.f32 %v2157_v35, %v2010_v2 }
 0x642   : > { %v2161_v61 = vadd.f32 %v2156_v27, %v2009_v44 }
 0x643   : > { %v2305_v40 = vpop.permute.xlu0 %2304 }
 0x644   : > { %2816 = vrot.lane.b32.xlu1 %v2809_v1, %s3557_s11  ;;  %2898 = vrot.lane.b32.xlu0 %v2890_v19, %s3560_s16  ;;  %v2307_v21 = vpop.permute.xlu1 %2306  ;;  %v2308_v42 = vsel %vm1275_vm11, %v2303_v8, %v2305_v40 }
 0x645   : > { %v2315_v16 = vadd.f32 %v2307_v21, %v2163_v3  ;;  %v2309_v11 = vsel %vm1275_vm11, %v2305_v40, %v2307_v21 }
 0x646   : > { %v2314_v1 = vadd.f32 %v2309_v11, %v2162_v41 }
 0x647   : > { %v2455_v9 = vpop.permute.xlu0 %2454 }
 0x648   : > { %2854 = vrot.lane.b32.xlu1 %v2848_v60, %s3559_s12  ;;  %v2457_v24 = vpop.permute.xlu1 %2456  ;;  %v2313_v60 = vadd.f32 %v2308_v42, %v2161_v61 }
 0x649   : > { %v2460_v63 = vsel %vm1428_vm12, %v2455_v9, %v2457_v24 }
 0x64a   : > { %v2465_v53 = vadd.f32 %v2460_v63, %v2313_v60 }
 0x64b   : > { %v2459_v15 = vpop.permute.xlu0 %2458 }
 0x64c   : > { %2896 = vrot.lane.b32.xlu1 %v2889_v12, %s3560_s16  ;;  %v2607_v28 = vpop.permute.xlu1 %2606  ;;  %v2467_v49 = vadd.f32 %v2459_v15, %v2315_v16  ;;  %v2461_v0 = vsel %vm1428_vm12, %v2457_v24, %v2459_v15 }
 0x64d   : > { %v2466_v57 = vadd.f32 %v2461_v0, %v2314_v1 }
 0x64f   : > { %v2609_v5 = vpop.permute.xlu0 %2608 }
 0x650   : > { %v2611_v55 = vpop.permute.xlu1 %2610  ;;  %v2612_v12 = vsel %vm1581_vm13, %v2607_v28, %v2609_v5 }
 0x651   : > { %v2619_v45 = vadd.f32 %v2611_v55, %v2467_v49  ;;  %v2613_v33 = vsel %vm1581_vm13, %v2609_v5, %v2611_v55  ;;  %v2617_v24 = vadd.f32 %v2612_v12, %v2465_v53 }
 0x652   : > { %v2618_v40 = vadd.f32 %v2613_v33, %v2466_v57 }
 0x66f   : > { %v2742_v47 = vpop.permute.xlu0 %2741 }
 0x687   : > { %v2780_v20 = vpop.permute.xlu1 %2779 }
 0x69a   : > { %v5843_v30 = vpop.permute.xlu0 %2818 }
 0x69e   : > { %v2701_v26 = vpop.permute.xlu0 %2700 }
 0x69f   : > { %v2709_v17 = vadd.f32 %v2701_v26, %v2617_v24 }
 0x6a2   : > { %v2738_v51 = vpop.permute.xlu0 %2737 }
 0x6a3   : > { %v2748_v32 = vadd.f32 %v2738_v51, %v2709_v17 }
 0x6a6   : > { %v5851_v10 = vpop.permute.xlu1 %2858  ;;  %v2778_v58 = vpop.permute.xlu0 %2777 }
 0x6a7   : > { %v2782_v23 = vsel %vm2726_vm14, %v2778_v58, %v2780_v20 }
 0x6aa   : > { %v2703_v7 = vpop.permute.xlu1 %2702  ;;  %v2815_v52 = vpop.permute.xlu0 %2814 }
 0x6ab   : > { %v2711_v38 = vadd.f32 %v2703_v7, %v2619_v45  ;;  %v2705_v37 = vsel %vm2704_vm2, %v2701_v26, %v2703_v7 }
 0x6ac   : > { %v2710_v55 = vadd.f32 %v2705_v37, %v2618_v40  ;;  %v6425_v40 = vld [vmem:[#allocation19_spill] sm:$0xff] }
 0x6ae   : > { %v2740_v19 = vpop.permute.xlu1 %2739  ;;  %v2857_v25 = vpop.permute.xlu0 %2856 }
 0x6af   : > { %v2744_v29 = vsel %vm538_vm6, %v2740_v19, %v2742_v47  ;;  %v2743_v9 = vsel %vm538_vm6, %v2738_v51, %v2740_v19  ;;  %v2862_v50 = vsel %vm2860_vm4, %v2857_v25, %v5851_v10 }
 0x6b0   : > { %v2750_v48 = vadd.f32 %v2744_v29, %v2711_v38  ;;  %v2749_v5 = vadd.f32 %v2743_v9, %v2710_v55  ;;  %v3561_v38 = vmov 1966171168  }
 0x6b1   : > { %v2942_v19 = vunpack.c.l.s4 %v3561_v38 }
 0x6b2   : > { %v2788_v8 = vadd.f32 %v2782_v23, %v2750_v48  ;;  %v2776_v21 = vpop.permute.xlu1 %2775  ;;  %v2895_v15 = vpop.permute.xlu0 %2894 }
 0x6b3   : > { %v2781_v22 = vsel %vm2726_vm14, %v2776_v21, %v2778_v58  ;;  %v2786_v4 = vadd.f32 %v2776_v21, %v2748_v32 }
 0x6b4   : > { %v2828_v47 = vadd.f32 %v5843_v30, %v2788_v8  ;;  %v2787_v18 = vadd.f32 %v2781_v22, %v2749_v5 }
 0x6b6   : > { %v2817_v28 = vpop.permute.xlu1 %2816  ;;  %v2868_v14 = vadd.f32 %v5851_v10, %v2828_v47  ;;  %v2899_v20 = vpop.permute.xlu0 %2898 }
 0x6b7   : > { %v2822_v54 = vsel %vm2820_vm3, %v2817_v28, %v5843_v30  ;;  %v2821_v31 = vsel %vm2820_vm3, %v2815_v52, %v2817_v28 }
 0x6b8   : > { %v2908_v3 = vadd.f32 %v2899_v20, %v2868_v14  ;;  %v2827_v6 = vadd.f32 %v2822_v54, %v2787_v18  ;;  %v2826_v26 = vadd.f32 %v2821_v31, %v2786_v4  ;;  %v6428_v14 = vld [vmem:[#allocation30_spill] sm:$0xff]  ;;  %v6430_v18 = vld [vmem:[#allocation33_spill] sm:$0xff]  ;;  %v6431_v31 = vld [vmem:[#allocation31_spill] sm:$0xff] }
 0x6ba   : > { %v2913_v59 = vmul.f32 %v2910_v43, %v2908_v3  ;;  %v2855_v36 = vpop.permute.xlu1 %2854  ;;  %v2867_v30 = vadd.f32 %v2862_v50, %v2827_v6 }
 0x6bb   : > { %v2861_v58 = vsel %vm2860_vm4, %v2855_v36, %v2857_v25  ;;  %v2943_v25 = vunpack.c.0.s8 %v2942_v19 }
 0x6bc   : > { %v2918_v16 = vadd.f32 %v2915_v56, %v2913_v59  ;;  %v2866_v46 = vadd.f32 %v2861_v58, %v2826_v26  ;;  %v6432_v58 = vld [vmem:[#allocation34_spill] sm:$0xff] }
 0x6bd   : > { %v2946_v29 = vsub.s32 %v2943_v25, %v6390_v62  ;;  %v6426_v62 = vld [vmem:[#allocation20_spill] sm:$0xff] }
 0x6be   : > { %v2897_v35 = vpop.permute.xlu1 %2896  ;;  %v3261_v39 = vmul.f32 -1.442695, %v2918_v16  ;;  %v6433_v16 = vld [vmem:[#allocation35_spill] sm:$0xff] }
 0x6bf   : > { %v2901_v51 = vsel %vm2900_vm5, %v2895_v15, %v2897_v35  ;;  %v2902_v34 = vsel %vm2900_vm5, %v2897_v35, %v2899_v20 }
 0x6c0   : > { %v2906_v2 = vadd.f32 %v2901_v51, %v2866_v46  ;;  %v2907_v49 = vadd.f32 %v2902_v34, %v2867_v30  ;;  %3387 = vpow2.f32 %v3261_v39  ;;  %v6434_v46 = vld [vmem:[#allocation36_spill] sm:$0xff]  ;;  %v6435_v30 = vld [vmem:[#allocation37_spill] sm:$0xff] }
 0x6c2   : > { %v2911_v7 = vmul.f32 %v2910_v43, %v2906_v2  ;;  %v2912_v52 = vmul.f32 %v2910_v43, %v2907_v49 }
 0x6c4   : > { %v2916_v27 = vadd.f32 %v2915_v56, %v2911_v7  ;;  %v2917_v11 = vadd.f32 %v2915_v56, %v2912_v52 }
 0x6c6   : > { %v3259_v44 = vmul.f32 -1.442695, %v2916_v27  ;;  %v3260_v41 = vmul.f32 -1.442695, %v2917_v11 }
 0x6c8   : > { %3389 = vpow2.f32 %v3259_v44 }
 0x6c9   : > { %3391 = vpow2.f32 %v3260_v41 }
 0x6ca   : > { %v3388_v10 = vpop.eup %3387 }
 0x6cb   : > { %v2930_v45 = vadd.f32 1.0, %v3388_v10 }
 0x6cd   : > { %3393 = vrcp.f32 %v2930_v45 }
 0x6d2   : > { %v3390_v42 = vpop.eup %3389 }
 0x6d3   : > { %v3392_v0 = vpop.eup %3391  ;;  %v2928_v61 = vadd.f32 1.0, %v3390_v42 }
 0x6d4   : > { %v2929_v1 = vadd.f32 1.0, %v3392_v0 }
 0x6d5   : > { %3395 = vrcp.f32 %v2928_v61 }
 0x6d6   : > { %3397 = vrcp.f32 %v2929_v1 }
 0x6d7   : > { %v3394_v63 = vpop.eup %3393 }
 0x6d8   : > { %v2954_v12 = vrot.slane %v3394_v63, %v2946_v29 }
 0x6df   : > { %v3396_v33 = vpop.eup %3395 }
 0x6e0   : > { %v3398_v60 = vpop.eup %3397 }
 0x6e1   : > { %v2940_v57 = vcombine.low %v3396_v33, %v3398_v60 }
 0x6e3   : > { %v2947_v48 = vrot.slane %v2940_v57, %v2946_v29 }
 0x6e5   : > { %v2955_v23 = vcombine.low %v2947_v48, %v2954_v12  ;;  %v2956_v37 = vcombine.high %v2947_v48, %v2954_v12 }
 0x6e7   : > { %v2963_v53 = vrot.slane %v2955_v23, %v2946_v29  ;;  %v2970_v15 = vrot.slane %v2956_v37, %v2946_v29 }
 0x6e9   : > { %v2978_v8 = vrot.slane %v2963_v53, %v6425_v40  ;;  %v2974_v21 = vrot.slane %v2963_v53, %v6409_v13  ;;  %v2986_v9 = vrot.slane %v2970_v15, %v6409_v13  ;;  %v2982_v24 = vrot.slane %v2963_v53, %v6426_v62  ;;  %v6427_v13 = vld [vmem:[#allocation32_spill] sm:$0xff] }
 0x6ea   : > { %v2994_v55 = vrot.slane %v2970_v15, %v6426_v62  ;;  %v2990_v47 = vrot.slane %v2970_v15, %v6425_v40 }
 0x6eb   : > { %2997 = vrot.lane.b32.xlu0 %v2978_v8, %s3560_s16  ;;  %2995 = vrot.lane.b32.xlu1 %v2974_v21, %s3560_s16 }
 0x6ef   : > { %3001 = vrot.lane.b32.xlu0 %v2986_v9, %s3560_s16  ;;  %2999 = vrot.lane.b32.xlu1 %v2982_v24, %s3560_s16 }
 0x6f3   : > { %3005 = vrot.lane.b32.xlu0 %v2994_v55, %s3560_s16  ;;  %3003 = vrot.lane.b32.xlu1 %v2990_v47, %s3560_s16 }
 0x75d   : > { %v2998_v22 = vpop.permute.xlu0 %2997  ;;  %v2996_v17 = vpop.permute.xlu1 %2995 }
 0x75e   : > { %v3007_v5 = vsel %vm2900_vm5, %v2996_v17, %v2998_v22 }
 0x75f   : > { %v3015_v28 = vmul.f32 %v3007_v5, %v6427_v13  ;;  %v3017_v20 = vmul.f32 %v3007_v5, %v6428_v14 }
 0x761   : > { %3023 = vst [vmem:[%s351_s21] sm:$0xff] %v3015_v28  ;;  %3025 = vst [vmem:[%s351_s21 + $0x10] sm:$0xff] %v3017_v20  ;;  %v3002_v54 = vpop.permute.xlu0 %3001  ;;  %v3000_v43 = vpop.permute.xlu1 %2999 }
 0x762   : > { %v3008_v32 = vsel %vm2900_vm5, %v2998_v22, %v3000_v43 }
 0x763   : > { %v3016_v3 = vmul.f32 %v3008_v32, %v6430_v18  ;;  %v3018_v56 = vmul.f32 %v3008_v32, %v6431_v31 }
 0x765   : > { %3024 = vst [vmem:[%s351_s21 + $0x8] sm:$0xff] %v3016_v3  ;;  %3026 = vst [vmem:[%s351_s21 + $0x18] sm:$0xff] %v3018_v56  ;;  %v3006_v4 = vpop.permute.xlu0 %3005  ;;  %v3004_v6 = vpop.permute.xlu1 %3003 }
 0x766   : > { %v3009_v59 = vsel %vm2900_vm5, %v3002_v54, %v3004_v6  ;;  %v3010_v36 = vsel %vm2900_vm5, %v3004_v6, %v3006_v4 }
 0x767   : > { %v3019_v26 = vmul.f32 %v3009_v59, %v6432_v58  ;;  %v3020_v50 = vmul.f32 %v3010_v36, %v6433_v16  ;;  %v3021_v35 = vmul.f32 %v3009_v59, %v6434_v46  ;;  %v3022_v39 = vmul.f32 %v3010_v36, %v6435_v30 }
 0x769   : > { %3027 = vst [vmem:[%s351_s21 + $0x20] sm:$0xff] %v3019_v26  ;;  %3028 = vst [vmem:[%s351_s21 + $0x28] sm:$0xff] %v3020_v50 }
 0x76a   : > { %3029 = vst [vmem:[%s351_s21 + $0x30] sm:$0xff] %v3021_v35  ;;  %3030 = vst [vmem:[%s351_s21 + $0x38] sm:$0xff] %v3022_v39 }
 0x76b   : > { %3474 = shalt.err (!%p3471_p7)
}
 0x76c   : > { %s3475_s7 = scalar_lea.hbm %s5909_s29, 1024  ;;  %s3479_s26 = scalar_lea.hbm %s5967_s8, 2048 }
 0x76d   : > { %p3476_p11 = scmp.ne.s32.totalorder %s5909_s29, %s3475_s7  ;;  %p3480_p3 = scmp.lt.u32.totalorder %s5909_s29, %s5967_s8 }
 0x76e   : > { %p3481_p9 = scmp.lt.u32.totalorder %s3479_s26, %s3475_s7  ;;  %p3483_p5 = scmp.lt.u32.totalorder %s3475_s7, %s5909_s29 }
 0x76f   : > { %p3477_p13 = pnand %p3476_p11, %p6436_p2 }
 0x770   : > { %p3482_p1 = por %p3481_p9, %p3480_p3 }
 0x771   : > { %p3478_p6 = pneg %p3477_p13 }
 0x772   : > { %p3484_p8 = por %p3483_p5, %p3482_p1 }
 0x774   : > { %p3485_p10 = pnand %p3484_p8, %p3478_p6 }
 0x776   : > { %3488 = shalt.err (!%p3485_p10)
}
 0x777   : > { %s3563_s11 = smov 256   ;;  %s3564_s20 = smov 16  }
 0x778   : > { %3302 = dma.vmem_to_hbm [thread:$0]  (%p6436_p2), %s5911_s1, 1024, %s5909_s29, %s3032_s9, %s3563_s11, %s3563_s11, %s3564_s20  }
 0x779 PF: > { %s3061_s12 = sand.u32 1, %s3523_s27   ;;  %p6437_p4 = scmp.ne.s32.totalorder %s6093_s18, 0 }
 0x77a   : > { %p6438_p12 = scmp.ge.s32.totalorder %s3535_s30, 2  ;;  %s3062_s16 = scalar_lea.sflag [#allocation4], %s3061_s12 }
 0x77c   : > { %p3316_p0 = pnand %p6438_p12, %p6437_p4 }
 0x77e   : > { %3518 = dma.done.wait (!%p3316_p0), %s3062_s16, 1024  }
 0x77f   : > { %3520 = vsyncadd (!%p3316_p0), %s3062_s16, 4294966272  ;;  %s6439_s30 = sld [smem:[#allocation16_spill]]  ;;  %s6440_s27 = sld [smem:[#allocation14_spill]] }
 0x780   : > { %s6441_s28 = sld [smem:[#allocation15_spill]]  ;;  %s6442_s29 = sld [smem:[#allocation17_spill]] }
 0x785   : > { %p23_p7 = scmp.ge.s32.totalorder %s6439_s30, 4  }
 0x787   :  { %25 = sbr.rel (!%p23_p7) target bundleno = 15 (0xf), region = 106 }
 0x78e   :  { %3067 = vsyncpa [#allocation3], 1 }
 0x78f   :  { %3069 = vsyncpa [#allocation3 + $0x1], 1 }
 0x790   :  { %3070 = vsyncpa [#allocation4], 1 }
 0x791   :  { %3072 = vsyncpa [#allocation4 + $0x1], 1 }
 0x792   :  { %3073 = vsyncpa [#allocation5], 1 }
 0x793   :  { %3075 = vsyncpa [#allocation5 + $0x1], 1 }
 0x794   :  { %3076 = vsyncpa [#allocation8], 1 }

</bundles_post_ra>
